<compile_context>
chip_gen: v6e
topology: v6e:2x2x1
jax: 0.10.0
libtpu: 0.0.40
codegen_flags: <defaults>
</compile_context>

<pallas_src>
import functools

import jax
import jax.numpy as jnp
from jax.experimental import pallas as pl
from jax.experimental.pallas import tpu as pltpu

_LANE = 128
_SUBLANE = 8
_VMEM_LIMIT_BYTES = 32 * 1024 * 1024


def _round_up(x, m):
    return (x + m - 1) // m * m


# ----------------------------------------------------------------------------
# Pallas kernels
# ----------------------------------------------------------------------------
def _gemm_bias_act_kernel(x_ref, w_ref, b_ref, o_ref, *, apply_relu):
    """o = act(x @ w + b); bf16 inputs, f32 accumulate, fused bias/ReLU."""
    acc = jnp.dot(x_ref[...], w_ref[...], preferred_element_type=jnp.float32)
    acc = acc + b_ref[...]                      # b is (1, N); broadcasts over M
    if apply_relu:
        acc = jnp.maximum(acc, 0.0)
    o_ref[...] = acc.astype(o_ref.dtype)


def _fc_fused_kernel(x_ref, w1_ref, b1_ref, w2_ref, b2_ref, o_ref):
    """o = relu(x @ w1 + b1) @ w2 + b2, fully fused in one kernel."""
    h = jnp.dot(x_ref[...], w1_ref[...], preferred_element_type=jnp.float32)
    h = jnp.maximum(h + b1_ref[...], 0.0)
    o = jnp.dot(h.astype(jnp.bfloat16), w2_ref[...],
                preferred_element_type=jnp.float32)
    o_ref[...] = (o + b2_ref[...]).astype(o_ref.dtype)


# ----------------------------------------------------------------------------
# Pallas wrappers (M-tiled, parallel grid)
# ----------------------------------------------------------------------------
def _pad_rows(x, block_m):
    """Pad rows to a sublane/tile multiple; returns (x_padded, M, Mp, tm)."""
    M = x.shape[0]
    Mp = _round_up(M, _SUBLANE)
    tm = min(block_m, Mp)
    Mp = _round_up(Mp, tm)
    if Mp != M:
        x = jnp.pad(x, ((0, Mp - M), (0, 0)))
    return x, M, Mp, tm


def matmul_bias_relu(x, w, b, *, out_dtype, block_m=512):
    """x: (M, K) bf16, w: (K, N) bf16, b: (1, N) f32 -> relu(x @ w + b)."""
    K, N = w.shape
    assert x.shape[1] == K and b.shape == (1, N)
    x, M, Mp, tm = _pad_rows(x, block_m)
    grid = (Mp // tm,)

    flops = 2 * Mp * K * N
    bytes_accessed = (Mp * K * 2 + K * N * 2 + N * 4
                      + Mp * N * jnp.dtype(out_dtype).itemsize)

    out = pl.pallas_call(
        functools.partial(_gemm_bias_act_kernel, apply_relu=True),
        out_shape=jax.ShapeDtypeStruct((Mp, N), out_dtype),
        grid_spec=pltpu.PrefetchScalarGridSpec(
            num_scalar_prefetch=0,
            grid=grid,
            in_specs=[
                pl.BlockSpec((tm, K), lambda i: (i, 0)),
                pl.BlockSpec((K, N), lambda i: (0, 0)),
                pl.BlockSpec((1, N), lambda i: (0, 0)),
            ],
            out_specs=pl.BlockSpec((tm, N), lambda i: (i, 0)),
        ),
        compiler_params=pltpu.CompilerParams(
            dimension_semantics=("parallel",),
            vmem_limit_bytes=_VMEM_LIMIT_BYTES,
        ),
        cost_estimate=pl.CostEstimate(
            flops=flops, transcendentals=0, bytes_accessed=bytes_accessed),
    )(x, w, b)
    return out[:M] if Mp != M else out


def fc_fused(x, w1, b1, w2, b2, *, block_m=256):
    """relu(x @ w1 + b1) @ w2 + b2 in one pallas_call. Returns (M, Np) f32."""
    K, H = w1.shape
    H2, Np = w2.shape
    assert x.shape[1] == K and H == H2
    x, M, Mp, tm = _pad_rows(x, block_m)
    grid = (Mp // tm,)

    flops = 2 * Mp * K * H + 2 * Mp * H * Np
    bytes_accessed = (Mp * K * 2 + K * H * 2 + H * Np * 2
                      + (H + Np) * 4 + Mp * Np * 4)

    out = pl.pallas_call(
        _fc_fused_kernel,
        out_shape=jax.ShapeDtypeStruct((Mp, Np), jnp.float32),
        grid_spec=pltpu.PrefetchScalarGridSpec(
            num_scalar_prefetch=0,
            grid=grid,
            in_specs=[
                pl.BlockSpec((tm, K), lambda i: (i, 0)),
                pl.BlockSpec((K, H), lambda i: (0, 0)),
                pl.BlockSpec((1, H), lambda i: (0, 0)),
                pl.BlockSpec((H, Np), lambda i: (0, 0)),
                pl.BlockSpec((1, Np), lambda i: (0, 0)),
            ],
            out_specs=pl.BlockSpec((tm, Np), lambda i: (i, 0)),
        ),
        compiler_params=pltpu.CompilerParams(
            dimension_semantics=("parallel",),
            vmem_limit_bytes=_VMEM_LIMIT_BYTES,
        ),
        cost_estimate=pl.CostEstimate(
            flops=flops, transcendentals=0, bytes_accessed=bytes_accessed),
    )(x, w1, b1, w2, b2)
    return out[:M] if Mp != M else out


# ----------------------------------------------------------------------------
# Conv2d (valid padding) as NHWC im2col + Pallas GEMM (lane-dense output)
# ----------------------------------------------------------------------------
def _im2col_nhwc(x, kh, kw, stride, c_take):
    """x: (B, H, W, C) -> cols (B*Ho*Wo, kh*kw*c_take), feature order (i,j,c).

    Only the first `c_take` (real) channels of each patch are kept, so the
    GEMM reduction dim never carries the zero lane-padding of the producer.
    """
    B, H, W, _ = x.shape
    Ho = (H - kh) // stride + 1
    Wo = (W - kw) // stride + 1
    patches = [
        x[:, i:i + stride * Ho:stride, j:j + stride * Wo:stride, :c_take]
        for i in range(kh) for j in range(kw)
    ]
    cols = jnp.concatenate(patches, axis=-1)        # (B, Ho, Wo, kh*kw*c_take)
    return cols.reshape(B * Ho * Wo, kh * kw * c_take), Ho, Wo


def conv2d_relu(x_nhwc, w_packed, b_packed, *, ksize, stride, cin):
    """w_packed: (ksize*ksize*cin, Cout_pad) bf16 (pre-permuted at init)."""
    B = x_nhwc.shape[0]
    cols, Ho, Wo = _im2col_nhwc(x_nhwc, ksize, ksize, stride, cin)
    assert cols.shape[1] == w_packed.shape[0]
    out = matmul_bias_relu(cols, w_packed, b_packed, out_dtype=jnp.bfloat16)
    cout_pad = w_packed.shape[1]
    return out.reshape(B, Ho, Wo, cout_pad)         # NHWC, no transpose


# ----------------------------------------------------------------------------
# Parameter init (PyTorch-style) + one-time packing to TPU-friendly layouts
# ----------------------------------------------------------------------------
def _pack_conv_weight(w, cin_pad, cout_pad):
    cout, cin, kh, kw = w.shape
    w = jnp.transpose(w, (2, 3, 1, 0))              # (kh, kw, cin, cout)
    w = jnp.pad(w, ((0, 0), (0, 0), (0, cin_pad - cin), (0, cout_pad - cout)))
    return w.reshape(kh * kw * cin_pad, cout_pad).astype(jnp.bfloat16)


def _pack_bias(b, n_pad):
    return jnp.pad(b, (0, n_pad - b.shape[0])).reshape(1, n_pad).astype(jnp.float32)


def _pack_fc1_weight(w, c_real=64, hw=7):
    # w rows are PyTorch channel-major features f = c*hw*hw + h*hw + w.
    # Re-order once so rows match the NHWC flatten g = (h*hw + w)*c_real + c.
    n_out = w.shape[1]
    w = w.reshape(c_real, hw, hw, n_out)
    w = jnp.transpose(w, (1, 2, 0, 3))              # (h, w, c, out)
    return w.reshape(hw * hw * c_real, n_out).astype(jnp.bfloat16)


def _pack_fc2_weight(w, n_pad=_LANE):
    k, n = w.shape
    return jnp.pad(w, ((0, 0), (0, n_pad - n))).astype(jnp.bfloat16)


def init_dqn_params(key, action_size):
    def _uniform(k, shape, fan_in):
        bound = 1.0 / jnp.sqrt(jnp.float32(fan_in))
        return jax.random.uniform(k, shape, jnp.float32, -bound, bound)

    ks = jax.random.split(key, 10)
    conv1_w = _uniform(ks[0], (32, 3, 8, 8), 3 * 8 * 8)
    conv1_b = _uniform(ks[1], (32,), 3 * 8 * 8)
    conv2_w = _uniform(ks[2], (64, 32, 4, 4), 32 * 4 * 4)
    conv2_b = _uniform(ks[3], (64,), 32 * 4 * 4)
    conv3_w = _uniform(ks[4], (64, 64, 3, 3), 64 * 3 * 3)
    conv3_b = _uniform(ks[5], (64,), 64 * 3 * 3)
    fc1_w = _uniform(ks[6], (64 * 7 * 7, 512), 64 * 7 * 7)   # (in, out)
    fc1_b = _uniform(ks[7], (512,), 64 * 7 * 7)
    fc2_w = _uniform(ks[8], (512, action_size), 512)          # (in, out)
    fc2_b = _uniform(ks[9], (action_size,), 512)

    return {
        # Cin is kept real (no K inflation); Cout is padded to 128 lanes so
        # every conv GEMM store is lane-dense.
        "conv1_w": _pack_conv_weight(conv1_w, cin_pad=4, cout_pad=_LANE),   # K=256
        "conv1_b": _pack_bias(conv1_b, _LANE),
        "conv2_w": _pack_conv_weight(conv2_w, cin_pad=32, cout_pad=_LANE),  # K=512
        "conv2_b": _pack_bias(conv2_b, _LANE),
        "conv3_w": _pack_conv_weight(conv3_w, cin_pad=64, cout_pad=_LANE),  # K=576
        "conv3_b": _pack_bias(conv3_b, _LANE),
        "fc1_w": _pack_fc1_weight(fc1_w),                                   # (3136, 512)
        "fc1_b": fc1_b.reshape(1, 512).astype(jnp.float32),
        "fc2_w": _pack_fc2_weight(fc2_w),                                   # (512, 128)
        "fc2_b": _pack_bias(fc2_b, _LANE),
    }


# ----------------------------------------------------------------------------
# Forward
# ----------------------------------------------------------------------------
def dqn_forward(params, x, *, action_size):
    """x: (B, 3, 84, 84) f32 (NCHW, like PyTorch). Returns (B, action_size) f32."""
    B = x.shape[0]
    # Single layout change: NCHW -> NHWC; pad channels 3 -> 4; bf16 for the MXU.
    x = jnp.transpose(x, (0, 2, 3, 1))
    x = jnp.pad(x, ((0, 0), (0, 0), (0, 0), (0, 1))).astype(jnp.bfloat16)

    x = conv2d_relu(x, params["conv1_w"], params["conv1_b"],
                    ksize=8, stride=4, cin=4)    # (B, 20, 20, 128), real C=32
    x = conv2d_relu(x, params["conv2_w"], params["conv2_b"],
                    ksize=4, stride=2, cin=32)   # (B,  9,  9, 128), real C=64
    x = conv2d_relu(x, params["conv3_w"], params["conv3_b"],
                    ksize=3, stride=1, cin=64)   # (B,  7,  7, 128), real C=64

    # NHWC flatten of the 64 real channels; fc1_w rows were pre-permuted to match.
    x = x[..., :64].reshape(B, 7 * 7 * 64)       # (B, 3136) bf16
    out = fc_fused(x, params["fc1_w"], params["fc1_b"],
                   params["fc2_w"], params["fc2_b"])            # (B, 128) f32
    return out[:, :action_size]


if __name__ == "__main__":
    ACTION_SIZE = 4
    BATCH = 2

    key = jax.random.PRNGKey(0)
    k_params, k_x = jax.random.split(key)

    params = init_dqn_params(k_params, ACTION_SIZE)
    # 84x84 spatial is required by the module (fc1 expects 64*7*7 features).
    x = jax.random.normal(k_x, (BATCH, 3, 84, 84), jnp.float32)

    fwd = jax.jit(functools.partial(dqn_forward, action_size=ACTION_SIZE))
    out = jax.block_until_ready(fwd(params, x))

    assert out.shape == (BATCH, ACTION_SIZE), out.shape
    assert out.dtype == jnp.float32, out.dtype
    print("KERNEL_OK")
</pallas_src>

<mosaic_0001>
module attributes {stable_mosaic.version = 11 : i64} {
  func.func @_gemm_bias_act_kernel(%arg0: i32, %arg1: memref<512x256xbf16, #tpu.memory_space<vmem>>, %arg2: memref<256x128xbf16, #tpu.memory_space<vmem>>, %arg3: memref<1x128xf32, #tpu.memory_space<vmem>>, %arg4: memref<512x128xbf16, #tpu.memory_space<vmem>>) attributes {dimension_semantics = [#tpu.dimension_semantics<parallel>], iteration_bounds = array<i64: 2>, scalar_prefetch = 0 : i64, scratch_operands = 0 : i64, tpu.core_type = #tpu.core_type<tc>, window_params = [{transform_indices = @transform_0, window_bounds = array<i64: 512, 256>}, {pipeline_mode = #tpu.pipeline_mode<synchronous>, transform_indices = @transform_1, window_bounds = array<i64: 256, 128>}, {pipeline_mode = #tpu.pipeline_mode<synchronous>, transform_indices = @transform_2, window_bounds = array<i64: 1, 128>}, {transform_indices = @transform_3, window_bounds = array<i64: 512, 128>}]} {
    %c0 = arith.constant 0 : index
    %c0_0 = arith.constant 0 : index
    %0 = vector.load %arg1[%c0, %c0_0] : memref<512x256xbf16, #tpu.memory_space<vmem>>, vector<512x256xbf16>
    %c0_1 = arith.constant 0 : index
    %c0_2 = arith.constant 0 : index
    %1 = vector.load %arg2[%c0_1, %c0_2] : memref<256x128xbf16, #tpu.memory_space<vmem>>, vector<256x128xbf16>
    %cst = arith.constant dense<0.000000e+00> : vector<512x128xf32>
    %2 = tpu.matmul %0, %1, %cst {dimension_numbers = #tpu.dot_dimension_numbers<[1], [0], [0], [1], [0, 0, 1, 1], [], []>} : vector<512x256xbf16>, vector<256x128xbf16>, vector<512x128xf32> -> vector<512x128xf32>
    %c0_3 = arith.constant 0 : index
    %c0_4 = arith.constant 0 : index
    %3 = vector.load %arg3[%c0_3, %c0_4] : memref<1x128xf32, #tpu.memory_space<vmem>>, vector<1x128xf32>
    %4 = vector.broadcast %3 : vector<1x128xf32> to vector<512x128xf32>
    %5 = arith.addf %2, %4 : vector<512x128xf32>
    %cst_5 = arith.constant 0.000000e+00 : f32
    %6 = vector.broadcast %cst_5 : f32 to vector<512x128xf32>
    %7 = arith.maximumf %5, %6 : vector<512x128xf32>
    %8 = arith.truncf %7 : vector<512x128xf32> to vector<512x128xbf16>
    %c0_6 = arith.constant 0 : index
    %c0_7 = arith.constant 0 : index
    %9 = vector.load %arg4[%c0_6, %c0_7] : memref<512x128xbf16, #tpu.memory_space<vmem>>, vector<512x128xbf16>
    tpu.vector_store %arg4[%c0_6, %c0_7], %8 {strides = array<i32>} : memref<512x128xbf16, #tpu.memory_space<vmem>>, vector<512x128xbf16>,
    return
  }
  func.func @transform_0(%arg0: i32) -> (i32, i32) {
    %c0_i32 = arith.constant 0 : i32
    %c0_i32_0 = arith.constant 0 : i32
    return %arg0, %c0_i32 : i32, i32
  }
  func.func @transform_1(%arg0: i32) -> (i32, i32) {
    %c0_i32 = arith.constant 0 : i32
    %c0_i32_0 = arith.constant 0 : i32
    %c0_i32_1 = arith.constant 0 : i32
    return %c0_i32, %c0_i32_0 : i32, i32
  }
  func.func @transform_2(%arg0: i32) -> (i32, i32) {
    %c0_i32 = arith.constant 0 : i32
    %c0_i32_0 = arith.constant 0 : i32
    %c0_i32_1 = arith.constant 0 : i32
    return %c0_i32, %c0_i32_0 : i32, i32
  }
  func.func @transform_3(%arg0: i32) -> (i32, i32) {
    %c0_i32 = arith.constant 0 : i32
    %c0_i32_0 = arith.constant 0 : i32
    return %arg0, %c0_i32 : i32, i32
  }
}

module attributes {stable_mosaic.version = 11 : i64} {
  func.func @_gemm_bias_act_kernel(%arg0: i32, %arg1: memref<168x512xbf16, #tpu.memory_space<vmem>>, %arg2: memref<512x128xbf16, #tpu.memory_space<vmem>>, %arg3: memref<1x128xf32, #tpu.memory_space<vmem>>, %arg4: memref<168x128xbf16, #tpu.memory_space<vmem>>) attributes {dimension_semantics = [#tpu.dimension_semantics<parallel>], iteration_bounds = array<i64: 1>, scalar_prefetch = 0 : i64, scratch_operands = 0 : i64, tpu.core_type = #tpu.core_type<tc>, window_params = [{transform_indices = @transform_0, window_bounds = array<i64: 168, 512>}, {pipeline_mode = #tpu.pipeline_mode<synchronous>, transform_indices = @transform_1, window_bounds = array<i64: 512, 128>}, {pipeline_mode = #tpu.pipeline_mode<synchronous>, transform_indices = @transform_2, window_bounds = array<i64: 1, 128>}, {transform_indices = @transform_3, window_bounds = array<i64: 168, 128>}]} {
    %c0 = arith.constant 0 : index
    %c0_0 = arith.constant 0 : index
    %0 = vector.load %arg1[%c0, %c0_0] : memref<168x512xbf16, #tpu.memory_space<vmem>>, vector<168x512xbf16>
    %c0_1 = arith.constant 0 : index
    %c0_2 = arith.constant 0 : index
    %1 = vector.load %arg2[%c0_1, %c0_2] : memref<512x128xbf16, #tpu.memory_space<vmem>>, vector<512x128xbf16>
    %cst = arith.constant dense<0.000000e+00> : vector<168x128xf32>
    %2 = tpu.matmul %0, %1, %cst {dimension_numbers = #tpu.dot_dimension_numbers<[1], [0], [0], [1], [0, 0, 1, 1], [], []>} : vector<168x512xbf16>, vector<512x128xbf16>, vector<168x128xf32> -> vector<168x128xf32>
    %c0_3 = arith.constant 0 : index
    %c0_4 = arith.constant 0 : index
    %3 = vector.load %arg3[%c0_3, %c0_4] : memref<1x128xf32, #tpu.memory_space<vmem>>, vector<1x128xf32>
    %4 = vector.broadcast %3 : vector<1x128xf32> to vector<168x128xf32>
    %5 = arith.addf %2, %4 : vector<168x128xf32>
    %cst_5 = arith.constant 0.000000e+00 : f32
    %6 = vector.broadcast %cst_5 : f32 to vector<168x128xf32>
    %7 = arith.maximumf %5, %6 : vector<168x128xf32>
    %8 = arith.truncf %7 : vector<168x128xf32> to vector<168x128xbf16>
    %c0_6 = arith.constant 0 : index
    %c0_7 = arith.constant 0 : index
    %9 = vector.load %arg4[%c0_6, %c0_7] : memref<168x128xbf16, #tpu.memory_space<vmem>>, vector<168x128xbf16>
    tpu.vector_store %arg4[%c0_6, %c0_7], %8 {strides = array<i32>} : memref<168x128xbf16, #tpu.memory_space<vmem>>, vector<168x128xbf16>,
    return
  }
  func.func @transform_0(%arg0: i32) -> (i32, i32) {
    %c0_i32 = arith.constant 0 : i32
    %c0_i32_0 = arith.constant 0 : i32
    return %arg0, %c0_i32 : i32, i32
  }
  func.func @transform_1(%arg0: i32) -> (i32, i32) {
    %c0_i32 = arith.constant 0 : i32
    %c0_i32_0 = arith.constant 0 : i32
    %c0_i32_1 = arith.constant 0 : i32
    return %c0_i32, %c0_i32_0 : i32, i32
  }
  func.func @transform_2(%arg0: i32) -> (i32, i32) {
    %c0_i32 = arith.constant 0 : i32
    %c0_i32_0 = arith.constant 0 : i32
    %c0_i32_1 = arith.constant 0 : i32
    return %c0_i32, %c0_i32_0 : i32, i32
  }
  func.func @transform_3(%arg0: i32) -> (i32, i32) {
    %c0_i32 = arith.constant 0 : i32
    %c0_i32_0 = arith.constant 0 : i32
    return %arg0, %c0_i32 : i32, i32
  }
}

module attributes {stable_mosaic.version = 11 : i64} {
  func.func @_gemm_bias_act_kernel(%arg0: i32, %arg1: memref<104x576xbf16, #tpu.memory_space<vmem>>, %arg2: memref<576x128xbf16, #tpu.memory_space<vmem>>, %arg3: memref<1x128xf32, #tpu.memory_space<vmem>>, %arg4: memref<104x128xbf16, #tpu.memory_space<vmem>>) attributes {dimension_semantics = [#tpu.dimension_semantics<parallel>], iteration_bounds = array<i64: 1>, scalar_prefetch = 0 : i64, scratch_operands = 0 : i64, tpu.core_type = #tpu.core_type<tc>, window_params = [{transform_indices = @transform_0, window_bounds = array<i64: 104, 576>}, {pipeline_mode = #tpu.pipeline_mode<synchronous>, transform_indices = @transform_1, window_bounds = array<i64: 576, 128>}, {pipeline_mode = #tpu.pipeline_mode<synchronous>, transform_indices = @transform_2, window_bounds = array<i64: 1, 128>}, {transform_indices = @transform_3, window_bounds = array<i64: 104, 128>}]} {
    %c0 = arith.constant 0 : index
    %c0_0 = arith.constant 0 : index
    %0 = vector.load %arg1[%c0, %c0_0] : memref<104x576xbf16, #tpu.memory_space<vmem>>, vector<104x576xbf16>
    %c0_1 = arith.constant 0 : index
    %c0_2 = arith.constant 0 : index
    %1 = vector.load %arg2[%c0_1, %c0_2] : memref<576x128xbf16, #tpu.memory_space<vmem>>, vector<576x128xbf16>
    %cst = arith.constant dense<0.000000e+00> : vector<104x128xf32>
    %2 = tpu.matmul %0, %1, %cst {dimension_numbers = #tpu.dot_dimension_numbers<[1], [0], [0], [1], [0, 0, 1, 1], [], []>} : vector<104x576xbf16>, vector<576x128xbf16>, vector<104x128xf32> -> vector<104x128xf32>
    %c0_3 = arith.constant 0 : index
    %c0_4 = arith.constant 0 : index
    %3 = vector.load %arg3[%c0_3, %c0_4] : memref<1x128xf32, #tpu.memory_space<vmem>>, vector<1x128xf32>
    %4 = vector.broadcast %3 : vector<1x128xf32> to vector<104x128xf32>
    %5 = arith.addf %2, %4 : vector<104x128xf32>
    %cst_5 = arith.constant 0.000000e+00 : f32
    %6 = vector.broadcast %cst_5 : f32 to vector<104x128xf32>
    %7 = arith.maximumf %5, %6 : vector<104x128xf32>
    %8 = arith.truncf %7 : vector<104x128xf32> to vector<104x128xbf16>
    %c0_6 = arith.constant 0 : index
    %c0_7 = arith.constant 0 : index
    %9 = vector.load %arg4[%c0_6, %c0_7] : memref<104x128xbf16, #tpu.memory_space<vmem>>, vector<104x128xbf16>
    tpu.vector_store %arg4[%c0_6, %c0_7], %8 {strides = array<i32>} : memref<104x128xbf16, #tpu.memory_space<vmem>>, vector<104x128xbf16>,
    return
  }
  func.func @transform_0(%arg0: i32) -> (i32, i32) {
    %c0_i32 = arith.constant 0 : i32
    %c0_i32_0 = arith.constant 0 : i32
    return %arg0, %c0_i32 : i32, i32
  }
  func.func @transform_1(%arg0: i32) -> (i32, i32) {
    %c0_i32 = arith.constant 0 : i32
    %c0_i32_0 = arith.constant 0 : i32
    %c0_i32_1 = arith.constant 0 : i32
    return %c0_i32, %c0_i32_0 : i32, i32
  }
  func.func @transform_2(%arg0: i32) -> (i32, i32) {
    %c0_i32 = arith.constant 0 : i32
    %c0_i32_0 = arith.constant 0 : i32
    %c0_i32_1 = arith.constant 0 : i32
    return %c0_i32, %c0_i32_0 : i32, i32
  }
  func.func @transform_3(%arg0: i32) -> (i32, i32) {
    %c0_i32 = arith.constant 0 : i32
    %c0_i32_0 = arith.constant 0 : i32
    return %arg0, %c0_i32 : i32, i32
  }
}

module attributes {stable_mosaic.version = 11 : i64} {
  func.func @_fc_fused_kernel(%arg0: i32, %arg1: memref<8x3136xbf16, #tpu.memory_space<vmem>>, %arg2: memref<3136x512xbf16, #tpu.memory_space<vmem>>, %arg3: memref<1x512xf32, #tpu.memory_space<vmem>>, %arg4: memref<512x128xbf16, #tpu.memory_space<vmem>>, %arg5: memref<1x128xf32, #tpu.memory_space<vmem>>, %arg6: memref<8x128xf32, #tpu.memory_space<vmem>>) attributes {dimension_semantics = [#tpu.dimension_semantics<parallel>], iteration_bounds = array<i64: 1>, scalar_prefetch = 0 : i64, scratch_operands = 0 : i64, tpu.core_type = #tpu.core_type<tc>, window_params = [{transform_indices = @transform_0, window_bounds = array<i64: 8, 3136>}, {pipeline_mode = #tpu.pipeline_mode<synchronous>, transform_indices = @transform_1, window_bounds = array<i64: 3136, 512>}, {pipeline_mode = #tpu.pipeline_mode<synchronous>, transform_indices = @transform_2, window_bounds = array<i64: 1, 512>}, {pipeline_mode = #tpu.pipeline_mode<synchronous>, transform_indices = @transform_3, window_bounds = array<i64: 512, 128>}, {pipeline_mode = #tpu.pipeline_mode<synchronous>, transform_indices = @transform_4, window_bounds = array<i64: 1, 128>}, {transform_indices = @transform_5, window_bounds = array<i64: 8, 128>}]} {
    %c0 = arith.constant 0 : index
    %c0_0 = arith.constant 0 : index
    %0 = vector.load %arg1[%c0, %c0_0] : memref<8x3136xbf16, #tpu.memory_space<vmem>>, vector<8x3136xbf16>
    %c0_1 = arith.constant 0 : index
    %c0_2 = arith.constant 0 : index
    %1 = vector.load %arg2[%c0_1, %c0_2] : memref<3136x512xbf16, #tpu.memory_space<vmem>>, vector<3136x512xbf16>
    %cst = arith.constant dense<0.000000e+00> : vector<8x512xf32>
    %2 = tpu.matmul %0, %1, %cst {dimension_numbers = #tpu.dot_dimension_numbers<[1], [0], [0], [1], [0, 0, 1, 1], [], []>} : vector<8x3136xbf16>, vector<3136x512xbf16>, vector<8x512xf32> -> vector<8x512xf32>
    %c0_3 = arith.constant 0 : index
    %c0_4 = arith.constant 0 : index
    %3 = vector.load %arg3[%c0_3, %c0_4] : memref<1x512xf32, #tpu.memory_space<vmem>>, vector<1x512xf32>
    %4 = vector.broadcast %3 : vector<1x512xf32> to vector<8x512xf32>
    %5 = arith.addf %2, %4 : vector<8x512xf32>
    %cst_5 = arith.constant 0.000000e+00 : f32
    %6 = vector.broadcast %cst_5 : f32 to vector<8x512xf32>
    %7 = arith.maximumf %5, %6 : vector<8x512xf32>
    %8 = arith.truncf %7 : vector<8x512xf32> to vector<8x512xbf16>
    %c0_6 = arith.constant 0 : index
    %c0_7 = arith.constant 0 : index
    %9 = vector.load %arg4[%c0_6, %c0_7] : memref<512x128xbf16, #tpu.memory_space<vmem>>, vector<512x128xbf16>
    %cst_8 = arith.constant dense<0.000000e+00> : vector<8x128xf32>
    %10 = tpu.matmul %8, %9, %cst_8 {dimension_numbers = #tpu.dot_dimension_numbers<[1], [0], [0], [1], [0, 0, 1, 1], [], []>} : vector<8x512xbf16>, vector<512x128xbf16>, vector<8x128xf32> -> vector<8x128xf32>
    %c0_9 = arith.constant 0 : index
    %c0_10 = arith.constant 0 : index
    %11 = vector.load %arg5[%c0_9, %c0_10] : memref<1x128xf32, #tpu.memory_space<vmem>>, vector<1x128xf32>
    %12 = vector.broadcast %11 : vector<1x128xf32> to vector<8x128xf32>
    %13 = arith.addf %10, %12 : vector<8x128xf32>
    %c0_11 = arith.constant 0 : index
    %c0_12 = arith.constant 0 : index
    %14 = vector.load %arg6[%c0_11, %c0_12] : memref<8x128xf32, #tpu.memory_space<vmem>>, vector<8x128xf32>
    tpu.vector_store %arg6[%c0_11, %c0_12], %13 {strides = array<i32>} : memref<8x128xf32, #tpu.memory_space<vmem>>, vector<8x128xf32>,
    return
  }
  func.func @transform_0(%arg0: i32) -> (i32, i32) {
    %c0_i32 = arith.constant 0 : i32
    %c0_i32_0 = arith.constant 0 : i32
    return %arg0, %c0_i32 : i32, i32
  }
  func.func @transform_1(%arg0: i32) -> (i32, i32) {
    %c0_i32 = arith.constant 0 : i32
    %c0_i32_0 = arith.constant 0 : i32
    %c0_i32_1 = arith.constant 0 : i32
    return %c0_i32, %c0_i32_0 : i32, i32
  }
  func.func @transform_2(%arg0: i32) -> (i32, i32) {
    %c0_i32 = arith.constant 0 : i32
    %c0_i32_0 = arith.constant 0 : i32
    %c0_i32_1 = arith.constant 0 : i32
    return %c0_i32, %c0_i32_0 : i32, i32
  }
  func.func @transform_3(%arg0: i32) -> (i32, i32) {
    %c0_i32 = arith.constant 0 : i32
    %c0_i32_0 = arith.constant 0 : i32
    %c0_i32_1 = arith.constant 0 : i32
    return %c0_i32, %c0_i32_0 : i32, i32
  }
  func.func @transform_4(%arg0: i32) -> (i32, i32) {
    %c0_i32 = arith.constant 0 : i32
    %c0_i32_0 = arith.constant 0 : i32
    %c0_i32_1 = arith.constant 0 : i32
    return %c0_i32, %c0_i32_0 : i32, i32
  }
  func.func @transform_5(%arg0: i32) -> (i32, i32) {
    %c0_i32 = arith.constant 0 : i32
    %c0_i32_0 = arith.constant 0 : i32
    return %arg0, %c0_i32 : i32, i32
  }
}

</mosaic_0001>

<bundles_post_ra>
// kernel: dqn_forward.4
= control target key start
LH: loop header
LB: loop body
LE: loop exit
PB: predicated region body
PF: predicated region fallthrough
CT: control target
= control target key end

     0   :  { %s2021_s12 = smov 0   ;;  %s2291_s0 = inlined_call_operand.vmem [shape: bf16[1024,256], index: 0, kind: input, shape index: {}]   ;;  %s2292_s1 = inlined_call_operand.vmem [shape: bf16[256,128], index: 1, kind: input, shape index: {}]   ;;  %s2293_s2 = inlined_call_operand.vmem [shape: f32[1,128], index: 2, kind: input, shape index: {}]   ;;  %s2294_s3 = inlined_call_operand.vmem [shape: bf16[1024,128], index: 3, kind: output, shape index: {}]  }
   0x1 LB: > { %s1426_s13 = sadd.s32 4294967295, %s1998_s12   ;;  %p1430_p0 = scmp.ge.s32.totalorder %s1998_s12, 1  ;;  %s1998_s12 = sphi %s2021_s12, %s13_s12  }
   0x2   : > { %p139_p1 = scmp.lt.s32.totalorder %s1998_s12, 3 }
   0x4   : > { %p140_p2 = pnand %p1430_p0, %p139_p1 }
   0x5   : > { %s1431_s16 = sshll.u32 (!%p140_p2), %s1426_s13, 6 }
   0x6   : > { %143 = sbr.rel (%p140_p2) target bundleno = 400 (0x190), region = 32  ;;  %p165_p3 = scmp.lt.s32.totalorder (!%p140_p2), %s1431_s16, 127 }
   0xb   : > { %v1880_v0 = vld [vmem:[%s2292_s1 + $0x38] sm:$0xff]   ;;  %v2000_v1 = vmov 0   ;;  %v1881_v2 = vld [vmem:[%s2292_s1 + $0x30] sm:$0xff]   ;;  %v1882_v3 = vld [vmem:[%s2292_s1 + $0x28] sm:$0xff]   ;;  %s2296_s16 = smov (!%p165_p3, %s1431_s16), 127 }
   0xc   : > { %697 = vmatprep.subr.bf16.mxu0 %v2000_v1  ;;  %1839 = vmatprep.subr.bf16.mxu1 %v2000_v1  ;;  %v1883_v4 = vld [vmem:[%s2292_s1 + $0x20] sm:$0xff]   ;;  %s1583_s23 = sshll.u32 %s2296_s16, 3  ;;  %v1884_v5 = vld [vmem:[%s2292_s1 + $0x18] sm:$0xff]   ;;  %v1885_v7 = vld [vmem:[%s2292_s1 + $0x10] sm:$0xff]   ;;  %s1435_s29 = sshll.u32 %s2296_s16, 2 }
   0xd   : > { %698 = vmatpush1.bf16.msra.mxu0 %v1880_v0  ;;  %1855 = vmatpush1.bf16.msra.mxu1 %v1880_v0  ;;  %s2058_s28 = scalar_lea.vmem %s2291_s0, %s1583_s23  ;;  %v1886_v9 = vld [vmem:[%s2292_s1 + $0x8] sm:$0xff]   ;;  %v1887_v10 = vld [vmem:[%s2292_s1] sm:$0xff]   ;;  %v1888_v11 = vld [vmem:[%s2292_s1 + $0x78] sm:$0xff]   ;;  %s2194_s4 = scalar_lea.vmem %s2294_s3, %s1435_s29 }
   0xe   : > { %699 = vmatprep.subr.bf16.mxu0 %v2000_v1  ;;  %1840 = vmatprep.subr.bf16.mxu1 %v2000_v1  ;;  %v1898_v6 = vld [vmem:[%s2058_s28 + $0x4] ss:$8 sps:$4 sm:$0xff]   ;;  %v1889_v12 = vld [vmem:[%s2292_s1 + $0x70] sm:$0xff]   ;;  %v1892_v15 = vld [vmem:[%s2292_s1 + $0x58] sm:$0xff]  }
   0xf   : > { %v1901_v8 = vld [vmem:[%s2058_s28 + $0x104] ss:$8 sps:$4 sm:$0xff]   ;;  %729 = vmatprep.mubr.bf16.mxu0 %v1898_v6  ;;  %v1893_v16 = vld [vmem:[%s2292_s1 + $0x50] sm:$0xff]   ;;  %v1896_v19 = vld [vmem:[%s2058_s28] ss:$8 sps:$4 sm:$0xff]  }
  0x10   : > { %857 = vmatprep.mubr.bf16.mxu1 %v1901_v8  ;;  %v1890_v13 = vld [vmem:[%s2292_s1 + $0x68] sm:$0xff]   ;;  %v1891_v14 = vld [vmem:[%s2292_s1 + $0x60] sm:$0xff]   ;;  %v1902_v21 = vld [vmem:[%s2058_s28 + $0x14] ss:$8 sps:$4 sm:$0xff]  }
  0x11   : > { %700 = vmatpush1.bf16.msra.mxu0 %v1881_v2  ;;  %1856 = vmatpush1.bf16.msra.mxu1 %v1881_v2  ;;  %v1894_v17 = vld [vmem:[%s2292_s1 + $0x48] sm:$0xff]   ;;  %v1895_v18 = vld [vmem:[%s2292_s1 + $0x40] sm:$0xff]   ;;  %v1904_v22 = vld [vmem:[%s2058_s28 + $0x114] ss:$8 sps:$4 sm:$0xff]  }
  0x12   : > { %701 = vmatprep.subr.bf16.mxu0 %v2000_v1  ;;  %1841 = vmatprep.subr.bf16.mxu1 %v2000_v1  ;;  %v1899_v20 = vld [vmem:[%s2058_s28 + $0x100] ss:$8 sps:$4 sm:$0xff]   ;;  %v1906_v23 = vld [vmem:[%s2058_s28 + $0x10] ss:$8 sps:$4 sm:$0xff]   ;;  %v1908_v25 = vld [vmem:[%s2058_s28 + $0x24] ss:$8 sps:$4 sm:$0xff]  }
  0x13   : > { %v1907_v24 = vld [vmem:[%s2058_s28 + $0x110] ss:$8 sps:$4 sm:$0xff]   ;;  %v1910_v26 = vld [vmem:[%s2058_s28 + $0x124] ss:$8 sps:$4 sm:$0xff]   ;;  %v1912_v27 = vld [vmem:[%s2058_s28 + $0x20] ss:$8 sps:$4 sm:$0xff]  }
  0x14   : > { %v1913_v28 = vld [vmem:[%s2058_s28 + $0x120] ss:$8 sps:$4 sm:$0xff]   ;;  %v1914_v29 = vld [vmem:[%s2058_s28 + $0x34] ss:$8 sps:$4 sm:$0xff]   ;;  %v1918_v31 = vld [vmem:[%s2058_s28 + $0x30] ss:$8 sps:$4 sm:$0xff]  }
  0x15   : > { %702 = vmatpush1.bf16.msra.mxu0 %v1882_v3  ;;  %1857 = vmatpush1.bf16.msra.mxu1 %v1882_v3  ;;  %v1916_v30 = vld [vmem:[%s2058_s28 + $0x134] ss:$8 sps:$4 sm:$0xff]   ;;  %v1919_v32 = vld [vmem:[%s2058_s28 + $0x130] ss:$8 sps:$4 sm:$0xff]   ;;  %v1920_v33 = vld [vmem:[%s2058_s28 + $0x44] ss:$8 sps:$4 sm:$0xff]  }
  0x16   : > { %703 = vmatprep.subr.bf16.mxu0 %v2000_v1  ;;  %1842 = vmatprep.subr.bf16.mxu1 %v2000_v1  ;;  %v1922_v34 = vld [vmem:[%s2058_s28 + $0x144] ss:$8 sps:$4 sm:$0xff]   ;;  %v1924_v35 = vld [vmem:[%s2058_s28 + $0x40] ss:$8 sps:$4 sm:$0xff]   ;;  %v1926_v37 = vld [vmem:[%s2058_s28 + $0x54] ss:$8 sps:$4 sm:$0xff]  }
  0x17   : > { %v1925_v36 = vld [vmem:[%s2058_s28 + $0x140] ss:$8 sps:$4 sm:$0xff]   ;;  %v1928_v38 = vld [vmem:[%s2058_s28 + $0x154] ss:$8 sps:$4 sm:$0xff]   ;;  %v1930_v39 = vld [vmem:[%s2058_s28 + $0x50] ss:$8 sps:$4 sm:$0xff]  }
  0x18   : > { %v1931_v40 = vld [vmem:[%s2058_s28 + $0x150] ss:$8 sps:$4 sm:$0xff]   ;;  %v1932_v41 = vld [vmem:[%s2058_s28 + $0x64] ss:$8 sps:$4 sm:$0xff]   ;;  %v1936_v43 = vld [vmem:[%s2058_s28 + $0x60] ss:$8 sps:$4 sm:$0xff]  }
  0x19   : > { %704 = vmatpush1.bf16.msra.mxu0 %v1883_v4  ;;  %1858 = vmatpush1.bf16.msra.mxu1 %v1883_v4  ;;  %v1934_v42 = vld [vmem:[%s2058_s28 + $0x164] ss:$8 sps:$4 sm:$0xff]   ;;  %v1937_v44 = vld [vmem:[%s2058_s28 + $0x160] ss:$8 sps:$4 sm:$0xff]   ;;  %v1938_v45 = vld [vmem:[%s2058_s28 + $0x74] ss:$8 sps:$4 sm:$0xff]  }
  0x1a   : > { %705 = vmatprep.subr.bf16.mxu0 %v2000_v1  ;;  %1843 = vmatprep.subr.bf16.mxu1 %v2000_v1  ;;  %v1940_v46 = vld [vmem:[%s2058_s28 + $0x174] ss:$8 sps:$4 sm:$0xff]   ;;  %v1942_v47 = vld [vmem:[%s2058_s28 + $0x70] ss:$8 sps:$4 sm:$0xff]   ;;  %v1944_v49 = vld [vmem:[%s2058_s28 + $0x84] ss:$8 sps:$4 sm:$0xff]  }
  0x1b   : > { %v1943_v48 = vld [vmem:[%s2058_s28 + $0x170] ss:$8 sps:$4 sm:$0xff]   ;;  %v1946_v50 = vld [vmem:[%s2058_s28 + $0x184] ss:$8 sps:$4 sm:$0xff]   ;;  %v1948_v51 = vld [vmem:[%s2058_s28 + $0x80] ss:$8 sps:$4 sm:$0xff]  }
  0x1c   : > { %v1949_v52 = vld [vmem:[%s2058_s28 + $0x180] ss:$8 sps:$4 sm:$0xff]   ;;  %v1950_v53 = vld [vmem:[%s2058_s28 + $0x94] ss:$8 sps:$4 sm:$0xff]   ;;  %v1954_v55 = vld [vmem:[%s2058_s28 + $0x90] ss:$8 sps:$4 sm:$0xff]  }
  0x1d   : > { %706 = vmatpush1.bf16.msra.mxu0 %v1884_v5  ;;  %1859 = vmatpush1.bf16.msra.mxu1 %v1884_v5  ;;  %v1952_v54 = vld [vmem:[%s2058_s28 + $0x194] ss:$8 sps:$4 sm:$0xff]   ;;  %v1955_v56 = vld [vmem:[%s2058_s28 + $0x190] ss:$8 sps:$4 sm:$0xff]   ;;  %v1956_v57 = vld [vmem:[%s2058_s28 + $0xa4] ss:$8 sps:$4 sm:$0xff]  }
  0x1e   : > { %707 = vmatprep.subr.bf16.mxu0 %v2000_v1  ;;  %1844 = vmatprep.subr.bf16.mxu1 %v2000_v1  ;;  %v1958_v58 = vld [vmem:[%s2058_s28 + $0x1a4] ss:$8 sps:$4 sm:$0xff]   ;;  %v1960_v59 = vld [vmem:[%s2058_s28 + $0xa0] ss:$8 sps:$4 sm:$0xff]   ;;  %v1962_v61 = vld [vmem:[%s2058_s28 + $0xb4] ss:$8 sps:$4 sm:$0xff]  }
  0x1f   : > { %v1961_v60 = vld [vmem:[%s2058_s28 + $0x1a0] ss:$8 sps:$4 sm:$0xff]   ;;  %v1964_v62 = vld [vmem:[%s2058_s28 + $0x1b4] ss:$8 sps:$4 sm:$0xff]   ;;  %v1966_v63 = vld [vmem:[%s2058_s28 + $0xb0] ss:$8 sps:$4 sm:$0xff]  }
  0x20   : > { %v1967_v0 = vld [vmem:[%s2058_s28 + $0x1b0] ss:$8 sps:$4 sm:$0xff]   ;;  %v1970_v2 = vld [vmem:[%s2058_s28 + $0x1c4] ss:$8 sps:$4 sm:$0xff]   ;;  %v1972_v3 = vld [vmem:[%s2058_s28 + $0xc0] ss:$8 sps:$4 sm:$0xff]  }
  0x21   : > { %708 = vmatpush1.bf16.msra.mxu0 %v1885_v7  ;;  %1860 = vmatpush1.bf16.msra.mxu1 %v1885_v7  ;;  %v1973_v4 = vld [vmem:[%s2058_s28 + $0x1c0] ss:$8 sps:$4 sm:$0xff]   ;;  %v1974_v5 = vld [vmem:[%s2058_s28 + $0xd4] ss:$8 sps:$4 sm:$0xff]   ;;  %v1978_v7 = vld [vmem:[%s2058_s28 + $0xd0] ss:$8 sps:$4 sm:$0xff]  }
  0x22   : > { %709 = vmatprep.subr.bf16.mxu0 %v2000_v1  ;;  %1845 = vmatprep.subr.bf16.mxu1 %v2000_v1  ;;  %v1976_v6 = vld [vmem:[%s2058_s28 + $0x1d4] ss:$8 sps:$4 sm:$0xff]   ;;  %v1979_v8 = vld [vmem:[%s2058_s28 + $0x1d0] ss:$8 sps:$4 sm:$0xff]  }
  0x25   : > { %710 = vmatpush1.bf16.msra.mxu0 %v1886_v9  ;;  %1861 = vmatpush1.bf16.msra.mxu1 %v1886_v9  ;;  %v1980_v9 = vld [vmem:[%s2058_s28 + $0xe4] ss:$8 sps:$4 sm:$0xff]  }
  0x26   : > { %711 = vmatprep.subr.bf16.mxu0 %v2000_v1  ;;  %1846 = vmatprep.subr.bf16.mxu1 %v2000_v1 }
  0x29   : > { %712 = vmatpush1.bf16.msra.mxu0 %v1887_v10  ;;  %1862 = vmatpush1.bf16.msra.mxu1 %v1887_v10  ;;  %v1982_v10 = vld [vmem:[%s2058_s28 + $0x1e4] ss:$8 sps:$4 sm:$0xff]  }
  0x2a   : > { %713 = vmatprep.subr.bf16.mxu0 %v2000_v1  ;;  %1847 = vmatprep.subr.bf16.mxu1 %v2000_v1 }
  0x2d   : > { %714 = vmatpush2.bf16.msra.mxu0 %v1888_v11  ;;  %1863 = vmatpush2.bf16.msra.mxu1 %v1888_v11  ;;  %v1984_v11 = vld [vmem:[%s2058_s28 + $0xe0] ss:$8 sps:$4 sm:$0xff]  }
  0x2e   : > { %715 = vmatprep.subr.bf16.mxu0 %v2000_v1  ;;  %1848 = vmatprep.subr.bf16.mxu1 %v2000_v1 }
  0x31   : > { %716 = vmatpush2.bf16.msra.mxu0 %v1889_v12  ;;  %1864 = vmatpush2.bf16.msra.mxu1 %v1889_v12  ;;  %v1985_v12 = vld [vmem:[%s2058_s28 + $0x1e0] ss:$8 sps:$4 sm:$0xff]  }
  0x32   : > { %717 = vmatprep.subr.bf16.mxu0 %v2000_v1  ;;  %1849 = vmatprep.subr.bf16.mxu1 %v2000_v1 }
  0x35   : > { %718 = vmatpush2.bf16.msra.mxu0 %v1890_v13  ;;  %1865 = vmatpush2.bf16.msra.mxu1 %v1890_v13  ;;  %v1986_v13 = vld [vmem:[%s2058_s28 + $0xf4] ss:$8 sps:$4 sm:$0xff]  }
  0x36   : > { %719 = vmatprep.subr.bf16.mxu0 %v2000_v1  ;;  %1850 = vmatprep.subr.bf16.mxu1 %v2000_v1 }
  0x39   : > { %720 = vmatpush2.bf16.msra.mxu0 %v1891_v14  ;;  %1866 = vmatpush2.bf16.msra.mxu1 %v1891_v14  ;;  %v1988_v14 = vld [vmem:[%s2058_s28 + $0x1f4] ss:$8 sps:$4 sm:$0xff]  }
  0x3a   : > { %721 = vmatprep.subr.bf16.mxu0 %v2000_v1  ;;  %1851 = vmatprep.subr.bf16.mxu1 %v2000_v1 }
  0x3d   : > { %722 = vmatpush2.bf16.msra.mxu0 %v1892_v15  ;;  %1867 = vmatpush2.bf16.msra.mxu1 %v1892_v15  ;;  %v1990_v15 = vld [vmem:[%s2058_s28 + $0xf0] ss:$8 sps:$4 sm:$0xff]  }
  0x3e   : > { %723 = vmatprep.subr.bf16.mxu0 %v2000_v1  ;;  %1852 = vmatprep.subr.bf16.mxu1 %v2000_v1 }
  0x41   : > { %724 = vmatpush2.bf16.msra.mxu0 %v1893_v16  ;;  %1868 = vmatpush2.bf16.msra.mxu1 %v1893_v16  ;;  %v1991_v16 = vld [vmem:[%s2058_s28 + $0x1f0] ss:$8 sps:$4 sm:$0xff]  }
  0x42   : > { %725 = vmatprep.subr.bf16.mxu0 %v2000_v1  ;;  %1853 = vmatprep.subr.bf16.mxu1 %v2000_v1 }
  0x45   : > { %726 = vmatpush2.bf16.msra.mxu0 %v1894_v17  ;;  %1869 = vmatpush2.bf16.msra.mxu1 %v1894_v17  ;;  %v2184_v17 = vld [vmem:[%s2293_s2] ss:$0 sm:$0xff] }
  0x46   : > { %727 = vmatprep.subr.bf16.mxu0 %v2000_v1  ;;  %1854 = vmatprep.subr.bf16.mxu1 %v2000_v1  ;;  %v1968_v1 = vld [vmem:[%s2058_s28 + $0xc4] ss:$8 sps:$4 sm:$0xff]  }
  0x49   : > { %728 = vmatpush2.bf16.msra.mxu0 %v1895_v18  ;;  %1870 = vmatpush2.bf16.msra.mxu1 %v1895_v18 }
  0x4c   : > { %730 = vmatmul.mubr.bf16.vlgmr.msra.gmra.mxu0 %v1896_v19  ;;  %858 = vmatmul.mubr.bf16.vlgmr.msra.gmra.mxu1 %v1899_v20 }
  0x4d   : > { %737 = vmatprep.mubr.bf16.mxu0 %v1902_v21  ;;  %865 = vmatprep.mubr.bf16.mxu1 %v1904_v22 }
  0x54   : > { %738 = vmatmul.mubr.bf16.gmra.mxu0 %v1906_v23  ;;  %866 = vmatmul.mubr.bf16.gmra.mxu1 %v1907_v24 }
  0x55   : > { %745 = vmatprep.mubr.bf16.mxu0 %v1908_v25  ;;  %873 = vmatprep.mubr.bf16.mxu1 %v1910_v26 }
  0x5c   : > { %746 = vmatmul.mubr.bf16.gmra.mxu0 %v1912_v27  ;;  %874 = vmatmul.mubr.bf16.gmra.mxu1 %v1913_v28 }
  0x5d   : > { %753 = vmatprep.mubr.bf16.mxu0 %v1914_v29  ;;  %881 = vmatprep.mubr.bf16.mxu1 %v1916_v30 }
  0x64   : > { %754 = vmatmul.mubr.bf16.gmra.mxu0 %v1918_v31  ;;  %882 = vmatmul.mubr.bf16.gmra.mxu1 %v1919_v32 }
  0x65   : > { %761 = vmatprep.mubr.bf16.mxu0 %v1920_v33  ;;  %889 = vmatprep.mubr.bf16.mxu1 %v1922_v34 }
  0x6c   : > { %762 = vmatmul.mubr.bf16.gmra.mxu0 %v1924_v35  ;;  %890 = vmatmul.mubr.bf16.gmra.mxu1 %v1925_v36 }
  0x6d   : > { %769 = vmatprep.mubr.bf16.mxu0 %v1926_v37  ;;  %897 = vmatprep.mubr.bf16.mxu1 %v1928_v38 }
  0x74   : > { %770 = vmatmul.mubr.bf16.gmra.mxu0 %v1930_v39  ;;  %898 = vmatmul.mubr.bf16.gmra.mxu1 %v1931_v40 }
  0x75   : > { %777 = vmatprep.mubr.bf16.mxu0 %v1932_v41  ;;  %905 = vmatprep.mubr.bf16.mxu1 %v1934_v42 }
  0x7c   : > { %778 = vmatmul.mubr.bf16.gmra.mxu0 %v1936_v43  ;;  %906 = vmatmul.mubr.bf16.gmra.mxu1 %v1937_v44 }
  0x7d   : > { %785 = vmatprep.mubr.bf16.mxu0 %v1938_v45  ;;  %913 = vmatprep.mubr.bf16.mxu1 %v1940_v46 }
  0x84   : > { %786 = vmatmul.mubr.bf16.gmra.mxu0 %v1942_v47  ;;  %914 = vmatmul.mubr.bf16.gmra.mxu1 %v1943_v48 }
  0x85   : > { %793 = vmatprep.mubr.bf16.mxu0 %v1944_v49  ;;  %921 = vmatprep.mubr.bf16.mxu1 %v1946_v50 }
  0x8c   : > { %794 = vmatmul.mubr.bf16.gmra.mxu0 %v1948_v51  ;;  %922 = vmatmul.mubr.bf16.gmra.mxu1 %v1949_v52 }
  0x8d   : > { %801 = vmatprep.mubr.bf16.mxu0 %v1950_v53  ;;  %929 = vmatprep.mubr.bf16.mxu1 %v1952_v54 }
  0x94   : > { %802 = vmatmul.mubr.bf16.gmra.mxu0 %v1954_v55  ;;  %930 = vmatmul.mubr.bf16.gmra.mxu1 %v1955_v56 }
  0x95   : > { %809 = vmatprep.mubr.bf16.mxu0 %v1956_v57  ;;  %937 = vmatprep.mubr.bf16.mxu1 %v1958_v58 }
  0x9c   : > { %810 = vmatmul.mubr.bf16.gmra.mxu0 %v1960_v59  ;;  %938 = vmatmul.mubr.bf16.gmra.mxu1 %v1961_v60 }
  0x9d   : > { %817 = vmatprep.mubr.bf16.mxu0 %v1962_v61  ;;  %945 = vmatprep.mubr.bf16.mxu1 %v1964_v62 }
  0xa4   : > { %818 = vmatmul.mubr.bf16.gmra.mxu0 %v1966_v63  ;;  %946 = vmatmul.mubr.bf16.gmra.mxu1 %v1967_v0 }
  0xa5   : > { %825 = vmatprep.mubr.bf16.mxu0 %v1968_v1  ;;  %953 = vmatprep.mubr.bf16.mxu1 %v1970_v2 }
  0xac   : > { %826 = vmatmul.mubr.bf16.gmra.mxu0 %v1972_v3  ;;  %954 = vmatmul.mubr.bf16.gmra.mxu1 %v1973_v4 }
  0xad   : > { %833 = vmatprep.mubr.bf16.mxu0 %v1974_v5  ;;  %961 = vmatprep.mubr.bf16.mxu1 %v1976_v6 }
  0xb4   : > { %834 = vmatmul.mubr.bf16.gmra.mxu0 %v1978_v7  ;;  %962 = vmatmul.mubr.bf16.gmra.mxu1 %v1979_v8 }
  0xb5   : > { %841 = vmatprep.mubr.bf16.mxu0 %v1980_v9  ;;  %969 = vmatprep.mubr.bf16.mxu1 %v1982_v10 }
  0xbc   : > { %842 = vmatmul.mubr.bf16.gmra.mxu0 %v1984_v11  ;;  %970 = vmatmul.mubr.bf16.gmra.mxu1 %v1985_v12 }
  0xbd   : > { %849 = vmatprep.mubr.bf16.mxu0 %v1986_v13  ;;  %977 = vmatprep.mubr.bf16.mxu1 %v1988_v14 }
  0xc4   : > { %850 = vmatmul.mubr.bf16.gmra.mxu0 %v1990_v15  ;;  %978 = vmatmul.mubr.bf16.gmra.mxu1 %v1991_v16 }
 0x10c   : > { %v731_v18 = vpop.f32.mrf.mxu0  ;;  %v859_v19 = vpop.f32.mrf.mxu1 }
 0x10d   : > { %v732_v22 = vadd.f32 %v2184_v17, %v731_v18  ;;  %v860_v23 = vadd.f32 %v2184_v17, %v859_v19 }
 0x10e   : > { %v733_v20 = vpop.f32.mrf.mxu0  ;;  %v861_v21 = vpop.f32.mrf.mxu1 }
 0x10f   : > { %v986_v30 = vmax.f32 %v732_v22, 0.0  ;;  %v1018_v31 = vmax.f32 %v860_v23, 0.0 }
 0x110   : > { %v734_v24 = vpop.f32.mrf.mxu0  ;;  %v862_v25 = vpop.f32.mrf.mxu1 }
 0x111   : > { %v735_v26 = vadd.f32 %v2184_v17, %v734_v24  ;;  %v863_v27 = vadd.f32 %v2184_v17, %v862_v25 }
 0x112   : > { %v736_v28 = vpop.f32.mrf.mxu0  ;;  %v864_v29 = vpop.f32.mrf.mxu1 }
 0x113   : > { %v987_v32 = vmax.f32 %v735_v26, 0.0  ;;  %v1019_v33 = vmax.f32 %v863_v27, 0.0 }
 0x114   : > { %v739_v34 = vpop.f32.mrf.mxu0  ;;  %v867_v35 = vpop.f32.mrf.mxu1 }
 0x115   : > { %v1651_v36 = vpack.c.bf16 %v987_v32, %v986_v30  ;;  %v1731_v37 = vpack.c.bf16 %v1019_v33, %v1018_v31  ;;  %v740_v40 = vadd.f32 %v2184_v17, %v739_v34  ;;  %v868_v41 = vadd.f32 %v2184_v17, %v867_v35 }
 0x116   : > { %v741_v38 = vpop.f32.mrf.mxu0  ;;  %v869_v39 = vpop.f32.mrf.mxu1 }
 0x117   : > { %1652 = vst [vmem:[%s2194_s4] sm:$0xff] %v1651_v36   ;;  %1823 = vst [vmem:[%s2194_s4 + $0x80] sm:$0xff] %v1731_v37   ;;  %v988_v48 = vmax.f32 %v740_v40, 0.0  ;;  %v1020_v49 = vmax.f32 %v868_v41, 0.0 }
 0x118   : > { %v742_v42 = vpop.f32.mrf.mxu0  ;;  %v870_v43 = vpop.f32.mrf.mxu1 }
 0x119   : > { %v743_v44 = vadd.f32 %v2184_v17, %v742_v42  ;;  %v871_v45 = vadd.f32 %v2184_v17, %v870_v43 }
 0x11a   : > { %v744_v46 = vpop.f32.mrf.mxu0  ;;  %v872_v47 = vpop.f32.mrf.mxu1 }
 0x11b   : > { %v989_v50 = vmax.f32 %v743_v44, 0.0  ;;  %v1021_v51 = vmax.f32 %v871_v45, 0.0 }
 0x11c   : > { %v747_v52 = vpop.f32.mrf.mxu0  ;;  %v875_v53 = vpop.f32.mrf.mxu1 }
 0x11d   : > { %v1656_v54 = vpack.c.bf16 %v989_v50, %v988_v48  ;;  %v1736_v55 = vpack.c.bf16 %v1021_v51, %v1020_v49  ;;  %v748_v58 = vadd.f32 %v2184_v17, %v747_v52  ;;  %v876_v59 = vadd.f32 %v2184_v17, %v875_v53 }
 0x11e   : > { %v749_v56 = vpop.f32.mrf.mxu0  ;;  %v877_v57 = vpop.f32.mrf.mxu1 }
 0x11f   : > { %1808 = vst [vmem:[%s2194_s4 + $0x8] sm:$0xff] %v1656_v54   ;;  %1824 = vst [vmem:[%s2194_s4 + $0x88] sm:$0xff] %v1736_v55   ;;  %v990_v2 = vmax.f32 %v748_v58, 0.0  ;;  %v1022_v3 = vmax.f32 %v876_v59, 0.0 }
 0x120   : > { %v750_v60 = vpop.f32.mrf.mxu0  ;;  %v878_v61 = vpop.f32.mrf.mxu1 }
 0x121   : > { %v751_v62 = vadd.f32 %v2184_v17, %v750_v60  ;;  %v879_v63 = vadd.f32 %v2184_v17, %v878_v61 }
 0x122   : > { %v752_v0 = vpop.f32.mrf.mxu0  ;;  %v880_v1 = vpop.f32.mrf.mxu1 }
 0x123   : > { %v991_v4 = vmax.f32 %v751_v62, 0.0  ;;  %v1023_v5 = vmax.f32 %v879_v63, 0.0 }
 0x124   : > { %v755_v6 = vpop.f32.mrf.mxu0  ;;  %v883_v7 = vpop.f32.mrf.mxu1 }
 0x125   : > { %v1661_v8 = vpack.c.bf16 %v991_v4, %v990_v2  ;;  %v1741_v9 = vpack.c.bf16 %v1023_v5, %v1022_v3  ;;  %v756_v12 = vadd.f32 %v2184_v17, %v755_v6  ;;  %v884_v13 = vadd.f32 %v2184_v17, %v883_v7 }
 0x126   : > { %v757_v10 = vpop.f32.mrf.mxu0  ;;  %v885_v11 = vpop.f32.mrf.mxu1 }
 0x127   : > { %1809 = vst [vmem:[%s2194_s4 + $0x10] sm:$0xff] %v1661_v8   ;;  %1825 = vst [vmem:[%s2194_s4 + $0x90] sm:$0xff] %v1741_v9   ;;  %v992_v21 = vmax.f32 %v756_v12, 0.0  ;;  %v1024_v22 = vmax.f32 %v884_v13, 0.0 }
 0x128   : > { %v758_v14 = vpop.f32.mrf.mxu0  ;;  %v886_v15 = vpop.f32.mrf.mxu1 }
 0x129   : > { %v759_v16 = vadd.f32 %v2184_v17, %v758_v14  ;;  %v887_v18 = vadd.f32 %v2184_v17, %v886_v15 }
 0x12a   : > { %v760_v19 = vpop.f32.mrf.mxu0  ;;  %v888_v20 = vpop.f32.mrf.mxu1 }
 0x12b   : > { %v993_v23 = vmax.f32 %v759_v16, 0.0  ;;  %v1025_v24 = vmax.f32 %v887_v18, 0.0 }
 0x12c   : > { %v763_v25 = vpop.f32.mrf.mxu0  ;;  %v891_v26 = vpop.f32.mrf.mxu1 }
 0x12d   : > { %v1666_v27 = vpack.c.bf16 %v993_v23, %v992_v21  ;;  %v1746_v28 = vpack.c.bf16 %v1025_v24, %v1024_v22  ;;  %v764_v31 = vadd.f32 %v2184_v17, %v763_v25  ;;  %v892_v32 = vadd.f32 %v2184_v17, %v891_v26 }
 0x12e   : > { %v765_v29 = vpop.f32.mrf.mxu0  ;;  %v893_v30 = vpop.f32.mrf.mxu1 }
 0x12f   : > { %1810 = vst [vmem:[%s2194_s4 + $0x18] sm:$0xff] %v1666_v27   ;;  %1826 = vst [vmem:[%s2194_s4 + $0x98] sm:$0xff] %v1746_v28   ;;  %v994_v39 = vmax.f32 %v764_v31, 0.0  ;;  %v1026_v40 = vmax.f32 %v892_v32, 0.0 }
 0x130   : > { %v766_v33 = vpop.f32.mrf.mxu0  ;;  %v894_v34 = vpop.f32.mrf.mxu1 }
 0x131   : > { %v767_v35 = vadd.f32 %v2184_v17, %v766_v33  ;;  %v895_v36 = vadd.f32 %v2184_v17, %v894_v34 }
 0x132   : > { %v768_v37 = vpop.f32.mrf.mxu0  ;;  %v896_v38 = vpop.f32.mrf.mxu1 }
 0x133   : > { %v995_v41 = vmax.f32 %v767_v35, 0.0  ;;  %v1027_v42 = vmax.f32 %v895_v36, 0.0 }
 0x134   : > { %v771_v43 = vpop.f32.mrf.mxu0  ;;  %v899_v44 = vpop.f32.mrf.mxu1 }
 0x135   : > { %v1671_v45 = vpack.c.bf16 %v995_v41, %v994_v39  ;;  %v1751_v46 = vpack.c.bf16 %v1027_v42, %v1026_v40  ;;  %v772_v49 = vadd.f32 %v2184_v17, %v771_v43  ;;  %v900_v50 = vadd.f32 %v2184_v17, %v899_v44 }
 0x136   : > { %v773_v47 = vpop.f32.mrf.mxu0  ;;  %v901_v48 = vpop.f32.mrf.mxu1 }
 0x137   : > { %1811 = vst [vmem:[%s2194_s4 + $0x20] sm:$0xff] %v1671_v45   ;;  %1827 = vst [vmem:[%s2194_s4 + $0xa0] sm:$0xff] %v1751_v46   ;;  %v996_v57 = vmax.f32 %v772_v49, 0.0  ;;  %v1028_v58 = vmax.f32 %v900_v50, 0.0 }
 0x138   : > { %v774_v51 = vpop.f32.mrf.mxu0  ;;  %v902_v52 = vpop.f32.mrf.mxu1 }
 0x139   : > { %v775_v53 = vadd.f32 %v2184_v17, %v774_v51  ;;  %v903_v54 = vadd.f32 %v2184_v17, %v902_v52 }
 0x13a   : > { %v776_v55 = vpop.f32.mrf.mxu0  ;;  %v904_v56 = vpop.f32.mrf.mxu1 }
 0x13b   : > { %v997_v59 = vmax.f32 %v775_v53, 0.0  ;;  %v1029_v60 = vmax.f32 %v903_v54, 0.0 }
 0x13c   : > { %v779_v61 = vpop.f32.mrf.mxu0  ;;  %v907_v62 = vpop.f32.mrf.mxu1 }
 0x13d   : > { %v1676_v63 = vpack.c.bf16 %v997_v59, %v996_v57  ;;  %v1756_v0 = vpack.c.bf16 %v1029_v60, %v1028_v58  ;;  %v780_v3 = vadd.f32 %v2184_v17, %v779_v61  ;;  %v908_v4 = vadd.f32 %v2184_v17, %v907_v62 }
 0x13e   : > { %v781_v1 = vpop.f32.mrf.mxu0  ;;  %v909_v2 = vpop.f32.mrf.mxu1 }
 0x13f   : > { %1812 = vst [vmem:[%s2194_s4 + $0x28] sm:$0xff] %v1676_v63   ;;  %1828 = vst [vmem:[%s2194_s4 + $0xa8] sm:$0xff] %v1756_v0   ;;  %v998_v11 = vmax.f32 %v780_v3, 0.0  ;;  %v1030_v12 = vmax.f32 %v908_v4, 0.0 }
 0x140   : > { %v782_v5 = vpop.f32.mrf.mxu0  ;;  %v910_v6 = vpop.f32.mrf.mxu1 }
 0x141   : > { %v783_v7 = vadd.f32 %v2184_v17, %v782_v5  ;;  %v911_v8 = vadd.f32 %v2184_v17, %v910_v6 }
 0x142   : > { %v784_v9 = vpop.f32.mrf.mxu0  ;;  %v912_v10 = vpop.f32.mrf.mxu1 }
 0x143   : > { %v999_v13 = vmax.f32 %v783_v7, 0.0  ;;  %v1031_v14 = vmax.f32 %v911_v8, 0.0 }
 0x144   : > { %v787_v15 = vpop.f32.mrf.mxu0  ;;  %v915_v16 = vpop.f32.mrf.mxu1 }
 0x145   : > { %v1681_v18 = vpack.c.bf16 %v999_v13, %v998_v11  ;;  %v1761_v19 = vpack.c.bf16 %v1031_v14, %v1030_v12  ;;  %v788_v22 = vadd.f32 %v2184_v17, %v787_v15  ;;  %v916_v23 = vadd.f32 %v2184_v17, %v915_v16 }
 0x146   : > { %v789_v20 = vpop.f32.mrf.mxu0  ;;  %v917_v21 = vpop.f32.mrf.mxu1 }
 0x147   : > { %1813 = vst [vmem:[%s2194_s4 + $0x30] sm:$0xff] %v1681_v18   ;;  %1829 = vst [vmem:[%s2194_s4 + $0xb0] sm:$0xff] %v1761_v19   ;;  %v1000_v30 = vmax.f32 %v788_v22, 0.0  ;;  %v1032_v31 = vmax.f32 %v916_v23, 0.0 }
 0x148   : > { %v790_v24 = vpop.f32.mrf.mxu0  ;;  %v918_v25 = vpop.f32.mrf.mxu1 }
 0x149   : > { %v791_v26 = vadd.f32 %v2184_v17, %v790_v24  ;;  %v919_v27 = vadd.f32 %v2184_v17, %v918_v25 }
 0x14a   : > { %v792_v28 = vpop.f32.mrf.mxu0  ;;  %v920_v29 = vpop.f32.mrf.mxu1 }
 0x14b   : > { %v1001_v32 = vmax.f32 %v791_v26, 0.0  ;;  %v1033_v33 = vmax.f32 %v919_v27, 0.0 }
 0x14c   : > { %v795_v34 = vpop.f32.mrf.mxu0  ;;  %v923_v35 = vpop.f32.mrf.mxu1 }
 0x14d   : > { %v1686_v36 = vpack.c.bf16 %v1001_v32, %v1000_v30  ;;  %v1766_v37 = vpack.c.bf16 %v1033_v33, %v1032_v31  ;;  %v796_v40 = vadd.f32 %v2184_v17, %v795_v34  ;;  %v924_v41 = vadd.f32 %v2184_v17, %v923_v35 }
 0x14e   : > { %v797_v38 = vpop.f32.mrf.mxu0  ;;  %v925_v39 = vpop.f32.mrf.mxu1 }
 0x14f   : > { %1814 = vst [vmem:[%s2194_s4 + $0x38] sm:$0xff] %v1686_v36   ;;  %1830 = vst [vmem:[%s2194_s4 + $0xb8] sm:$0xff] %v1766_v37   ;;  %v1002_v48 = vmax.f32 %v796_v40, 0.0  ;;  %v1034_v49 = vmax.f32 %v924_v41, 0.0 }
 0x150   : > { %v798_v42 = vpop.f32.mrf.mxu0  ;;  %v926_v43 = vpop.f32.mrf.mxu1 }
 0x151   : > { %v799_v44 = vadd.f32 %v2184_v17, %v798_v42  ;;  %v927_v45 = vadd.f32 %v2184_v17, %v926_v43 }
 0x152   : > { %v800_v46 = vpop.f32.mrf.mxu0  ;;  %v928_v47 = vpop.f32.mrf.mxu1 }
 0x153   : > { %v1003_v50 = vmax.f32 %v799_v44, 0.0  ;;  %v1035_v51 = vmax.f32 %v927_v45, 0.0 }
 0x154   : > { %v803_v52 = vpop.f32.mrf.mxu0  ;;  %v931_v53 = vpop.f32.mrf.mxu1 }
 0x155   : > { %v1691_v54 = vpack.c.bf16 %v1003_v50, %v1002_v48  ;;  %v1771_v55 = vpack.c.bf16 %v1035_v51, %v1034_v49  ;;  %v804_v58 = vadd.f32 %v2184_v17, %v803_v52  ;;  %v932_v59 = vadd.f32 %v2184_v17, %v931_v53 }
 0x156   : > { %v805_v56 = vpop.f32.mrf.mxu0  ;;  %v933_v57 = vpop.f32.mrf.mxu1 }
 0x157   : > { %1815 = vst [vmem:[%s2194_s4 + $0x40] sm:$0xff] %v1691_v54   ;;  %1831 = vst [vmem:[%s2194_s4 + $0xc0] sm:$0xff] %v1771_v55   ;;  %v1004_v2 = vmax.f32 %v804_v58, 0.0  ;;  %v1036_v3 = vmax.f32 %v932_v59, 0.0 }
 0x158   : > { %v806_v60 = vpop.f32.mrf.mxu0  ;;  %v934_v61 = vpop.f32.mrf.mxu1 }
 0x159   : > { %v807_v62 = vadd.f32 %v2184_v17, %v806_v60  ;;  %v935_v63 = vadd.f32 %v2184_v17, %v934_v61 }
 0x15a   : > { %v808_v0 = vpop.f32.mrf.mxu0  ;;  %v936_v1 = vpop.f32.mrf.mxu1 }
 0x15b   : > { %v1005_v4 = vmax.f32 %v807_v62, 0.0  ;;  %v1037_v5 = vmax.f32 %v935_v63, 0.0 }
 0x15c   : > { %v811_v6 = vpop.f32.mrf.mxu0  ;;  %v939_v7 = vpop.f32.mrf.mxu1 }
 0x15d   : > { %v1696_v8 = vpack.c.bf16 %v1005_v4, %v1004_v2  ;;  %v1776_v9 = vpack.c.bf16 %v1037_v5, %v1036_v3  ;;  %v812_v12 = vadd.f32 %v2184_v17, %v811_v6  ;;  %v940_v13 = vadd.f32 %v2184_v17, %v939_v7 }
 0x15e   : > { %v813_v10 = vpop.f32.mrf.mxu0  ;;  %v941_v11 = vpop.f32.mrf.mxu1 }
 0x15f   : > { %1816 = vst [vmem:[%s2194_s4 + $0x48] sm:$0xff] %v1696_v8   ;;  %1832 = vst [vmem:[%s2194_s4 + $0xc8] sm:$0xff] %v1776_v9   ;;  %v1006_v21 = vmax.f32 %v812_v12, 0.0  ;;  %v1038_v22 = vmax.f32 %v940_v13, 0.0 }
 0x160   : > { %v814_v14 = vpop.f32.mrf.mxu0  ;;  %v942_v15 = vpop.f32.mrf.mxu1 }
 0x161   : > { %v815_v16 = vadd.f32 %v2184_v17, %v814_v14  ;;  %v943_v18 = vadd.f32 %v2184_v17, %v942_v15 }
 0x162   : > { %v816_v19 = vpop.f32.mrf.mxu0  ;;  %v944_v20 = vpop.f32.mrf.mxu1 }
 0x163   : > { %v1007_v23 = vmax.f32 %v815_v16, 0.0  ;;  %v1039_v24 = vmax.f32 %v943_v18, 0.0 }
 0x164   : > { %v819_v25 = vpop.f32.mrf.mxu0  ;;  %v947_v26 = vpop.f32.mrf.mxu1 }
 0x165   : > { %v1701_v27 = vpack.c.bf16 %v1007_v23, %v1006_v21  ;;  %v1781_v28 = vpack.c.bf16 %v1039_v24, %v1038_v22  ;;  %v820_v31 = vadd.f32 %v2184_v17, %v819_v25  ;;  %v948_v32 = vadd.f32 %v2184_v17, %v947_v26 }
 0x166   : > { %v821_v29 = vpop.f32.mrf.mxu0  ;;  %v949_v30 = vpop.f32.mrf.mxu1 }
 0x167   : > { %1817 = vst [vmem:[%s2194_s4 + $0x50] sm:$0xff] %v1701_v27   ;;  %1833 = vst [vmem:[%s2194_s4 + $0xd0] sm:$0xff] %v1781_v28   ;;  %v1008_v39 = vmax.f32 %v820_v31, 0.0  ;;  %v1040_v40 = vmax.f32 %v948_v32, 0.0 }
 0x168   : > { %v822_v33 = vpop.f32.mrf.mxu0  ;;  %v950_v34 = vpop.f32.mrf.mxu1 }
 0x169   : > { %v823_v35 = vadd.f32 %v2184_v17, %v822_v33  ;;  %v951_v36 = vadd.f32 %v2184_v17, %v950_v34 }
 0x16a   : > { %v824_v37 = vpop.f32.mrf.mxu0  ;;  %v952_v38 = vpop.f32.mrf.mxu1 }
 0x16b   : > { %v1009_v41 = vmax.f32 %v823_v35, 0.0  ;;  %v1041_v42 = vmax.f32 %v951_v36, 0.0 }
 0x16c   : > { %v827_v43 = vpop.f32.mrf.mxu0  ;;  %v955_v44 = vpop.f32.mrf.mxu1 }
 0x16d   : > { %v1706_v45 = vpack.c.bf16 %v1009_v41, %v1008_v39  ;;  %v1786_v46 = vpack.c.bf16 %v1041_v42, %v1040_v40  ;;  %v828_v49 = vadd.f32 %v2184_v17, %v827_v43  ;;  %v956_v50 = vadd.f32 %v2184_v17, %v955_v44 }
 0x16e   : > { %v829_v47 = vpop.f32.mrf.mxu0  ;;  %v957_v48 = vpop.f32.mrf.mxu1 }
 0x16f   : > { %1818 = vst [vmem:[%s2194_s4 + $0x58] sm:$0xff] %v1706_v45   ;;  %1834 = vst [vmem:[%s2194_s4 + $0xd8] sm:$0xff] %v1786_v46   ;;  %v1010_v57 = vmax.f32 %v828_v49, 0.0  ;;  %v1042_v58 = vmax.f32 %v956_v50, 0.0 }
 0x170   : > { %v830_v51 = vpop.f32.mrf.mxu0  ;;  %v958_v52 = vpop.f32.mrf.mxu1 }
 0x171   : > { %v831_v53 = vadd.f32 %v2184_v17, %v830_v51  ;;  %v959_v54 = vadd.f32 %v2184_v17, %v958_v52 }
 0x172   : > { %v832_v55 = vpop.f32.mrf.mxu0  ;;  %v960_v56 = vpop.f32.mrf.mxu1 }
 0x173   : > { %v1011_v59 = vmax.f32 %v831_v53, 0.0  ;;  %v1043_v60 = vmax.f32 %v959_v54, 0.0 }
 0x174   : > { %v835_v61 = vpop.f32.mrf.mxu0  ;;  %v963_v62 = vpop.f32.mrf.mxu1 }
 0x175   : > { %v1711_v63 = vpack.c.bf16 %v1011_v59, %v1010_v57  ;;  %v1791_v0 = vpack.c.bf16 %v1043_v60, %v1042_v58  ;;  %v836_v3 = vadd.f32 %v2184_v17, %v835_v61  ;;  %v964_v4 = vadd.f32 %v2184_v17, %v963_v62 }
 0x176   : > { %v837_v1 = vpop.f32.mrf.mxu0  ;;  %v965_v2 = vpop.f32.mrf.mxu1 }
 0x177   : > { %1819 = vst [vmem:[%s2194_s4 + $0x60] sm:$0xff] %v1711_v63   ;;  %1835 = vst [vmem:[%s2194_s4 + $0xe0] sm:$0xff] %v1791_v0   ;;  %v1012_v11 = vmax.f32 %v836_v3, 0.0  ;;  %v1044_v12 = vmax.f32 %v964_v4, 0.0 }
 0x178   : > { %v838_v5 = vpop.f32.mrf.mxu0  ;;  %v966_v6 = vpop.f32.mrf.mxu1 }
 0x179   : > { %v839_v7 = vadd.f32 %v2184_v17, %v838_v5  ;;  %v967_v8 = vadd.f32 %v2184_v17, %v966_v6 }
 0x17a   : > { %v840_v9 = vpop.f32.mrf.mxu0  ;;  %v968_v10 = vpop.f32.mrf.mxu1 }
 0x17b   : > { %v1013_v13 = vmax.f32 %v839_v7, 0.0  ;;  %v1045_v14 = vmax.f32 %v967_v8, 0.0 }
 0x17c   : > { %v843_v15 = vpop.f32.mrf.mxu0  ;;  %v971_v16 = vpop.f32.mrf.mxu1 }
 0x17d   : > { %v1716_v18 = vpack.c.bf16 %v1013_v13, %v1012_v11  ;;  %v1796_v19 = vpack.c.bf16 %v1045_v14, %v1044_v12  ;;  %v844_v22 = vadd.f32 %v2184_v17, %v843_v15  ;;  %v972_v23 = vadd.f32 %v2184_v17, %v971_v16 }
 0x17e   : > { %v845_v20 = vpop.f32.mrf.mxu0  ;;  %v973_v21 = vpop.f32.mrf.mxu1 }
 0x17f   : > { %1820 = vst [vmem:[%s2194_s4 + $0x68] sm:$0xff] %v1716_v18   ;;  %1836 = vst [vmem:[%s2194_s4 + $0xe8] sm:$0xff] %v1796_v19   ;;  %v1014_v30 = vmax.f32 %v844_v22, 0.0  ;;  %v1046_v31 = vmax.f32 %v972_v23, 0.0 }
 0x180   : > { %v846_v24 = vpop.f32.mrf.mxu0  ;;  %v974_v25 = vpop.f32.mrf.mxu1 }
 0x181   : > { %v847_v26 = vadd.f32 %v2184_v17, %v846_v24  ;;  %v975_v27 = vadd.f32 %v2184_v17, %v974_v25 }
 0x182   : > { %v848_v28 = vpop.f32.mrf.mxu0  ;;  %v976_v29 = vpop.f32.mrf.mxu1 }
 0x183   : > { %v1015_v32 = vmax.f32 %v847_v26, 0.0  ;;  %v1047_v33 = vmax.f32 %v975_v27, 0.0 }
 0x184   : > { %v851_v34 = vpop.f32.mrf.mxu0  ;;  %v979_v35 = vpop.f32.mrf.mxu1 }
 0x185   : > { %v1721_v36 = vpack.c.bf16 %v1015_v32, %v1014_v30  ;;  %v1801_v37 = vpack.c.bf16 %v1047_v33, %v1046_v31  ;;  %v852_v40 = vadd.f32 %v2184_v17, %v851_v34  ;;  %v980_v41 = vadd.f32 %v2184_v17, %v979_v35 }
 0x186   : > { %v853_v38 = vpop.f32.mrf.mxu0  ;;  %v981_v39 = vpop.f32.mrf.mxu1 }
 0x187   : > { %1821 = vst [vmem:[%s2194_s4 + $0x70] sm:$0xff] %v1721_v36   ;;  %1837 = vst [vmem:[%s2194_s4 + $0xf0] sm:$0xff] %v1801_v37   ;;  %v1016_v48 = vmax.f32 %v852_v40, 0.0  ;;  %v1048_v49 = vmax.f32 %v980_v41, 0.0 }
 0x188   : > { %v854_v42 = vpop.f32.mrf.mxu0  ;;  %v982_v43 = vpop.f32.mrf.mxu1 }
 0x189   : > { %v855_v44 = vadd.f32 %v2184_v17, %v854_v42  ;;  %v983_v45 = vadd.f32 %v2184_v17, %v982_v43 }
 0x18a   : > { %v856_v46 = vpop.f32.mrf.mxu0  ;;  %v984_v47 = vpop.f32.mrf.mxu1 }
 0x18b   : > { %v1017_v50 = vmax.f32 %v855_v44, 0.0  ;;  %v1049_v51 = vmax.f32 %v983_v45, 0.0 }
 0x18d   : > { %v1726_v52 = vpack.c.bf16 %v1017_v50, %v1016_v48  ;;  %v1806_v53 = vpack.c.bf16 %v1049_v51, %v1048_v49 }
 0x18f   : > { %1822 = vst [vmem:[%s2194_s4 + $0x78] sm:$0xff] %v1726_v52   ;;  %1838 = vst [vmem:[%s2194_s4 + $0xf8] sm:$0xff] %v1806_v53  }
 0x190 PF: > { %s13_s12 = sadd.s32 1, %s1998_s12  }
 0x191   : > { %p10_p4 = scmp.ge.s32.totalorder %s13_s12, 4  }
 0x193   :  { %12 = sbr.rel (!%p10_p4) target bundleno = 1 (0x1), region = 62 }

// kernel: dqn_forward.5
= control target key start
LH: loop header
LB: loop body
LE: loop exit
PB: predicated region body
PF: predicated region fallthrough
CT: control target
= control target key end

     0   :  { %s1644_s1 = inlined_call_operand.vmem [shape: bf16[512,128], index: 1, kind: input, shape index: {}]   ;;  %s1645_s0 = inlined_call_operand.vmem [shape: bf16[168,512], index: 0, kind: input, shape index: {}]   ;;  %s1646_s2 = inlined_call_operand.vmem [shape: f32[1,128], index: 2, kind: input, shape index: {}]   ;;  %s1647_s3 = inlined_call_operand.vmem [shape: bf16[168,128], index: 3, kind: output, shape index: {}]  }
   0x1   :  { %v1247_v0 = vld [vmem:[%s1644_s1 + $0x78] sm:$0xff]   ;;  %v1251_v4 = vld [vmem:[%s1644_s1 + $0x70] sm:$0xff]   ;;  %v1255_v8 = vld [vmem:[%s1644_s1 + $0x68] sm:$0xff]  }
   0x2   :  { %v1248_v1 = vld [vmem:[%s1644_s1 + $0xf8] sm:$0xff]   ;;  %1083 = vmatprep.subr.bf16.mxu0 %v1247_v0  ;;  %v1252_v5 = vld [vmem:[%s1644_s1 + $0xf0] sm:$0xff]   ;;  %v1256_v9 = vld [vmem:[%s1644_s1 + $0xe8] sm:$0xff]  }
   0x3   :  { %v1249_v2 = vld [vmem:[%s1644_s1 + $0x38] sm:$0xff]   ;;  %1165 = vmatprep.subr.bf16.mxu1 %v1248_v1  ;;  %v1253_v6 = vld [vmem:[%s1644_s1 + $0x30] sm:$0xff]   ;;  %v1257_v10 = vld [vmem:[%s1644_s1 + $0x28] sm:$0xff]  }
   0x4   :  { %v1250_v3 = vld [vmem:[%s1644_s1 + $0xb8] sm:$0xff]   ;;  %1084 = vmatpush3.bf16.msra.mxu0 %v1249_v2  ;;  %v1254_v7 = vld [vmem:[%s1644_s1 + $0xb0] sm:$0xff]   ;;  %v1258_v11 = vld [vmem:[%s1644_s1 + $0xa8] sm:$0xff]  }
   0x5   :  { %1166 = vmatpush3.bf16.msra.mxu1 %v1250_v3  ;;  %1085 = vmatprep.subr.bf16.mxu0 %v1251_v4  ;;  %v1259_v12 = vld [vmem:[%s1644_s1 + $0x60] sm:$0xff]   ;;  %v1263_v16 = vld [vmem:[%s1644_s1 + $0x58] sm:$0xff]   ;;  %v1267_v20 = vld [vmem:[%s1644_s1 + $0x50] sm:$0xff]  }
   0x6   :  { %1167 = vmatprep.subr.bf16.mxu1 %v1252_v5  ;;  %v1260_v13 = vld [vmem:[%s1644_s1 + $0xe0] sm:$0xff]   ;;  %v1264_v17 = vld [vmem:[%s1644_s1 + $0xd8] sm:$0xff]   ;;  %v1268_v21 = vld [vmem:[%s1644_s1 + $0xd0] sm:$0xff]  }
   0x7   :  { %v1261_v14 = vld [vmem:[%s1644_s1 + $0x20] sm:$0xff]   ;;  %v1265_v18 = vld [vmem:[%s1644_s1 + $0x18] sm:$0xff]   ;;  %v1269_v22 = vld [vmem:[%s1644_s1 + $0x10] sm:$0xff]  }
   0x8   :  { %1086 = vmatpush3.bf16.msra.mxu0 %v1253_v6  ;;  %v1262_v15 = vld [vmem:[%s1644_s1 + $0xa0] sm:$0xff]   ;;  %v1266_v19 = vld [vmem:[%s1644_s1 + $0x98] sm:$0xff]   ;;  %v1270_v23 = vld [vmem:[%s1644_s1 + $0x90] sm:$0xff]  }
   0x9   :  { %1168 = vmatpush3.bf16.msra.mxu1 %v1254_v7  ;;  %1087 = vmatprep.subr.bf16.mxu0 %v1255_v8  ;;  %v1271_v24 = vld [vmem:[%s1644_s1 + $0x48] sm:$0xff]   ;;  %v1275_v28 = vld [vmem:[%s1644_s1 + $0x40] sm:$0xff]  }
   0xa   :  { %1169 = vmatprep.subr.bf16.mxu1 %v1256_v9  ;;  %v1272_v25 = vld [vmem:[%s1644_s1 + $0xc8] sm:$0xff]   ;;  %v1276_v29 = vld [vmem:[%s1644_s1 + $0xc0] sm:$0xff]  }
   0xb   :  { %v1273_v26 = vld [vmem:[%s1644_s1 + $0x8] sm:$0xff]   ;;  %v1277_v30 = vld [vmem:[%s1644_s1] sm:$0xff]  }
   0xc   :  { %1088 = vmatpush3.bf16.msra.mxu0 %v1257_v10  ;;  %v1274_v27 = vld [vmem:[%s1644_s1 + $0x88] sm:$0xff]   ;;  %v1278_v31 = vld [vmem:[%s1644_s1 + $0x80] sm:$0xff]  }
   0xd   :  { %1170 = vmatpush3.bf16.msra.mxu1 %v1258_v11  ;;  %1089 = vmatprep.subr.bf16.mxu0 %v1259_v12  ;;  %v1279_v32 = vld [vmem:[%s1645_s0] ss:$16 sps:$4 sm:$0xff]   ;;  %v1281_v33 = vld [vmem:[%s1645_s0 + $0x4] ss:$16 sps:$4 sm:$0xff]   ;;  %v1282_v34 = vld [vmem:[%s1645_s0 + $0x8] ss:$16 sps:$4 sm:$0xff]  }
   0xe   :  { %1171 = vmatprep.subr.bf16.mxu1 %v1260_v13  ;;  %v1284_v35 = vld [vmem:[%s1645_s0 + $0xc] ss:$16 sps:$4 sm:$0xff]   ;;  %566 = vmatprep.mubr.bf16.mxu0 %v1281_v33  ;;  %v1285_v36 = vld [vmem:[%s1645_s0 + $0x24] ss:$16 sps:$4 sm:$0xff]   ;;  %v1289_v38 = vld [vmem:[%s1645_s0 + $0x20] ss:$16 sps:$4 sm:$0xff]  }
   0xf   :  { %686 = vmatprep.mubr.bf16.mxu1 %v1284_v35  ;;  %v1287_v37 = vld [vmem:[%s1645_s0 + $0x2c] ss:$16 sps:$4 sm:$0xff]   ;;  %v1290_v39 = vld [vmem:[%s1645_s0 + $0x28] ss:$16 sps:$4 sm:$0xff]   ;;  %v1291_v40 = vld [vmem:[%s1645_s0 + $0x44] ss:$16 sps:$4 sm:$0xff]  }
  0x10   :  { %1090 = vmatpush3.bf16.msra.mxu0 %v1261_v14  ;;  %v1293_v41 = vld [vmem:[%s1645_s0 + $0x4c] ss:$16 sps:$4 sm:$0xff]   ;;  %v1295_v42 = vld [vmem:[%s1645_s0 + $0x40] ss:$16 sps:$4 sm:$0xff]   ;;  %v1296_v43 = vld [vmem:[%s1645_s0 + $0x48] ss:$16 sps:$4 sm:$0xff]  }
  0x11   :  { %1172 = vmatpush3.bf16.msra.mxu1 %v1262_v15  ;;  %1091 = vmatprep.subr.bf16.mxu0 %v1263_v16  ;;  %v1297_v44 = vld [vmem:[%s1645_s0 + $0x64] ss:$16 sps:$4 sm:$0xff]   ;;  %v1299_v45 = vld [vmem:[%s1645_s0 + $0x6c] ss:$16 sps:$4 sm:$0xff]   ;;  %v1301_v46 = vld [vmem:[%s1645_s0 + $0x60] ss:$16 sps:$4 sm:$0xff]  }
  0x12   :  { %1173 = vmatprep.subr.bf16.mxu1 %v1264_v17  ;;  %v1302_v47 = vld [vmem:[%s1645_s0 + $0x68] ss:$16 sps:$4 sm:$0xff]   ;;  %v1303_v48 = vld [vmem:[%s1645_s0 + $0x84] ss:$16 sps:$4 sm:$0xff]   ;;  %v1305_v49 = vld [vmem:[%s1645_s0 + $0x8c] ss:$16 sps:$4 sm:$0xff]  }
  0x13   :  { %v1307_v50 = vld [vmem:[%s1645_s0 + $0x80] ss:$16 sps:$4 sm:$0xff]   ;;  %v1308_v51 = vld [vmem:[%s1645_s0 + $0x88] ss:$16 sps:$4 sm:$0xff]   ;;  %v1309_v52 = vld [vmem:[%s1645_s0 + $0xa4] ss:$16 sps:$4 sm:$0xff]  }
  0x14   :  { %1092 = vmatpush3.bf16.msra.mxu0 %v1265_v18  ;;  %v1311_v53 = vld [vmem:[%s1645_s0 + $0xac] ss:$16 sps:$4 sm:$0xff]   ;;  %v1313_v54 = vld [vmem:[%s1645_s0 + $0xa0] ss:$16 sps:$4 sm:$0xff]   ;;  %v1314_v55 = vld [vmem:[%s1645_s0 + $0xa8] ss:$16 sps:$4 sm:$0xff]  }
  0x15   :  { %1174 = vmatpush3.bf16.msra.mxu1 %v1266_v19  ;;  %1093 = vmatprep.subr.bf16.mxu0 %v1267_v20  ;;  %v1315_v56 = vld [vmem:[%s1645_s0 + $0xc4] ss:$16 sps:$4 sm:$0xff]   ;;  %v1317_v57 = vld [vmem:[%s1645_s0 + $0xcc] ss:$16 sps:$4 sm:$0xff]   ;;  %v1319_v58 = vld [vmem:[%s1645_s0 + $0xc0] ss:$16 sps:$4 sm:$0xff]  }
  0x16   :  { %1175 = vmatprep.subr.bf16.mxu1 %v1268_v21  ;;  %v1320_v59 = vld [vmem:[%s1645_s0 + $0xc8] ss:$16 sps:$4 sm:$0xff]   ;;  %v1321_v60 = vld [vmem:[%s1645_s0 + $0xe4] ss:$16 sps:$4 sm:$0xff]   ;;  %v1323_v61 = vld [vmem:[%s1645_s0 + $0xec] ss:$16 sps:$4 sm:$0xff]  }
  0x17   :  { %v1325_v62 = vld [vmem:[%s1645_s0 + $0xe0] ss:$16 sps:$4 sm:$0xff]   ;;  %v1326_v63 = vld [vmem:[%s1645_s0 + $0xe8] ss:$16 sps:$4 sm:$0xff]   ;;  %v1327_v0 = vld [vmem:[%s1645_s0 + $0x104] ss:$16 sps:$4 sm:$0xff]  }
  0x18   :  { %1094 = vmatpush3.bf16.msra.mxu0 %v1269_v22  ;;  %v1329_v1 = vld [vmem:[%s1645_s0 + $0x10c] ss:$16 sps:$4 sm:$0xff]   ;;  %v1331_v2 = vld [vmem:[%s1645_s0 + $0x100] ss:$16 sps:$4 sm:$0xff]   ;;  %v1332_v3 = vld [vmem:[%s1645_s0 + $0x108] ss:$16 sps:$4 sm:$0xff]  }
  0x19   :  { %1176 = vmatpush3.bf16.msra.mxu1 %v1270_v23  ;;  %1095 = vmatprep.subr.bf16.mxu0 %v1271_v24  ;;  %v1333_v4 = vld [vmem:[%s1645_s0 + $0x124] ss:$16 sps:$4 sm:$0xff]   ;;  %v1335_v5 = vld [vmem:[%s1645_s0 + $0x12c] ss:$16 sps:$4 sm:$0xff]   ;;  %v1337_v8 = vld [vmem:[%s1645_s0 + $0x120] ss:$16 sps:$4 sm:$0xff]  }
  0x1a   :  { %1177 = vmatprep.subr.bf16.mxu1 %v1272_v25  ;;  %v55_v6 = vld [vmem:[%s1645_s0 + $0x140] sm:$0xff]  ;;  %v56_v7 = vld [vmem:[%s1645_s0 + $0x148] sm:$0xff] }
  0x1b   :  { %v1338_v9 = vld [vmem:[%s1645_s0 + $0x128] ss:$16 sps:$4 sm:$0xff]   ;;  %v947_v10 = vcombine.high %v55_v6, %v55_v6  ;;  %v949_v11 = vcombine.high %v56_v7, %v56_v7  ;;  %v946_v12 = vcombine.low %v55_v6, %v55_v6  ;;  %v948_v13 = vcombine.low %v56_v7, %v56_v7  ;;  %v1588_v16 = vld [vmem:[%s1646_s2] ss:$0 sm:$0xff] }
  0x1c   :  { %1096 = vmatpush3.bf16.msra.mxu0 %v1273_v26 }
  0x1d   :  { %1178 = vmatpush3.bf16.msra.mxu1 %v1274_v27  ;;  %1097 = vmatprep.subr.bf16.mxu0 %v1275_v28 }
  0x1e   :  { %1179 = vmatprep.subr.bf16.mxu1 %v1276_v29 }
  0x20   :  { %1098 = vmatpush3.bf16.msra.mxu0 %v1277_v30 }
  0x21   :  { %1180 = vmatpush3.bf16.msra.mxu1 %v1278_v31 }
  0x23   :  { %567 = vmatmul.mubr.bf16.vlgmr.msra.gmra.mxu0 %v1279_v32 }
  0x24   :  { %687 = vmatmul.mubr.bf16.vlgmr.msra.gmra.mxu1 %v1282_v34  ;;  %574 = vmatprep.mubr.bf16.mxu0 %v1285_v36 }
  0x25   :  { %694 = vmatprep.mubr.bf16.mxu1 %v1287_v37 }
  0x2b   :  { %575 = vmatmul.mubr.bf16.gmra.mxu0 %v1289_v38 }
  0x2c   :  { %695 = vmatmul.mubr.bf16.gmra.mxu1 %v1290_v39  ;;  %582 = vmatprep.mubr.bf16.mxu0 %v1291_v40 }
  0x2d   :  { %702 = vmatprep.mubr.bf16.mxu1 %v1293_v41 }
  0x33   :  { %583 = vmatmul.mubr.bf16.gmra.mxu0 %v1295_v42 }
  0x34   :  { %703 = vmatmul.mubr.bf16.gmra.mxu1 %v1296_v43  ;;  %590 = vmatprep.mubr.bf16.mxu0 %v1297_v44 }
  0x35   :  { %710 = vmatprep.mubr.bf16.mxu1 %v1299_v45 }
  0x3b   :  { %591 = vmatmul.mubr.bf16.gmra.mxu0 %v1301_v46 }
  0x3c   :  { %711 = vmatmul.mubr.bf16.gmra.mxu1 %v1302_v47  ;;  %598 = vmatprep.mubr.bf16.mxu0 %v1303_v48 }
  0x3d   :  { %718 = vmatprep.mubr.bf16.mxu1 %v1305_v49 }
  0x43   :  { %599 = vmatmul.mubr.bf16.gmra.mxu0 %v1307_v50 }
  0x44   :  { %719 = vmatmul.mubr.bf16.gmra.mxu1 %v1308_v51  ;;  %606 = vmatprep.mubr.bf16.mxu0 %v1309_v52 }
  0x45   :  { %726 = vmatprep.mubr.bf16.mxu1 %v1311_v53 }
  0x4b   :  { %607 = vmatmul.mubr.bf16.gmra.mxu0 %v1313_v54 }
  0x4c   :  { %727 = vmatmul.mubr.bf16.gmra.mxu1 %v1314_v55  ;;  %614 = vmatprep.mubr.bf16.mxu0 %v1315_v56 }
  0x4d   :  { %734 = vmatprep.mubr.bf16.mxu1 %v1317_v57 }
  0x53   :  { %615 = vmatmul.mubr.bf16.gmra.mxu0 %v1319_v58 }
  0x54   :  { %735 = vmatmul.mubr.bf16.gmra.mxu1 %v1320_v59  ;;  %622 = vmatprep.mubr.bf16.mxu0 %v1321_v60 }
  0x55   :  { %742 = vmatprep.mubr.bf16.mxu1 %v1323_v61 }
  0x5b   :  { %623 = vmatmul.mubr.bf16.gmra.mxu0 %v1325_v62 }
  0x5c   :  { %743 = vmatmul.mubr.bf16.gmra.mxu1 %v1326_v63  ;;  %630 = vmatprep.mubr.bf16.mxu0 %v1327_v0 }
  0x5d   :  { %750 = vmatprep.mubr.bf16.mxu1 %v1329_v1 }
  0x63   :  { %631 = vmatmul.mubr.bf16.gmra.mxu0 %v1331_v2 }
  0x64   :  { %751 = vmatmul.mubr.bf16.gmra.mxu1 %v1332_v3  ;;  %638 = vmatprep.mubr.bf16.mxu0 %v1333_v4 }
  0x65   :  { %758 = vmatprep.mubr.bf16.mxu1 %v1335_v5 }
  0x6b   :  { %639 = vmatmul.mubr.bf16.gmra.mxu0 %v1337_v8 }
  0x6c   :  { %759 = vmatmul.mubr.bf16.gmra.mxu1 %v1338_v9  ;;  %646 = vmatprep.mubr.bf16.mxu0 %v947_v10 }
  0x6d   :  { %766 = vmatprep.mubr.bf16.mxu1 %v949_v11 }
  0x73   :  { %647 = vmatmul.mubr.bf16.gmra.mxu0 %v946_v12 }
  0x74   :  { %767 = vmatmul.mubr.bf16.gmra.mxu1 %v948_v13 }
  0xe3   :  { %v1099_v14 = vpop.f32.mrf.mxu0 }
  0xe4   :  { %v1181_v15 = vpop.f32.mrf.mxu1 }
  0xe5   :  { %v1100_v17 = vpop.f32.mrf.mxu0 }
  0xe6   :  { %v1101_v18 = vadd.f32 %v1100_v17, %v1099_v14  ;;  %v1182_v19 = vpop.f32.mrf.mxu1 }
  0xe7   :  { %v1102_v20 = vpop.f32.mrf.mxu0  ;;  %v1183_v24 = vadd.f32 %v1182_v19, %v1181_v15 }
  0xe8   :  { %v569_v21 = vadd.f32 %v1101_v18, %v1588_v16  ;;  %v1184_v22 = vpop.f32.mrf.mxu1 }
  0xe9   :  { %v1103_v23 = vpop.f32.mrf.mxu0 }
  0xea   :  { %v1104_v25 = vadd.f32 %v1103_v23, %v1102_v20  ;;  %v1185_v26 = vpop.f32.mrf.mxu1  ;;  %v689_v28 = vadd.f32 %v1183_v24, %v569_v21 }
  0xeb   :  { %v1105_v27 = vpop.f32.mrf.mxu0  ;;  %v1186_v30 = vadd.f32 %v1185_v26, %v1184_v22 }
  0xec   :  { %v572_v29 = vadd.f32 %v1104_v25, %v1588_v16  ;;  %v1187_v31 = vpop.f32.mrf.mxu1  ;;  %v774_v37 = vmax.f32 %v689_v28, 0.0 }
  0xed   :  { %v1106_v32 = vpop.f32.mrf.mxu0 }
  0xee   :  { %v692_v33 = vadd.f32 %v1186_v30, %v572_v29  ;;  %v1107_v34 = vadd.f32 %v1106_v32, %v1105_v27  ;;  %v1188_v35 = vpop.f32.mrf.mxu1 }
  0xef   :  { %v1108_v36 = vpop.f32.mrf.mxu0  ;;  %v1189_v43 = vadd.f32 %v1188_v35, %v1187_v31 }
  0xf0   :  { %v775_v38 = vmax.f32 %v692_v33, 0.0  ;;  %v577_v39 = vadd.f32 %v1107_v34, %v1588_v16  ;;  %v1190_v40 = vpop.f32.mrf.mxu1 }
  0xf1   :  { %v1109_v41 = vpop.f32.mrf.mxu0 }
  0xf2   :  { %v1027_v42 = vpack.c.bf16 %v775_v38, %v774_v37  ;;  %v1110_v44 = vadd.f32 %v1109_v41, %v1108_v36  ;;  %v1191_v45 = vpop.f32.mrf.mxu1  ;;  %v697_v47 = vadd.f32 %v1189_v43, %v577_v39 }
  0xf3   :  { %v1111_v46 = vpop.f32.mrf.mxu0  ;;  %v1192_v49 = vadd.f32 %v1191_v45, %v1190_v40 }
  0xf4   :  { %1028 = vst [vmem:[%s1647_s3] sm:$0xff] %v1027_v42   ;;  %v580_v48 = vadd.f32 %v1110_v44, %v1588_v16  ;;  %v1193_v50 = vpop.f32.mrf.mxu1  ;;  %v776_v56 = vmax.f32 %v697_v47, 0.0 }
  0xf5   :  { %v1112_v51 = vpop.f32.mrf.mxu0 }
  0xf6   :  { %v700_v52 = vadd.f32 %v1192_v49, %v580_v48  ;;  %v1113_v53 = vadd.f32 %v1112_v51, %v1111_v46  ;;  %v1194_v54 = vpop.f32.mrf.mxu1 }
  0xf7   :  { %v1114_v55 = vpop.f32.mrf.mxu0  ;;  %v1195_v62 = vadd.f32 %v1194_v54, %v1193_v50 }
  0xf8   :  { %v777_v57 = vmax.f32 %v700_v52, 0.0  ;;  %v585_v58 = vadd.f32 %v1113_v53, %v1588_v16  ;;  %v1196_v59 = vpop.f32.mrf.mxu1 }
  0xf9   :  { %v1115_v60 = vpop.f32.mrf.mxu0 }
  0xfa   :  { %v1032_v61 = vpack.c.bf16 %v777_v57, %v776_v56  ;;  %v1116_v63 = vadd.f32 %v1115_v60, %v1114_v55  ;;  %v1197_v0 = vpop.f32.mrf.mxu1  ;;  %v705_v2 = vadd.f32 %v1195_v62, %v585_v58 }
  0xfb   :  { %v1117_v1 = vpop.f32.mrf.mxu0  ;;  %v1198_v4 = vadd.f32 %v1197_v0, %v1196_v59 }
  0xfc   :  { %1074 = vst [vmem:[%s1647_s3 + $0x8] sm:$0xff] %v1032_v61   ;;  %v588_v3 = vadd.f32 %v1116_v63, %v1588_v16  ;;  %v1199_v5 = vpop.f32.mrf.mxu1  ;;  %v778_v11 = vmax.f32 %v705_v2, 0.0 }
  0xfd   :  { %v1118_v6 = vpop.f32.mrf.mxu0 }
  0xfe   :  { %v708_v7 = vadd.f32 %v1198_v4, %v588_v3  ;;  %v1119_v8 = vadd.f32 %v1118_v6, %v1117_v1  ;;  %v1200_v9 = vpop.f32.mrf.mxu1 }
  0xff   :  { %v1120_v10 = vpop.f32.mrf.mxu0  ;;  %v1201_v18 = vadd.f32 %v1200_v9, %v1199_v5 }
 0x100   :  { %v779_v12 = vmax.f32 %v708_v7, 0.0  ;;  %v593_v13 = vadd.f32 %v1119_v8, %v1588_v16  ;;  %v1202_v14 = vpop.f32.mrf.mxu1 }
 0x101   :  { %v1121_v15 = vpop.f32.mrf.mxu0 }
 0x102   :  { %v1037_v17 = vpack.c.bf16 %v779_v12, %v778_v11  ;;  %v1122_v19 = vadd.f32 %v1121_v15, %v1120_v10  ;;  %v1203_v20 = vpop.f32.mrf.mxu1  ;;  %v713_v22 = vadd.f32 %v1201_v18, %v593_v13 }
 0x103   :  { %v1123_v21 = vpop.f32.mrf.mxu0  ;;  %v1204_v24 = vadd.f32 %v1203_v20, %v1202_v14 }
 0x104   :  { %1075 = vst [vmem:[%s1647_s3 + $0x10] sm:$0xff] %v1037_v17   ;;  %v596_v23 = vadd.f32 %v1122_v19, %v1588_v16  ;;  %v1205_v25 = vpop.f32.mrf.mxu1  ;;  %v780_v31 = vmax.f32 %v713_v22, 0.0 }
 0x105   :  { %v1124_v26 = vpop.f32.mrf.mxu0 }
 0x106   :  { %v716_v27 = vadd.f32 %v1204_v24, %v596_v23  ;;  %v1125_v28 = vadd.f32 %v1124_v26, %v1123_v21  ;;  %v1206_v29 = vpop.f32.mrf.mxu1 }
 0x107   :  { %v1126_v30 = vpop.f32.mrf.mxu0  ;;  %v1207_v37 = vadd.f32 %v1206_v29, %v1205_v25 }
 0x108   :  { %v781_v32 = vmax.f32 %v716_v27, 0.0  ;;  %v601_v33 = vadd.f32 %v1125_v28, %v1588_v16  ;;  %v1208_v34 = vpop.f32.mrf.mxu1 }
 0x109   :  { %v1127_v35 = vpop.f32.mrf.mxu0 }
 0x10a   :  { %v1042_v36 = vpack.c.bf16 %v781_v32, %v780_v31  ;;  %v1128_v38 = vadd.f32 %v1127_v35, %v1126_v30  ;;  %v1209_v39 = vpop.f32.mrf.mxu1  ;;  %v721_v41 = vadd.f32 %v1207_v37, %v601_v33 }
 0x10b   :  { %v1129_v40 = vpop.f32.mrf.mxu0  ;;  %v1210_v43 = vadd.f32 %v1209_v39, %v1208_v34 }
 0x10c   :  { %1076 = vst [vmem:[%s1647_s3 + $0x18] sm:$0xff] %v1042_v36   ;;  %v604_v42 = vadd.f32 %v1128_v38, %v1588_v16  ;;  %v1211_v44 = vpop.f32.mrf.mxu1  ;;  %v782_v50 = vmax.f32 %v721_v41, 0.0 }
 0x10d   :  { %v1130_v45 = vpop.f32.mrf.mxu0 }
 0x10e   :  { %v724_v46 = vadd.f32 %v1210_v43, %v604_v42  ;;  %v1131_v47 = vadd.f32 %v1130_v45, %v1129_v40  ;;  %v1212_v48 = vpop.f32.mrf.mxu1 }
 0x10f   :  { %v1132_v49 = vpop.f32.mrf.mxu0  ;;  %v1213_v56 = vadd.f32 %v1212_v48, %v1211_v44 }
 0x110   :  { %v783_v51 = vmax.f32 %v724_v46, 0.0  ;;  %v609_v52 = vadd.f32 %v1131_v47, %v1588_v16  ;;  %v1214_v53 = vpop.f32.mrf.mxu1 }
 0x111   :  { %v1133_v54 = vpop.f32.mrf.mxu0 }
 0x112   :  { %v1047_v55 = vpack.c.bf16 %v783_v51, %v782_v50  ;;  %v1134_v57 = vadd.f32 %v1133_v54, %v1132_v49  ;;  %v1215_v58 = vpop.f32.mrf.mxu1  ;;  %v729_v60 = vadd.f32 %v1213_v56, %v609_v52 }
 0x113   :  { %v1135_v59 = vpop.f32.mrf.mxu0  ;;  %v1216_v62 = vadd.f32 %v1215_v58, %v1214_v53 }
 0x114   :  { %1077 = vst [vmem:[%s1647_s3 + $0x20] sm:$0xff] %v1047_v55   ;;  %v612_v61 = vadd.f32 %v1134_v57, %v1588_v16  ;;  %v1217_v63 = vpop.f32.mrf.mxu1  ;;  %v784_v5 = vmax.f32 %v729_v60, 0.0 }
 0x115   :  { %v1136_v0 = vpop.f32.mrf.mxu0 }
 0x116   :  { %v732_v1 = vadd.f32 %v1216_v62, %v612_v61  ;;  %v1137_v2 = vadd.f32 %v1136_v0, %v1135_v59  ;;  %v1218_v3 = vpop.f32.mrf.mxu1 }
 0x117   :  { %v1138_v4 = vpop.f32.mrf.mxu0  ;;  %v1219_v11 = vadd.f32 %v1218_v3, %v1217_v63 }
 0x118   :  { %v785_v6 = vmax.f32 %v732_v1, 0.0  ;;  %v617_v7 = vadd.f32 %v1137_v2, %v1588_v16  ;;  %v1220_v8 = vpop.f32.mrf.mxu1 }
 0x119   :  { %v1139_v9 = vpop.f32.mrf.mxu0 }
 0x11a   :  { %v1052_v10 = vpack.c.bf16 %v785_v6, %v784_v5  ;;  %v1140_v12 = vadd.f32 %v1139_v9, %v1138_v4  ;;  %v1221_v13 = vpop.f32.mrf.mxu1  ;;  %v737_v15 = vadd.f32 %v1219_v11, %v617_v7 }
 0x11b   :  { %v1141_v14 = vpop.f32.mrf.mxu0  ;;  %v1222_v18 = vadd.f32 %v1221_v13, %v1220_v8 }
 0x11c   :  { %1078 = vst [vmem:[%s1647_s3 + $0x28] sm:$0xff] %v1052_v10   ;;  %v620_v17 = vadd.f32 %v1140_v12, %v1588_v16  ;;  %v1223_v19 = vpop.f32.mrf.mxu1  ;;  %v786_v25 = vmax.f32 %v737_v15, 0.0 }
 0x11d   :  { %v1142_v20 = vpop.f32.mrf.mxu0 }
 0x11e   :  { %v740_v21 = vadd.f32 %v1222_v18, %v620_v17  ;;  %v1143_v22 = vadd.f32 %v1142_v20, %v1141_v14  ;;  %v1224_v23 = vpop.f32.mrf.mxu1 }
 0x11f   :  { %v1144_v24 = vpop.f32.mrf.mxu0  ;;  %v1225_v31 = vadd.f32 %v1224_v23, %v1223_v19 }
 0x120   :  { %v787_v26 = vmax.f32 %v740_v21, 0.0  ;;  %v625_v27 = vadd.f32 %v1143_v22, %v1588_v16  ;;  %v1226_v28 = vpop.f32.mrf.mxu1 }
 0x121   :  { %v1145_v29 = vpop.f32.mrf.mxu0 }
 0x122   :  { %v1057_v30 = vpack.c.bf16 %v787_v26, %v786_v25  ;;  %v1146_v32 = vadd.f32 %v1145_v29, %v1144_v24  ;;  %v1227_v33 = vpop.f32.mrf.mxu1  ;;  %v745_v35 = vadd.f32 %v1225_v31, %v625_v27 }
 0x123   :  { %v1147_v34 = vpop.f32.mrf.mxu0  ;;  %v1228_v37 = vadd.f32 %v1227_v33, %v1226_v28 }
 0x124   :  { %1079 = vst [vmem:[%s1647_s3 + $0x30] sm:$0xff] %v1057_v30   ;;  %v628_v36 = vadd.f32 %v1146_v32, %v1588_v16  ;;  %v1229_v38 = vpop.f32.mrf.mxu1  ;;  %v788_v44 = vmax.f32 %v745_v35, 0.0 }
 0x125   :  { %v1148_v39 = vpop.f32.mrf.mxu0 }
 0x126   :  { %v748_v40 = vadd.f32 %v1228_v37, %v628_v36  ;;  %v1149_v41 = vadd.f32 %v1148_v39, %v1147_v34  ;;  %v1230_v42 = vpop.f32.mrf.mxu1 }
 0x127   :  { %v1150_v43 = vpop.f32.mrf.mxu0  ;;  %v1231_v50 = vadd.f32 %v1230_v42, %v1229_v38 }
 0x128   :  { %v789_v45 = vmax.f32 %v748_v40, 0.0  ;;  %v633_v46 = vadd.f32 %v1149_v41, %v1588_v16  ;;  %v1232_v47 = vpop.f32.mrf.mxu1 }
 0x129   :  { %v1151_v48 = vpop.f32.mrf.mxu0 }
 0x12a   :  { %v1062_v49 = vpack.c.bf16 %v789_v45, %v788_v44  ;;  %v1152_v51 = vadd.f32 %v1151_v48, %v1150_v43  ;;  %v1233_v52 = vpop.f32.mrf.mxu1  ;;  %v753_v54 = vadd.f32 %v1231_v50, %v633_v46 }
 0x12b   :  { %v1153_v53 = vpop.f32.mrf.mxu0  ;;  %v1234_v56 = vadd.f32 %v1233_v52, %v1232_v47 }
 0x12c   :  { %1080 = vst [vmem:[%s1647_s3 + $0x38] sm:$0xff] %v1062_v49   ;;  %v636_v55 = vadd.f32 %v1152_v51, %v1588_v16  ;;  %v1235_v57 = vpop.f32.mrf.mxu1  ;;  %v790_v63 = vmax.f32 %v753_v54, 0.0 }
 0x12d   :  { %v1154_v58 = vpop.f32.mrf.mxu0 }
 0x12e   :  { %v756_v59 = vadd.f32 %v1234_v56, %v636_v55  ;;  %v1155_v60 = vadd.f32 %v1154_v58, %v1153_v53  ;;  %v1236_v61 = vpop.f32.mrf.mxu1 }
 0x12f   :  { %v1156_v62 = vpop.f32.mrf.mxu0  ;;  %v1237_v5 = vadd.f32 %v1236_v61, %v1235_v57 }
 0x130   :  { %v791_v0 = vmax.f32 %v756_v59, 0.0  ;;  %v641_v1 = vadd.f32 %v1155_v60, %v1588_v16  ;;  %v1238_v2 = vpop.f32.mrf.mxu1 }
 0x131   :  { %v1157_v3 = vpop.f32.mrf.mxu0 }
 0x132   :  { %v1067_v4 = vpack.c.bf16 %v791_v0, %v790_v63  ;;  %v1158_v6 = vadd.f32 %v1157_v3, %v1156_v62  ;;  %v1239_v7 = vpop.f32.mrf.mxu1  ;;  %v761_v9 = vadd.f32 %v1237_v5, %v641_v1 }
 0x133   :  { %v1159_v8 = vpop.f32.mrf.mxu0  ;;  %v1240_v11 = vadd.f32 %v1239_v7, %v1238_v2 }
 0x134   :  { %1081 = vst [vmem:[%s1647_s3 + $0x40] sm:$0xff] %v1067_v4   ;;  %v644_v10 = vadd.f32 %v1158_v6, %v1588_v16  ;;  %v1241_v12 = vpop.f32.mrf.mxu1  ;;  %v792_v19 = vmax.f32 %v761_v9, 0.0 }
 0x135   :  { %v1160_v13 = vpop.f32.mrf.mxu0 }
 0x136   :  { %v764_v14 = vadd.f32 %v1240_v11, %v644_v10  ;;  %v1161_v15 = vadd.f32 %v1160_v13, %v1159_v8  ;;  %v1242_v17 = vpop.f32.mrf.mxu1 }
 0x137   :  { %v1162_v18 = vpop.f32.mrf.mxu0  ;;  %v1243_v22 = vadd.f32 %v1242_v17, %v1241_v12 }
 0x138   :  { %v793_v20 = vmax.f32 %v764_v14, 0.0  ;;  %v649_v21 = vadd.f32 %v1161_v15, %v1588_v16  ;;  %v1244_v23 = vpop.f32.mrf.mxu1 }
 0x139   :  { %v1163_v24 = vpop.f32.mrf.mxu0 }
 0x13a   :  { %v1072_v25 = vpack.c.bf16 %v793_v20, %v792_v19  ;;  %v769_v26 = vadd.f32 %v1243_v22, %v649_v21  ;;  %v1245_v27 = vpop.f32.mrf.mxu1 }
 0x13c   :  { %1082 = vst [vmem:[%s1647_s3 + $0x48] sm:$0xff] %v1072_v25   ;;  %v794_v28 = vmax.f32 %v769_v26, 0.0 }
 0x13e   :  { %v1023_v29 = vpack.c.bf16 %v794_v28, %v794_v28 }
 0x140   :  { %900 = vst [vmem:[%s1647_s3 + $0x50] sm:$0xf] %v1023_v29 }

// kernel: dqn_forward.6
= control target key start
LH: loop header
LB: loop body
LE: loop exit
PB: predicated region body
PF: predicated region fallthrough
CT: control target
= control target key end

     0   :  { %v1281_v34 = vmov 0.0   ;;  %vm1282_vm0 = vmmov 0   ;;  %vm516_vm1 = vcmask 523264   ;;  %s1650_s1 = inlined_call_operand.vmem [shape: bf16[576,128], index: 1, kind: input, shape index: {}]   ;;  %s1651_s0 = inlined_call_operand.vmem [shape: bf16[104,576], index: 0, kind: input, shape index: {}]   ;;  %s1652_s2 = inlined_call_operand.vmem [shape: f32[1,128], index: 2, kind: input, shape index: {}]   ;;  %s1653_s3 = inlined_call_operand.vmem [shape: bf16[104,128], index: 3, kind: output, shape index: {}]  }
   0x1   :  { %v1198_v0 = vld [vmem:[%s1650_s1 + $0x78] sm:$0xff]   ;;  %v1202_v4 = vld [vmem:[%s1650_s1 + $0x70] sm:$0xff]   ;;  %v1206_v8 = vld [vmem:[%s1650_s1 + $0x68] sm:$0xff]  }
   0x2   :  { %v1199_v1 = vld [vmem:[%s1650_s1 + $0xf8] sm:$0xff]   ;;  %1025 = vmatprep.subr.bf16.mxu0 %v1198_v0  ;;  %v1203_v5 = vld [vmem:[%s1650_s1 + $0xf0] sm:$0xff]   ;;  %v1207_v9 = vld [vmem:[%s1650_s1 + $0xe8] sm:$0xff]  }
   0x3   :  { %v1200_v2 = vld [vmem:[%s1650_s1 + $0x38] sm:$0xff]   ;;  %1083 = vmatprep.subr.bf16.mxu1 %v1199_v1  ;;  %v1204_v6 = vld [vmem:[%s1650_s1 + $0x30] sm:$0xff]   ;;  %v1208_v10 = vld [vmem:[%s1650_s1 + $0x28] sm:$0xff]  }
   0x4   :  { %v1201_v3 = vld [vmem:[%s1650_s1 + $0xb8] sm:$0xff]   ;;  %1026 = vmatpush3.bf16.msra.mxu0 %v1200_v2  ;;  %v1205_v7 = vld [vmem:[%s1650_s1 + $0xb0] sm:$0xff]   ;;  %v1209_v11 = vld [vmem:[%s1650_s1 + $0xa8] sm:$0xff]  }
   0x5   :  { %1084 = vmatpush3.bf16.msra.mxu1 %v1201_v3  ;;  %1027 = vmatprep.subr.bf16.mxu0 %v1202_v4  ;;  %v1210_v12 = vld [vmem:[%s1650_s1 + $0x60] sm:$0xff]   ;;  %v1214_v16 = vld [vmem:[%s1650_s1 + $0x58] sm:$0xff]   ;;  %v1218_v20 = vld [vmem:[%s1650_s1 + $0x50] sm:$0xff]  }
   0x6   :  { %1085 = vmatprep.subr.bf16.mxu1 %v1203_v5  ;;  %v1211_v13 = vld [vmem:[%s1650_s1 + $0xe0] sm:$0xff]   ;;  %v1215_v17 = vld [vmem:[%s1650_s1 + $0xd8] sm:$0xff]   ;;  %v1219_v21 = vld [vmem:[%s1650_s1 + $0xd0] sm:$0xff]  }
   0x7   :  { %v1212_v14 = vld [vmem:[%s1650_s1 + $0x20] sm:$0xff]   ;;  %v1216_v18 = vld [vmem:[%s1650_s1 + $0x18] sm:$0xff]   ;;  %v1220_v22 = vld [vmem:[%s1650_s1 + $0x10] sm:$0xff]  }
   0x8   :  { %1028 = vmatpush3.bf16.msra.mxu0 %v1204_v6  ;;  %v1213_v15 = vld [vmem:[%s1650_s1 + $0xa0] sm:$0xff]   ;;  %v1217_v19 = vld [vmem:[%s1650_s1 + $0x98] sm:$0xff]   ;;  %v1221_v23 = vld [vmem:[%s1650_s1 + $0x90] sm:$0xff]  }
   0x9   :  { %1086 = vmatpush3.bf16.msra.mxu1 %v1205_v7  ;;  %1029 = vmatprep.subr.bf16.mxu0 %v1206_v8  ;;  %v1222_v24 = vld [vmem:[%s1650_s1 + $0x48] sm:$0xff]   ;;  %v1226_v28 = vld [vmem:[%s1650_s1 + $0x40] sm:$0xff]   ;;  %v1236_v37 = vld [vmem:[%s1650_s1 + $0x118] sm:$0xff]  }
   0xa   :  { %1087 = vmatprep.subr.bf16.mxu1 %v1207_v9  ;;  %v1223_v25 = vld [vmem:[%s1650_s1 + $0xc8] sm:$0xff]   ;;  %v1227_v29 = vld [vmem:[%s1650_s1 + $0xc0] sm:$0xff]   ;;  %v1247_v43 = vld [vmem:[%s1650_s1 + $0x110] sm:$0xff]  }
   0xb   :  { %v1224_v26 = vld [vmem:[%s1650_s1 + $0x8] sm:$0xff]   ;;  %v1228_v30 = vld [vmem:[%s1650_s1] sm:$0xff]   ;;  %v1245_v44 = vld [vmem:[%s1651_s0 + $0x5c] ss:$20 sps:$4 sm:$0xff]  }
   0xc   :  { %1030 = vmatpush3.bf16.msra.mxu0 %v1208_v10  ;;  %v1225_v27 = vld [vmem:[%s1650_s1 + $0x88] sm:$0xff]   ;;  %v1229_v31 = vld [vmem:[%s1650_s1 + $0x80] sm:$0xff]   ;;  %v1250_v48 = vld [vmem:[%s1651_s0 + $0x7c] ss:$20 sps:$4 sm:$0xff]  }
   0xd   :  { %1088 = vmatpush3.bf16.msra.mxu1 %v1209_v11  ;;  %1031 = vmatprep.subr.bf16.mxu0 %v1210_v12  ;;  %v1230_v32 = vld [vmem:[%s1651_s0] ss:$20 sps:$4 sm:$0xff]   ;;  %v1232_v33 = vld [vmem:[%s1651_s0 + $0x4] ss:$20 sps:$4 sm:$0xff]   ;;  %v1233_v35 = vld [vmem:[%s1651_s0 + $0x8] ss:$20 sps:$4 sm:$0xff]  }
   0xe   :  { %1089 = vmatprep.subr.bf16.mxu1 %v1211_v13  ;;  %v1235_v36 = vld [vmem:[%s1651_s0 + $0xc] ss:$20 sps:$4 sm:$0xff]   ;;  %570 = vmatprep.mubr.bf16.mxu0 %v1232_v33  ;;  %v1239_v39 = vld [vmem:[%s1651_s0 + $0x34] ss:$20 sps:$4 sm:$0xff]   ;;  %v1242_v41 = vld [vmem:[%s1651_s0 + $0x30] ss:$20 sps:$4 sm:$0xff]  }
   0xf   :  { %658 = vmatprep.mubr.bf16.mxu1 %v1235_v36  ;;  %v1237_v38 = vld [vmem:[%s1651_s0 + $0x2c] ss:$20 sps:$4 sm:$0xff]   ;;  %v1241_v40 = vld [vmem:[%s1651_s0 + $0x28] ss:$20 sps:$4 sm:$0xff]   ;;  %v1248_v46 = vld [vmem:[%s1651_s0 + $0x50] ss:$20 sps:$4 sm:$0xff]  }
  0x10   :  { %1032 = vmatpush3.bf16.msra.mxu0 %v1212_v14  ;;  %v1243_v42 = vld [vmem:[%s1651_s0 + $0x54] ss:$20 sps:$4 sm:$0xff]   ;;  %v1249_v47 = vld [vmem:[%s1651_s0 + $0x58] ss:$20 sps:$4 sm:$0xff]   ;;  %v1269_v50 = vld [vmem:[%s1650_s1 + $0x100] sm:$0xff]  }
  0x11   :  { %1090 = vmatpush3.bf16.msra.mxu1 %v1213_v15  ;;  %1033 = vmatprep.subr.bf16.mxu0 %v1214_v16  ;;  %v1256_v45 = vld [vmem:[%s1650_s1 + $0x108] sm:$0xff]   ;;  %v1252_v49 = vld [vmem:[%s1651_s0 + $0x84] ss:$20 sps:$4 sm:$0xff]   ;;  %v1255_v52 = vld [vmem:[%s1651_s0 + $0x80] ss:$20 sps:$4 sm:$0xff]  }
  0x12   :  { %1091 = vmatprep.subr.bf16.mxu1 %v1215_v17  ;;  %v1254_v51 = vld [vmem:[%s1651_s0 + $0x78] ss:$20 sps:$4 sm:$0xff]   ;;  %v1261_v55 = vld [vmem:[%s1651_s0 + $0xa0] ss:$20 sps:$4 sm:$0xff]   ;;  %v1262_v56 = vld [vmem:[%s1651_s0 + $0xa8] ss:$20 sps:$4 sm:$0xff]  }
  0x13   :  { %v1257_v53 = vld [vmem:[%s1651_s0 + $0xa4] ss:$20 sps:$4 sm:$0xff]   ;;  %v1259_v54 = vld [vmem:[%s1651_s0 + $0xac] ss:$20 sps:$4 sm:$0xff]   ;;  %v1265_v58 = vld [vmem:[%s1651_s0 + $0xd4] ss:$20 sps:$4 sm:$0xff]  }
  0x14   :  { %1034 = vmatpush3.bf16.msra.mxu0 %v1216_v18  ;;  %v1263_v57 = vld [vmem:[%s1651_s0 + $0xcc] ss:$20 sps:$4 sm:$0xff]   ;;  %v51_v59 = vld [vmem:[%s1651_s0 + $0xf0] sm:$0xff]  ;;  %v52_v60 = vld [vmem:[%s1651_s0 + $0xf8] sm:$0xff] }
  0x15   :  { %1092 = vmatpush3.bf16.msra.mxu1 %v1217_v19  ;;  %1035 = vmatprep.subr.bf16.mxu0 %v1218_v20  ;;  %v1267_v61 = vld [vmem:[%s1651_s0 + $0xc8] ss:$20 sps:$4 sm:$0xff]   ;;  %v1268_v62 = vld [vmem:[%s1651_s0 + $0xd0] ss:$20 sps:$4 sm:$0xff]   ;;  %v917_v63 = vcombine.high %v51_v59, %v51_v59  ;;  %v919_v0 = vcombine.high %v52_v60, %v52_v60  ;;  %v916_v1 = vcombine.low %v51_v59, %v51_v59  ;;  %v1276_v5 = vld [vmem:[%s1651_s0 + $0x38] ss:$20 sps:$4 sm:$0xff]  }
  0x16   :  { %1093 = vmatprep.subr.bf16.mxu1 %v1219_v21  ;;  %v918_v2 = vcombine.low %v52_v60, %v52_v60  ;;  %v1274_v3 = vld [vmem:[%s1651_s0 + $0x10] ss:$20 sps:$4 sm:$0xff]   ;;  %v1277_v6 = vld [vmem:[%s1651_s0 + $0xd8] ss:$20 sps:$4 sm:$0xff]   ;;  %v1278_v7 = vld [vmem:[%s1651_s0 + $0x60] ss:$20 sps:$4 sm:$0xff]  }
  0x17   :  { %v1275_v4 = vld [vmem:[%s1651_s0 + $0xb0] ss:$20 sps:$4 sm:$0xff]   ;;  %v1279_v8 = vld [vmem:[%s1651_s0 + $0x100] ss:$0 sps:$4 sm:$0xff]   ;;  %v1280_v9 = vld [vmem:[%s1651_s0 + $0x88] ss:$20 sps:$4 sm:$0xff]  }
  0x18   :  { %1036 = vmatpush3.bf16.msra.mxu0 %v1220_v22 }
  0x19   :  { %1094 = vmatpush3.bf16.msra.mxu1 %v1221_v23  ;;  %1037 = vmatprep.subr.bf16.mxu0 %v1222_v24 }
  0x1a   :  { %1095 = vmatprep.subr.bf16.mxu1 %v1223_v25 }
  0x1c   :  { %1038 = vmatpush3.bf16.msra.mxu0 %v1224_v26 }
  0x1d   :  { %1096 = vmatpush3.bf16.msra.mxu1 %v1225_v27  ;;  %1039 = vmatprep.subr.bf16.mxu0 %v1226_v28 }
  0x1e   :  { %1097 = vmatprep.subr.bf16.mxu1 %v1227_v29 }
  0x20   :  { %1040 = vmatpush3.bf16.msra.mxu0 %v1228_v30 }
  0x21   :  { %1098 = vmatpush3.bf16.msra.mxu1 %v1229_v31  ;;  %1152 = vmatprep.subr.bf16.mxu0 %v1281_v34 }
  0x22   :  { %1188 = vmatprep.subr.bf16.mxu1 %v1281_v34 }
  0x23   :  { %571 = vmatmul.mubr.bf16.vlgmr.msra.gmra.mxu0 %v1230_v32 }
  0x24   :  { %659 = vmatmul.mubr.bf16.vlgmr.msra.gmra.mxu1 %v1233_v35  ;;  %1153 = vmatpush3.bf16.msra.mxu0 %v1236_v37 }
  0x25   :  { %578 = vmatprep.mubr.bf16.mxu0 %v1237_v38  ;;  %1192 = vmatpush3.bf16.msra.mxu1 %v1236_v37 }
  0x26   :  { %666 = vmatprep.mubr.bf16.mxu1 %v1239_v39  ;;  %1154 = vmatprep.subr.bf16.mxu0 %v1281_v34 }
  0x27   :  { %1189 = vmatprep.subr.bf16.mxu1 %v1281_v34 }
  0x28   :  { %1155 = vmatpush3.bf16.msra.mxu0 %v1247_v43 }
  0x29   :  { %1193 = vmatpush3.bf16.msra.mxu1 %v1247_v43  ;;  %1156 = vmatprep.subr.bf16.mxu0 %v1281_v34 }
  0x2a   :  { %1190 = vmatprep.subr.bf16.mxu1 %v1281_v34 }
  0x2b   :  { %579 = vmatmul.mubr.bf16.gmra.mxu0 %v1241_v40 }
  0x2c   :  { %667 = vmatmul.mubr.bf16.gmra.mxu1 %v1242_v41  ;;  %586 = vmatprep.mubr.bf16.mxu0 %v1243_v42 }
  0x2d   :  { %674 = vmatprep.mubr.bf16.mxu1 %v1245_v44  ;;  %1157 = vmatpush3.bf16.msra.mxu0 %v1256_v45 }
  0x2e   :  { %1194 = vmatpush3.bf16.msra.mxu1 %v1256_v45  ;;  %1158 = vmatprep.subr.bf16.mxu0 %v1281_v34 }
  0x2f   :  { %1191 = vmatprep.subr.bf16.mxu1 %v1281_v34 }
  0x31   :  { %1159 = vmatpush3.bf16.msra.mxu0 %v1269_v50 }
  0x32   :  { %1195 = vmatpush3.bf16.msra.mxu1 %v1269_v50 }
  0x33   :  { %587 = vmatmul.mubr.bf16.gmra.mxu0 %v1248_v46 }
  0x34   :  { %675 = vmatmul.mubr.bf16.gmra.mxu1 %v1249_v47  ;;  %594 = vmatprep.mubr.bf16.mxu0 %v1250_v48 }
  0x35   :  { %682 = vmatprep.mubr.bf16.mxu1 %v1252_v49 }
  0x3b   :  { %595 = vmatmul.mubr.bf16.gmra.mxu0 %v1254_v51 }
  0x3c   :  { %683 = vmatmul.mubr.bf16.gmra.mxu1 %v1255_v52  ;;  %602 = vmatprep.mubr.bf16.mxu0 %v1257_v53 }
  0x3d   :  { %690 = vmatprep.mubr.bf16.mxu1 %v1259_v54 }
  0x43   :  { %603 = vmatmul.mubr.bf16.gmra.mxu0 %v1261_v55 }
  0x44   :  { %691 = vmatmul.mubr.bf16.gmra.mxu1 %v1262_v56  ;;  %610 = vmatprep.mubr.bf16.mxu0 %v1263_v57 }
  0x45   :  { %698 = vmatprep.mubr.bf16.mxu1 %v1265_v58 }
  0x4b   :  { %611 = vmatmul.mubr.bf16.gmra.mxu0 %v1267_v61  ;;  %v1590_v61 = vld [vmem:[%s1652_s2] ss:$0 sm:$0xff] }
  0x4c   :  { %699 = vmatmul.mubr.bf16.gmra.mxu1 %v1268_v62  ;;  %618 = vmatprep.mubr.bf16.mxu0 %v917_v63 }
  0x4d   :  { %706 = vmatprep.mubr.bf16.mxu1 %v919_v0 }
  0x53   :  { %619 = vmatmul.mubr.bf16.gmra.mxu0 %v916_v1 }
  0x54   :  { %707 = vmatmul.mubr.bf16.gmra.mxu1 %v918_v2  ;;  %1160 = vmatprep.mubr.msk.bf16.mxu0 %vm1282_vm0, %v1281_v34 }
  0x55   :  { %1176 = vmatprep.mubr.msk.bf16.mxu1 %vm1282_vm0, %v1281_v34 }
  0x5b   :  { %1161 = vmatmul.mubr.msk.bf16.vlgmr.msra.gmra.mxu0 %vm516_vm1, %v1274_v3 }
  0x5c   :  { %1177 = vmatmul.mubr.msk.bf16.vlgmr.msra.gmra.mxu1 %vm516_vm1, %v1275_v4  ;;  %1164 = vmatprep.mubr.msk.bf16.mxu0 %vm1282_vm0, %v1281_v34 }
  0x5d   :  { %1180 = vmatprep.mubr.msk.bf16.mxu1 %vm1282_vm0, %v1281_v34 }
  0x63   :  { %1165 = vmatmul.mubr.msk.bf16.gmra.mxu0 %vm516_vm1, %v1276_v5 }
  0x64   :  { %1181 = vmatmul.mubr.msk.bf16.gmra.mxu1 %vm516_vm1, %v1277_v6  ;;  %1168 = vmatprep.mubr.msk.bf16.mxu0 %vm1282_vm0, %v1281_v34 }
  0x65   :  { %1184 = vmatprep.mubr.msk.bf16.mxu1 %vm1282_vm0, %v1281_v34 }
  0x6b   :  { %1169 = vmatmul.mubr.msk.bf16.gmra.mxu0 %vm516_vm1, %v1278_v7 }
  0x6c   :  { %1185 = vmatmul.mubr.msk.bf16.gmra.mxu1 %vm516_vm1, %v1279_v8  ;;  %1172 = vmatprep.mubr.msk.bf16.mxu0 %vm1282_vm0, %v1281_v34 }
  0x73   :  { %1173 = vmatmul.mubr.msk.bf16.gmra.mxu0 %vm516_vm1, %v1280_v9 }
  0xe3   :  { %v1041_v10 = vpop.f32.mrf.mxu0 }
  0xe4   :  { %v1099_v11 = vpop.f32.mrf.mxu1 }
  0xe5   :  { %v1042_v12 = vpop.f32.mrf.mxu0 }
  0xe6   :  { %v1100_v13 = vpop.f32.mrf.mxu1  ;;  %v1043_v59 = vadd.f32 %v1042_v12, %v1041_v10 }
  0xe7   :  { %v1044_v14 = vpop.f32.mrf.mxu0  ;;  %v1101_v5 = vadd.f32 %v1100_v13, %v1099_v11 }
  0xe8   :  { %v1102_v15 = vpop.f32.mrf.mxu1  ;;  %v573_v4 = vadd.f32 %v1043_v59, %v1590_v61 }
  0xe9   :  { %v1045_v16 = vpop.f32.mrf.mxu0 }
  0xea   :  { %v1103_v17 = vpop.f32.mrf.mxu1  ;;  %v1046_v0 = vadd.f32 %v1045_v16, %v1044_v14  ;;  %v661_v16 = vadd.f32 %v1101_v5, %v573_v4 }
  0xeb   :  { %v1539_v18 = vpop.f32.mrf.mxu0  ;;  %v1104_v12 = vadd.f32 %v1103_v17, %v1102_v15 }
  0xec   :  { %v1541_v19 = vpop.f32.mrf.mxu1  ;;  %v576_v10 = vadd.f32 %v1046_v0, %v1590_v61 }
  0xed   :  { %v1048_v20 = vpop.f32.mrf.mxu0 }
  0xee   :  { %v1543_v21 = vpop.f32.mrf.mxu1  ;;  %v1049_v14 = vadd.f32 %v1048_v20, %v1539_v18 }
  0xef   :  { %v1545_v22 = vpop.f32.mrf.mxu0  ;;  %v1107_v18 = vadd.f32 %v1543_v21, %v1541_v19 }
  0xf0   :  { %v1547_v23 = vpop.f32.mrf.mxu1 }
  0xf1   :  { %v1549_v24 = vpop.f32.mrf.mxu0 }
  0xf2   :  { %v1551_v25 = vpop.f32.mrf.mxu1  ;;  %v1052_v13 = vadd.f32 %v1549_v24, %v1545_v22 }
  0xf3   :  { %v1553_v26 = vpop.f32.mrf.mxu0 }
  0xf4   :  { %v1555_v27 = vpop.f32.mrf.mxu1 }
  0xf5   :  { %v1557_v28 = vpop.f32.mrf.mxu0 }
  0xf6   :  { %v1559_v29 = vpop.f32.mrf.mxu1 }
  0xf7   :  { %v1561_v30 = vpop.f32.mrf.mxu0 }
  0xf8   :  { %v1563_v31 = vpop.f32.mrf.mxu1 }
  0xf9   :  { %v1565_v32 = vpop.f32.mrf.mxu0 }
  0xfa   :  { %v1567_v33 = vpop.f32.mrf.mxu1 }
  0xfb   :  { %v1569_v34 = vpop.f32.mrf.mxu0 }
  0xfc   :  { %v1571_v35 = vpop.f32.mrf.mxu1 }
  0xfd   :  { %v1573_v36 = vpop.f32.mrf.mxu0 }
  0xfe   :  { %v1575_v37 = vpop.f32.mrf.mxu1 }
  0xff   :  { %v1577_v38 = vpop.f32.mrf.mxu0 }
 0x100   :  { %v1579_v39 = vpop.f32.mrf.mxu1 }
 0x101   :  { %1654 = vst [vmem:[#allocation2_spill] sm:$0xff] %v1579_v39  ;;  %v1581_v40 = vpop.f32.mrf.mxu0 }
 0x102   :  { %v1583_v41 = vpop.f32.mrf.mxu1 }
 0x103   :  { %1655 = vst [vmem:[#allocation3_spill] sm:$0xff] %v1583_v41  ;;  %v1065_v42 = vpop.f32.mrf.mxu0 }
 0x104   :  { %v1123_v43 = vpop.f32.mrf.mxu1 }
 0x105   :  { %v1066_v44 = vpop.f32.mrf.mxu0 }
 0x106   :  { %v1124_v45 = vpop.f32.mrf.mxu1  ;;  %v1067_v62 = vadd.f32 %v1066_v44, %v1065_v42 }
 0x107   :  { %v1068_v46 = vpop.f32.mrf.mxu0  ;;  %v1125_v8 = vadd.f32 %v1124_v45, %v1123_v43 }
 0x108   :  { %v1126_v47 = vpop.f32.mrf.mxu1  ;;  %v605_v7 = vadd.f32 %v1067_v62, %v1590_v61  ;;  %v664_v62 = vadd.f32 %v1104_v12, %v576_v10 }
 0x109   :  { %v1069_v48 = vpop.f32.mrf.mxu0 }
 0x10a   :  { %v1127_v49 = vpop.f32.mrf.mxu1  ;;  %v1070_v2 = vadd.f32 %v1069_v48, %v1068_v46  ;;  %v693_v59 = vadd.f32 %v1125_v8, %v605_v7 }
 0x10b   :  { %v1071_v50 = vpop.f32.mrf.mxu0  ;;  %v1128_v42 = vadd.f32 %v1127_v49, %v1126_v47  ;;  %v581_v47 = vadd.f32 %v1049_v14, %v1590_v61 }
 0x10c   :  { %v1129_v51 = vpop.f32.mrf.mxu1  ;;  %v608_v39 = vadd.f32 %v1070_v2, %v1590_v61 }
 0x10d   :  { %v1072_v52 = vpop.f32.mrf.mxu0  ;;  %v669_v8 = vadd.f32 %v1107_v18, %v581_v47 }
 0x10e   :  { %v1130_v53 = vpop.f32.mrf.mxu1  ;;  %v1073_v48 = vadd.f32 %v1072_v52, %v1071_v50  ;;  %v1110_v50 = vadd.f32 %v1551_v25, %v1547_v23  ;;  %v1055_v23 = vadd.f32 %v1557_v28, %v1553_v26 }
 0x10f   :  { %v1074_v54 = vpop.f32.mrf.mxu0  ;;  %v1131_v22 = vadd.f32 %v1130_v53, %v1129_v51 }
 0x110   :  { %v1132_v55 = vpop.f32.mrf.mxu1  ;;  %v613_v52 = vadd.f32 %v1073_v48, %v1590_v61 }
 0x111   :  { %v1075_v56 = vpop.f32.mrf.mxu0 }
 0x112   :  { %v1133_v57 = vpop.f32.mrf.mxu1  ;;  %v1076_v0 = vadd.f32 %v1075_v56, %v1074_v54  ;;  %v584_v54 = vadd.f32 %v1052_v13, %v1590_v61 }
 0x113   :  { %v1077_v58 = vpop.f32.mrf.mxu0  ;;  %v1134_v56 = vadd.f32 %v1133_v57, %v1132_v55  ;;  %v1058_v55 = vadd.f32 %v1565_v32, %v1561_v30  ;;  %v589_v30 = vadd.f32 %v1055_v23, %v1590_v61  ;;  %v1113_v32 = vadd.f32 %v1559_v29, %v1555_v27 }
 0x114   :  { %v1585_v60 = vpop.f32.mrf.mxu1  ;;  %v616_v5 = vadd.f32 %v1076_v0, %v1590_v61 }
 0x115   :  { %v1078_v63 = vpop.f32.mrf.mxu0  ;;  %v677_v29 = vadd.f32 %v1113_v32, %v589_v30 }
 0x116   :  { %v1136_v1 = vpop.f32.mrf.mxu1 }
 0x117   :  { %v1080_v3 = vpop.f32.mrf.mxu0  ;;  %v1137_v26 = vadd.f32 %v1136_v1, %v1585_v60  ;;  %v1116_v60 = vadd.f32 %v1567_v33, %v1563_v31 }
 0x118   :  { %v1138_v6 = vpop.f32.mrf.mxu1 }
 0x119   :  { %v1081_v9 = vpop.f32.mrf.mxu0  ;;  %v1079_v6 = vadd.f32 %v1078_v63, %v1077_v58  ;;  %v672_v63 = vadd.f32 %v1110_v50, %v584_v54  ;;  %v1656_v54 = vld [vmem:[#allocation2_spill] sm:$0xff] }
 0x11a   :  { %v1139_v41 = vpop.f32.mrf.mxu1  ;;  %v701_v9 = vadd.f32 %v1131_v22, %v613_v52  ;;  %v1119_v52 = vadd.f32 %v1575_v37, %v1571_v35 }
 0x11b   :  { %v748_v44 = vpop.f32.mrf.mxu0  ;;  %v696_v41 = vadd.f32 %v1128_v42, %v608_v39  ;;  %v621_v12 = vadd.f32 %v1079_v6, %v1590_v61 }
 0x11c   :  { %v780_v46 = vpop.f32.mrf.mxu1  ;;  %v749_v43 = vadd.f32 %v748_v44, %v661_v16  ;;  %v704_v44 = vadd.f32 %v1134_v56, %v616_v5  ;;  %v1657_v56 = vld [vmem:[#allocation3_spill] sm:$0xff] }
 0x11d   :  { %v1162_v11 = vpop.f32.mrf.mxu0  ;;  %v781_v15 = vadd.f32 %v780_v46, %v693_v59  ;;  %v592_v59 = vadd.f32 %v1058_v55, %v1590_v61  ;;  %v709_v0 = vadd.f32 %v1137_v26, %v621_v12 }
 0x11e   :  { %v1178_v45 = vpop.f32.mrf.mxu1  ;;  %v802_v3 = vmax.f32 %v749_v43, 0.0 }
 0x11f   :  { %v751_v17 = vpop.f32.mrf.mxu0  ;;  %v810_v19 = vmax.f32 %v781_v15, 0.0  ;;  %v1061_v15 = vadd.f32 %v1573_v36, %v1569_v34  ;;  %v680_v33 = vadd.f32 %v1116_v60, %v592_v59 }
 0x120   :  { %v752_v20 = vadd.f32 %v751_v17, %v664_v62  ;;  %v783_v49 = vpop.f32.mrf.mxu1 }
 0x121   :  { %v784_v24 = vadd.f32 %v783_v49, %v696_v41  ;;  %v1163_v2 = vpop.f32.mrf.mxu0  ;;  %v597_v50 = vadd.f32 %v1061_v15, %v1590_v61 }
 0x122   :  { %v803_v39 = vmax.f32 %v752_v20, 0.0  ;;  %v1179_v4 = vpop.f32.mrf.mxu1  ;;  %v1064_v20 = vadd.f32 %v1581_v40, %v1577_v38 }
 0x123   :  { %v811_v21 = vmax.f32 %v784_v24, 0.0  ;;  %v756_v7 = vpop.f32.mrf.mxu0 }
 0x124   :  { %v993_v25 = vpack.c.bf16 %v803_v39, %v802_v3  ;;  %v788_v51 = vpop.f32.mrf.mxu1  ;;  %v757_v57 = vadd.f32 %v756_v7, %v669_v8  ;;  %v600_v2 = vadd.f32 %v1064_v20, %v1590_v61  ;;  %v1122_v3 = vadd.f32 %v1657_v56, %v1656_v54 }
 0x125   :  { %v1013_v53 = vpack.c.bf16 %v811_v21, %v810_v19  ;;  %v1166_v10 = vpop.f32.mrf.mxu0  ;;  %v789_v28 = vadd.f32 %v788_v51, %v701_v9  ;;  %v685_v21 = vadd.f32 %v1119_v52, %v597_v50 }
 0x126   :  { %994 = vst [vmem:[%s1653_s3] sm:$0xff] %v993_v25   ;;  %v1182_v58 = vpop.f32.mrf.mxu1  ;;  %v804_v1 = vmax.f32 %v757_v57, 0.0  ;;  %v688_v61 = vadd.f32 %v1122_v3, %v600_v2 }
 0x127   :  { %1023 = vst [vmem:[%s1653_s3 + $0x20] sm:$0xff] %v1013_v53   ;;  %v759_v42 = vpop.f32.mrf.mxu0  ;;  %v812_v43 = vmax.f32 %v789_v28, 0.0 }
 0x128   :  { %v760_v14 = vadd.f32 %v759_v42, %v672_v63  ;;  %v791_v16 = vpop.f32.mrf.mxu1 }
 0x129   :  { %v792_v46 = vadd.f32 %v791_v16, %v704_v44  ;;  %v1167_v48 = vpop.f32.mrf.mxu0 }
 0x12a   :  { %v805_v11 = vmax.f32 %v760_v14, 0.0  ;;  %v1183_v13 = vpop.f32.mrf.mxu1 }
 0x12b   :  { %v813_v45 = vmax.f32 %v792_v46, 0.0  ;;  %v764_v62 = vpop.f32.mrf.mxu0 }
 0x12c   :  { %v998_v27 = vpack.c.bf16 %v805_v11, %v804_v1  ;;  %v796_v17 = vpop.f32.mrf.mxu1  ;;  %v765_v31 = vadd.f32 %v764_v62, %v677_v29 }
 0x12d   :  { %v1018_v41 = vpack.c.bf16 %v813_v45, %v812_v43  ;;  %v797_v47 = vadd.f32 %v796_v17, %v709_v0  ;;  %v1170_v18 = vpop.f32.mrf.mxu0 }
 0x12e   :  { %1020 = vst [vmem:[%s1653_s3 + $0x8] sm:$0xff] %v998_v27   ;;  %v1186_v49 = vpop.f32.mrf.mxu1  ;;  %v806_v39 = vmax.f32 %v765_v31, 0.0 }
 0x12f   :  { %1024 = vst [vmem:[%s1653_s3 + $0x28] sm:$0xff] %v1018_v41   ;;  %v814_v34 = vmax.f32 %v797_v47, 0.0  ;;  %v767_v36 = vpop.f32.mrf.mxu0 }
 0x130   :  { %v768_v22 = vadd.f32 %v767_v36, %v680_v33  ;;  %v799_v38 = vpop.f32.mrf.mxu1 }
 0x131   :  { %v989_v40 = vpack.c.bf16 %v814_v34, %v814_v34  ;;  %v1171_v24 = vpop.f32.mrf.mxu0 }
 0x132   :  { %v807_v4 = vmax.f32 %v768_v22, 0.0  ;;  %v1187_v5 = vpop.f32.mrf.mxu1 }
 0x133   :  { %880 = vst [vmem:[%s1653_s3 + $0x30] sm:$0xf] %v989_v40  ;;  %v772_v6 = vpop.f32.mrf.mxu0 }
 0x134   :  { %v1003_v19 = vpack.c.bf16 %v807_v4, %v806_v39  ;;  %v773_v37 = vadd.f32 %v772_v6, %v685_v21 }
 0x135   :  { %v1174_v35 = vpop.f32.mrf.mxu0 }
 0x136   :  { %1021 = vst [vmem:[%s1653_s3 + $0x10] sm:$0xff] %v1003_v19   ;;  %v808_v8 = vmax.f32 %v773_v37, 0.0 }
 0x137   :  { %v775_v7 = vpop.f32.mrf.mxu0 }
 0x138   :  { %v776_v23 = vadd.f32 %v775_v7, %v688_v61 }
 0x139   :  { %v1175_v25 = vpop.f32.mrf.mxu0 }
 0x13a   :  { %v809_v51 = vmax.f32 %v776_v23, 0.0 }
 0x13c   :  { %v1008_v53 = vpack.c.bf16 %v809_v51, %v808_v8 }
 0x13e   :  { %1022 = vst [vmem:[%s1653_s3 + $0x18] sm:$0xff] %v1008_v53  }

// kernel: dqn_forward.7
= control target key start
LH: loop header
LB: loop body
LE: loop exit
PB: predicated region body
PF: predicated region fallthrough
CT: control target
= control target key end

     0   :  { %vm4847_vm0 = vcmask 523264   ;;  %s11144_s1 = inlined_call_operand.vmem [shape: bf16[3136,512], index: 1, kind: input, shape index: {}]   ;;  %s11145_s0 = inlined_call_operand.vmem [shape: bf16[8,3136], index: 0, kind: input, shape index: {}]   ;;  %s11146_s2 = inlined_call_operand.vmem [shape: f32[1,512], index: 2, kind: input, shape index: {}]   ;;  %s11147_s3 = inlined_call_operand.vmem [shape: bf16[512,128], index: 3, kind: input, shape index: {}]   ;;  %s11148_s4 = inlined_call_operand.vmem [shape: f32[1,128], index: 4, kind: input, shape index: {}]   ;;  %s11149_s5 = inlined_call_operand.vmem [shape: f32[8,128], index: 5, kind: output, shape index: {}]  }
   0x1   :  { %v7162_v0 = vld [vmem:[%s11144_s1 + $0xe4] ss:$16 sps:$4 sm:$0xff]   ;;  %v7166_v2 = vld [vmem:[%s11144_s1 + $0xe0] ss:$16 sps:$4 sm:$0xff]   ;;  %v22_v48 = vld [vmem:[%s11145_s0 + $0x8] sm:$0xff] }
   0x2   :  { %v7164_v1 = vld [vmem:[%s11144_s1 + $0x2e4] ss:$16 sps:$4 sm:$0xff]   ;;  %4851 = vmatprep.subr.bf16.mxu0 %v7162_v0  ;;  %v7167_v3 = vld [vmem:[%s11144_s1 + $0x2e0] ss:$16 sps:$4 sm:$0xff]   ;;  %v8580_v51 = vcombine.high %v22_v48, %v22_v48 }
   0x3   :  { %4892 = vmatprep.subr.bf16.mxu1 %v7164_v1  ;;  %v7168_v4 = vld [vmem:[%s11144_s1 + $0xc4] ss:$16 sps:$4 sm:$0xff]   ;;  %4852 = vmatpush1.bf16.msra.mxu0 %v7166_v2  ;;  %v7172_v6 = vld [vmem:[%s11144_s1 + $0xc0] ss:$16 sps:$4 sm:$0xff]  }
   0x4   :  { %4893 = vmatpush1.bf16.msra.mxu1 %v7167_v3  ;;  %v7170_v5 = vld [vmem:[%s11144_s1 + $0x2c4] ss:$16 sps:$4 sm:$0xff]   ;;  %4853 = vmatprep.subr.bf16.mxu0 %v7168_v4  ;;  %v7173_v7 = vld [vmem:[%s11144_s1 + $0x2c0] ss:$16 sps:$4 sm:$0xff]  }
   0x5   :  { %4894 = vmatprep.subr.bf16.mxu1 %v7170_v5  ;;  %v7174_v8 = vld [vmem:[%s11144_s1 + $0xa4] ss:$16 sps:$4 sm:$0xff]   ;;  %v7178_v10 = vld [vmem:[%s11144_s1 + $0xa0] ss:$16 sps:$4 sm:$0xff]   ;;  %4924 = vmatprep.mubr.bf16.mxu1 %v8580_v51 }
   0x6   :  { %v7176_v9 = vld [vmem:[%s11144_s1 + $0x2a4] ss:$16 sps:$4 sm:$0xff]   ;;  %v7179_v11 = vld [vmem:[%s11144_s1 + $0x2a0] ss:$16 sps:$4 sm:$0xff]  }
   0x7   :  { %4854 = vmatpush1.bf16.msra.mxu0 %v7172_v6  ;;  %v7180_v12 = vld [vmem:[%s11144_s1 + $0x84] ss:$16 sps:$4 sm:$0xff]   ;;  %v7184_v14 = vld [vmem:[%s11144_s1 + $0x80] ss:$16 sps:$4 sm:$0xff]  }
   0x8   :  { %4895 = vmatpush1.bf16.msra.mxu1 %v7173_v7  ;;  %4855 = vmatprep.subr.bf16.mxu0 %v7174_v8  ;;  %v7182_v13 = vld [vmem:[%s11144_s1 + $0x284] ss:$16 sps:$4 sm:$0xff]   ;;  %v7185_v15 = vld [vmem:[%s11144_s1 + $0x280] ss:$16 sps:$4 sm:$0xff]   ;;  %v8640_v7 = vcombine.low %v22_v48, %v22_v48 }
   0x9   :  { %4896 = vmatprep.subr.bf16.mxu1 %v7176_v9  ;;  %v7186_v16 = vld [vmem:[%s11144_s1 + $0x64] ss:$16 sps:$4 sm:$0xff]   ;;  %v7190_v18 = vld [vmem:[%s11144_s1 + $0x60] ss:$16 sps:$4 sm:$0xff]  }
   0xa   :  { %v7188_v17 = vld [vmem:[%s11144_s1 + $0x264] ss:$16 sps:$4 sm:$0xff]   ;;  %v7191_v19 = vld [vmem:[%s11144_s1 + $0x260] ss:$16 sps:$4 sm:$0xff]  }
   0xb   :  { %4856 = vmatpush1.bf16.msra.mxu0 %v7178_v10  ;;  %v7192_v20 = vld [vmem:[%s11144_s1 + $0x44] ss:$16 sps:$4 sm:$0xff]   ;;  %v7196_v22 = vld [vmem:[%s11144_s1 + $0x40] ss:$16 sps:$4 sm:$0xff]  }
   0xc   :  { %4897 = vmatpush1.bf16.msra.mxu1 %v7179_v11  ;;  %4857 = vmatprep.subr.bf16.mxu0 %v7180_v12  ;;  %v7194_v21 = vld [vmem:[%s11144_s1 + $0x244] ss:$16 sps:$4 sm:$0xff]   ;;  %v7197_v23 = vld [vmem:[%s11144_s1 + $0x240] ss:$16 sps:$4 sm:$0xff]  }
   0xd   :  { %4898 = vmatprep.subr.bf16.mxu1 %v7182_v13  ;;  %v7198_v24 = vld [vmem:[%s11144_s1 + $0x24] ss:$16 sps:$4 sm:$0xff]   ;;  %v7202_v26 = vld [vmem:[%s11144_s1 + $0x20] ss:$16 sps:$4 sm:$0xff]  }
   0xe   :  { %v7200_v25 = vld [vmem:[%s11144_s1 + $0x224] ss:$16 sps:$4 sm:$0xff]   ;;  %v7203_v27 = vld [vmem:[%s11144_s1 + $0x220] ss:$16 sps:$4 sm:$0xff]  }
   0xf   :  { %4858 = vmatpush1.bf16.msra.mxu0 %v7184_v14  ;;  %v7204_v28 = vld [vmem:[%s11144_s1 + $0x4] ss:$16 sps:$4 sm:$0xff]   ;;  %v7208_v30 = vld [vmem:[%s11144_s1] ss:$16 sps:$4 sm:$0xff]  }
  0x10   :  { %4899 = vmatpush1.bf16.msra.mxu1 %v7185_v15  ;;  %4859 = vmatprep.subr.bf16.mxu0 %v7186_v16  ;;  %v7206_v29 = vld [vmem:[%s11144_s1 + $0x204] ss:$16 sps:$4 sm:$0xff]   ;;  %v7209_v31 = vld [vmem:[%s11144_s1 + $0x200] ss:$16 sps:$4 sm:$0xff]  }
  0x11   :  { %4900 = vmatprep.subr.bf16.mxu1 %v7188_v17  ;;  %v7210_v32 = vld [vmem:[%s11144_s1 + $0x1e4] ss:$16 sps:$4 sm:$0xff]   ;;  %v7214_v34 = vld [vmem:[%s11144_s1 + $0x1e0] ss:$16 sps:$4 sm:$0xff]  }
  0x12   :  { %v7212_v33 = vld [vmem:[%s11144_s1 + $0x3e4] ss:$16 sps:$4 sm:$0xff]   ;;  %v7215_v35 = vld [vmem:[%s11144_s1 + $0x3e0] ss:$16 sps:$4 sm:$0xff]  }
  0x13   :  { %4860 = vmatpush1.bf16.msra.mxu0 %v7190_v18  ;;  %v7216_v36 = vld [vmem:[%s11144_s1 + $0x1c4] ss:$16 sps:$4 sm:$0xff]   ;;  %v7220_v38 = vld [vmem:[%s11144_s1 + $0x1c0] ss:$16 sps:$4 sm:$0xff]  }
  0x14   :  { %4901 = vmatpush1.bf16.msra.mxu1 %v7191_v19  ;;  %4861 = vmatprep.subr.bf16.mxu0 %v7192_v20  ;;  %v7218_v37 = vld [vmem:[%s11144_s1 + $0x3c4] ss:$16 sps:$4 sm:$0xff]   ;;  %v7221_v39 = vld [vmem:[%s11144_s1 + $0x3c0] ss:$16 sps:$4 sm:$0xff]  }
  0x15   :  { %4902 = vmatprep.subr.bf16.mxu1 %v7194_v21  ;;  %v7222_v40 = vld [vmem:[%s11144_s1 + $0x1a4] ss:$16 sps:$4 sm:$0xff]   ;;  %v7226_v42 = vld [vmem:[%s11144_s1 + $0x1a0] ss:$16 sps:$4 sm:$0xff]  }
  0x16   :  { %v7224_v41 = vld [vmem:[%s11144_s1 + $0x3a4] ss:$16 sps:$4 sm:$0xff]   ;;  %v7227_v43 = vld [vmem:[%s11144_s1 + $0x3a0] ss:$16 sps:$4 sm:$0xff]  }
  0x17   :  { %4862 = vmatpush1.bf16.msra.mxu0 %v7196_v22  ;;  %v7228_v44 = vld [vmem:[%s11144_s1 + $0x184] ss:$16 sps:$4 sm:$0xff]   ;;  %v7232_v49 = vld [vmem:[%s11144_s1 + $0x180] ss:$16 sps:$4 sm:$0xff]  }
  0x18   :  { %4903 = vmatpush1.bf16.msra.mxu1 %v7197_v23  ;;  %4863 = vmatprep.subr.bf16.mxu0 %v7198_v24  ;;  %v7230_v45 = vld [vmem:[%s11144_s1 + $0x384] ss:$16 sps:$4 sm:$0xff]   ;;  %v7233_v50 = vld [vmem:[%s11144_s1 + $0x380] ss:$16 sps:$4 sm:$0xff]  }
  0x19   :  { %4904 = vmatprep.subr.bf16.mxu1 %v7200_v25  ;;  %v21_v46 = vld [vmem:[%s11145_s0] sm:$0xff] }
  0x1a   :  { %v8569_v47 = vcombine.high %v21_v46, %v21_v46  ;;  %v7234_v52 = vld [vmem:[%s11144_s1 + $0x164] ss:$16 sps:$4 sm:$0xff]   ;;  %v7238_v54 = vld [vmem:[%s11144_s1 + $0x160] ss:$16 sps:$4 sm:$0xff]   ;;  %v8638_v6 = vcombine.low %v21_v46, %v21_v46 }
  0x1b   :  { %4864 = vmatpush1.bf16.msra.mxu0 %v7202_v26  ;;  %v7236_v53 = vld [vmem:[%s11144_s1 + $0x364] ss:$16 sps:$4 sm:$0xff]   ;;  %v7239_v55 = vld [vmem:[%s11144_s1 + $0x360] ss:$16 sps:$4 sm:$0xff]  }
  0x1c   :  { %4905 = vmatpush1.bf16.msra.mxu1 %v7203_v27  ;;  %4865 = vmatprep.subr.bf16.mxu0 %v7204_v28  ;;  %v7240_v56 = vld [vmem:[%s11144_s1 + $0x144] ss:$16 sps:$4 sm:$0xff]   ;;  %v7244_v58 = vld [vmem:[%s11144_s1 + $0x140] ss:$16 sps:$4 sm:$0xff]  }
  0x1d   :  { %4906 = vmatprep.subr.bf16.mxu1 %v7206_v29  ;;  %4883 = vmatprep.mubr.bf16.mxu0 %v8569_v47  ;;  %v7242_v57 = vld [vmem:[%s11144_s1 + $0x344] ss:$16 sps:$4 sm:$0xff]   ;;  %v7245_v59 = vld [vmem:[%s11144_s1 + $0x340] ss:$16 sps:$4 sm:$0xff]  }
  0x1e   :  { %v7246_v60 = vld [vmem:[%s11144_s1 + $0x124] ss:$16 sps:$4 sm:$0xff]   ;;  %v7250_v62 = vld [vmem:[%s11144_s1 + $0x120] ss:$16 sps:$4 sm:$0xff]  }
  0x1f   :  { %4866 = vmatpush1.bf16.msra.mxu0 %v7208_v30  ;;  %v7248_v61 = vld [vmem:[%s11144_s1 + $0x324] ss:$16 sps:$4 sm:$0xff]   ;;  %v7251_v63 = vld [vmem:[%s11144_s1 + $0x320] ss:$16 sps:$4 sm:$0xff]  }
  0x20   :  { %4907 = vmatpush1.bf16.msra.mxu1 %v7209_v31  ;;  %4867 = vmatprep.subr.bf16.mxu0 %v7210_v32  ;;  %v7252_v0 = vld [vmem:[%s11144_s1 + $0x104] ss:$16 sps:$4 sm:$0xff]   ;;  %v7256_v2 = vld [vmem:[%s11144_s1 + $0x100] ss:$16 sps:$4 sm:$0xff]  }
  0x21   :  { %4908 = vmatprep.subr.bf16.mxu1 %v7212_v33  ;;  %v7254_v1 = vld [vmem:[%s11144_s1 + $0x304] ss:$16 sps:$4 sm:$0xff]   ;;  %v7257_v3 = vld [vmem:[%s11144_s1 + $0x300] ss:$16 sps:$4 sm:$0xff]   ;;  %v8724_v33 = vld [vmem:[%s11145_s0 + $0x18] sm:$0xff] }
  0x22   :  { %v7264_v4 = vld [vmem:[%s11144_s1 + $0x4e4] ss:$16 sps:$4 sm:$0xff]   ;;  %v7262_v8 = vld [vmem:[%s11144_s1 + $0x4e0] ss:$16 sps:$4 sm:$0xff]  }
  0x23   :  { %4868 = vmatpush2.bf16.msra.mxu0 %v7214_v34  ;;  %v7267_v5 = vld [vmem:[%s11144_s1 + $0x6e4] ss:$16 sps:$4 sm:$0xff]   ;;  %v7265_v9 = vld [vmem:[%s11144_s1 + $0x6e0] ss:$16 sps:$4 sm:$0xff]  }
  0x24   :  { %4909 = vmatpush2.bf16.msra.mxu1 %v7215_v35  ;;  %4869 = vmatprep.subr.bf16.mxu0 %v7216_v36  ;;  %v7270_v10 = vld [vmem:[%s11144_s1 + $0x4c4] ss:$16 sps:$4 sm:$0xff]   ;;  %v7268_v12 = vld [vmem:[%s11144_s1 + $0x4c0] ss:$16 sps:$4 sm:$0xff]  }
  0x25   :  { %4910 = vmatprep.subr.bf16.mxu1 %v7218_v37  ;;  %v7273_v11 = vld [vmem:[%s11144_s1 + $0x6c4] ss:$16 sps:$4 sm:$0xff]   ;;  %v7271_v13 = vld [vmem:[%s11144_s1 + $0x6c0] ss:$16 sps:$4 sm:$0xff]   ;;  %v8738_v37 = vcombine.high %v8724_v33, %v8724_v33 }
  0x26   :  { %v7276_v14 = vld [vmem:[%s11144_s1 + $0x4a4] ss:$16 sps:$4 sm:$0xff]   ;;  %v7274_v16 = vld [vmem:[%s11144_s1 + $0x4a0] ss:$16 sps:$4 sm:$0xff]  }
  0x27   :  { %4870 = vmatpush2.bf16.msra.mxu0 %v7220_v38  ;;  %v7279_v15 = vld [vmem:[%s11144_s1 + $0x6a4] ss:$16 sps:$4 sm:$0xff]   ;;  %v7277_v17 = vld [vmem:[%s11144_s1 + $0x6a0] ss:$16 sps:$4 sm:$0xff]  }
  0x28   :  { %4911 = vmatpush2.bf16.msra.mxu1 %v7221_v39  ;;  %4871 = vmatprep.subr.bf16.mxu0 %v7222_v40  ;;  %v7282_v18 = vld [vmem:[%s11144_s1 + $0x484] ss:$16 sps:$4 sm:$0xff]   ;;  %v7280_v20 = vld [vmem:[%s11144_s1 + $0x480] ss:$16 sps:$4 sm:$0xff]  }
  0x29   :  { %4912 = vmatprep.subr.bf16.mxu1 %v7224_v41  ;;  %v7285_v19 = vld [vmem:[%s11144_s1 + $0x684] ss:$16 sps:$4 sm:$0xff]   ;;  %v7283_v21 = vld [vmem:[%s11144_s1 + $0x680] ss:$16 sps:$4 sm:$0xff]  }
  0x2a   :  { %v7288_v22 = vld [vmem:[%s11144_s1 + $0x464] ss:$16 sps:$4 sm:$0xff]   ;;  %v7286_v24 = vld [vmem:[%s11144_s1 + $0x460] ss:$16 sps:$4 sm:$0xff]  }
  0x2b   :  { %4872 = vmatpush2.bf16.msra.mxu0 %v7226_v42  ;;  %v7291_v23 = vld [vmem:[%s11144_s1 + $0x664] ss:$16 sps:$4 sm:$0xff]   ;;  %v7289_v25 = vld [vmem:[%s11144_s1 + $0x660] ss:$16 sps:$4 sm:$0xff]  }
  0x2c   :  { %4913 = vmatpush2.bf16.msra.mxu1 %v7227_v43  ;;  %4873 = vmatprep.subr.bf16.mxu0 %v7228_v44  ;;  %v7294_v26 = vld [vmem:[%s11144_s1 + $0x444] ss:$16 sps:$4 sm:$0xff]   ;;  %v7292_v28 = vld [vmem:[%s11144_s1 + $0x440] ss:$16 sps:$4 sm:$0xff]  }
  0x2d   :  { %4914 = vmatprep.subr.bf16.mxu1 %v7230_v45  ;;  %v7297_v27 = vld [vmem:[%s11144_s1 + $0x644] ss:$16 sps:$4 sm:$0xff]   ;;  %v7295_v29 = vld [vmem:[%s11144_s1 + $0x640] ss:$16 sps:$4 sm:$0xff]  }
  0x2e   :  { %v7300_v30 = vld [vmem:[%s11144_s1 + $0x424] ss:$16 sps:$4 sm:$0xff]   ;;  %v7298_v34 = vld [vmem:[%s11144_s1 + $0x420] ss:$16 sps:$4 sm:$0xff]  }
  0x2f   :  { %4874 = vmatpush2.bf16.msra.mxu0 %v7232_v49  ;;  %v7303_v31 = vld [vmem:[%s11144_s1 + $0x624] ss:$16 sps:$4 sm:$0xff]   ;;  %v7301_v35 = vld [vmem:[%s11144_s1 + $0x620] ss:$16 sps:$4 sm:$0xff]  }
  0x30   :  { %4915 = vmatpush2.bf16.msra.mxu1 %v7233_v50  ;;  %4875 = vmatprep.subr.bf16.mxu0 %v7234_v52  ;;  %v8719_v32 = vld [vmem:[%s11145_s0 + $0x10] sm:$0xff] }
  0x31   :  { %4916 = vmatprep.subr.bf16.mxu1 %v7236_v53  ;;  %v8734_v36 = vcombine.high %v8719_v32, %v8719_v32  ;;  %v7306_v38 = vld [vmem:[%s11144_s1 + $0x404] ss:$16 sps:$4 sm:$0xff]   ;;  %v7304_v40 = vld [vmem:[%s11144_s1 + $0x400] ss:$16 sps:$4 sm:$0xff]  }
  0x32   :  { %v7309_v39 = vld [vmem:[%s11144_s1 + $0x604] ss:$16 sps:$4 sm:$0xff]   ;;  %v7307_v41 = vld [vmem:[%s11144_s1 + $0x600] ss:$16 sps:$4 sm:$0xff]  }
  0x33   :  { %4876 = vmatpush2.bf16.msra.mxu0 %v7238_v54  ;;  %v7312_v42 = vld [vmem:[%s11144_s1 + $0x5e4] ss:$16 sps:$4 sm:$0xff]   ;;  %v7310_v44 = vld [vmem:[%s11144_s1 + $0x5e0] ss:$16 sps:$4 sm:$0xff]  }
  0x34   :  { %4917 = vmatpush2.bf16.msra.mxu1 %v7239_v55  ;;  %4877 = vmatprep.subr.bf16.mxu0 %v7240_v56  ;;  %v7315_v43 = vld [vmem:[%s11144_s1 + $0x7e4] ss:$16 sps:$4 sm:$0xff]   ;;  %v7313_v45 = vld [vmem:[%s11144_s1 + $0x7e0] ss:$16 sps:$4 sm:$0xff]  }
  0x35   :  { %4918 = vmatprep.subr.bf16.mxu1 %v7242_v57  ;;  %v7318_v46 = vld [vmem:[%s11144_s1 + $0x5c4] ss:$16 sps:$4 sm:$0xff]   ;;  %v7316_v49 = vld [vmem:[%s11144_s1 + $0x5c0] ss:$16 sps:$4 sm:$0xff]  }
  0x36   :  { %v7321_v48 = vld [vmem:[%s11144_s1 + $0x7c4] ss:$16 sps:$4 sm:$0xff]   ;;  %v7319_v50 = vld [vmem:[%s11144_s1 + $0x7c0] ss:$16 sps:$4 sm:$0xff]  }
  0x37   :  { %4878 = vmatpush2.bf16.msra.mxu0 %v7244_v58  ;;  %v7324_v52 = vld [vmem:[%s11144_s1 + $0x5a4] ss:$16 sps:$4 sm:$0xff]   ;;  %v7322_v54 = vld [vmem:[%s11144_s1 + $0x5a0] ss:$16 sps:$4 sm:$0xff]  }
  0x38   :  { %4919 = vmatpush2.bf16.msra.mxu1 %v7245_v59  ;;  %4879 = vmatprep.subr.bf16.mxu0 %v7246_v60  ;;  %v7327_v53 = vld [vmem:[%s11144_s1 + $0x7a4] ss:$16 sps:$4 sm:$0xff]   ;;  %v7325_v55 = vld [vmem:[%s11144_s1 + $0x7a0] ss:$16 sps:$4 sm:$0xff]  }
  0x39   :  { %4920 = vmatprep.subr.bf16.mxu1 %v7248_v61  ;;  %v7330_v56 = vld [vmem:[%s11144_s1 + $0x584] ss:$16 sps:$4 sm:$0xff]   ;;  %v7328_v58 = vld [vmem:[%s11144_s1 + $0x580] ss:$16 sps:$4 sm:$0xff]  }
  0x3a   :  { %v7333_v57 = vld [vmem:[%s11144_s1 + $0x784] ss:$16 sps:$4 sm:$0xff]   ;;  %v7331_v59 = vld [vmem:[%s11144_s1 + $0x780] ss:$16 sps:$4 sm:$0xff]  }
  0x3b   :  { %4880 = vmatpush2.bf16.msra.mxu0 %v7250_v62  ;;  %v7336_v60 = vld [vmem:[%s11144_s1 + $0x564] ss:$16 sps:$4 sm:$0xff]   ;;  %v7334_v62 = vld [vmem:[%s11144_s1 + $0x560] ss:$16 sps:$4 sm:$0xff]  }
  0x3c   :  { %4921 = vmatpush2.bf16.msra.mxu1 %v7251_v63  ;;  %4881 = vmatprep.subr.bf16.mxu0 %v7252_v0  ;;  %v7339_v61 = vld [vmem:[%s11144_s1 + $0x764] ss:$16 sps:$4 sm:$0xff]   ;;  %v7337_v63 = vld [vmem:[%s11144_s1 + $0x760] ss:$16 sps:$4 sm:$0xff]  }
  0x3d   :  { %4922 = vmatprep.subr.bf16.mxu1 %v7254_v1  ;;  %v7342_v0 = vld [vmem:[%s11144_s1 + $0x544] ss:$16 sps:$4 sm:$0xff]  }
  0x3e   :  { %v7345_v1 = vld [vmem:[%s11144_s1 + $0x744] ss:$16 sps:$4 sm:$0xff]  }
  0x3f   :  { %4882 = vmatpush2.bf16.msra.mxu0 %v7256_v2  ;;  %v7340_v2 = vld [vmem:[%s11144_s1 + $0x540] ss:$16 sps:$4 sm:$0xff]  }
  0x40   :  { %4923 = vmatpush2.bf16.msra.mxu1 %v7257_v3  ;;  %4933 = vmatprep.subr.bf16.mxu0 %v7264_v4  ;;  %v7343_v3 = vld [vmem:[%s11144_s1 + $0x740] ss:$16 sps:$4 sm:$0xff]   ;;  %v7348_v4 = vld [vmem:[%s11144_s1 + $0x524] ss:$16 sps:$4 sm:$0xff]  }
  0x41   :  { %4974 = vmatprep.subr.bf16.mxu1 %v7267_v5  ;;  %v7351_v5 = vld [vmem:[%s11144_s1 + $0x724] ss:$16 sps:$4 sm:$0xff]  }
  0x42   :  { %4884 = vmatmul.mubr.bf16.vlgmr.msra.gmra.mxu0 %v8638_v6 }
  0x43   :  { %4925 = vmatmul.mubr.bf16.vlgmr.msra.gmra.mxu1 %v8640_v7  ;;  %4934 = vmatpush1.bf16.msra.mxu0 %v7262_v8  ;;  %v7346_v8 = vld [vmem:[%s11144_s1 + $0x520] ss:$16 sps:$4 sm:$0xff]  }
  0x44   :  { %4975 = vmatpush1.bf16.msra.mxu1 %v7265_v9  ;;  %4935 = vmatprep.subr.bf16.mxu0 %v7270_v10  ;;  %v7349_v9 = vld [vmem:[%s11144_s1 + $0x720] ss:$16 sps:$4 sm:$0xff]   ;;  %v7354_v10 = vld [vmem:[%s11144_s1 + $0x504] ss:$16 sps:$4 sm:$0xff]  }
  0x45   :  { %4976 = vmatprep.subr.bf16.mxu1 %v7273_v11  ;;  %4965 = vmatprep.mubr.bf16.mxu0 %v8734_v36  ;;  %v7357_v11 = vld [vmem:[%s11144_s1 + $0x704] ss:$16 sps:$4 sm:$0xff]  }
  0x46   :  { %5006 = vmatprep.mubr.bf16.mxu1 %v8738_v37 }
  0x47   :  { %4936 = vmatpush1.bf16.msra.mxu0 %v7268_v12  ;;  %v7352_v12 = vld [vmem:[%s11144_s1 + $0x500] ss:$16 sps:$4 sm:$0xff]  }
  0x48   :  { %4977 = vmatpush1.bf16.msra.mxu1 %v7271_v13  ;;  %4937 = vmatprep.subr.bf16.mxu0 %v7276_v14  ;;  %v7355_v13 = vld [vmem:[%s11144_s1 + $0x700] ss:$16 sps:$4 sm:$0xff]   ;;  %v7364_v14 = vld [vmem:[%s11144_s1 + $0x8e4] ss:$16 sps:$4 sm:$0xff]  }
  0x49   :  { %4978 = vmatprep.subr.bf16.mxu1 %v7279_v15  ;;  %v7367_v15 = vld [vmem:[%s11144_s1 + $0xae4] ss:$16 sps:$4 sm:$0xff]  }
  0x4b   :  { %4938 = vmatpush1.bf16.msra.mxu0 %v7274_v16  ;;  %v8858_v16 = vcombine.low %v8719_v32, %v8719_v32  ;;  %v7382_v32 = vld [vmem:[%s11144_s1 + $0x884] ss:$16 sps:$4 sm:$0xff]  }
  0x4c   :  { %4979 = vmatpush1.bf16.msra.mxu1 %v7277_v17  ;;  %4939 = vmatprep.subr.bf16.mxu0 %v7282_v18  ;;  %v8862_v17 = vcombine.low %v8724_v33, %v8724_v33  ;;  %v7362_v18 = vld [vmem:[%s11144_s1 + $0x8e0] ss:$16 sps:$4 sm:$0xff]   ;;  %v7385_v33 = vld [vmem:[%s11144_s1 + $0xa84] ss:$16 sps:$4 sm:$0xff]  }
  0x4d   :  { %4980 = vmatprep.subr.bf16.mxu1 %v7285_v19  ;;  %v7365_v19 = vld [vmem:[%s11144_s1 + $0xae0] ss:$16 sps:$4 sm:$0xff]  }
  0x4f   :  { %4940 = vmatpush1.bf16.msra.mxu0 %v7280_v20  ;;  %v7370_v20 = vld [vmem:[%s11144_s1 + $0x8c4] ss:$16 sps:$4 sm:$0xff]  }
  0x50   :  { %4981 = vmatpush1.bf16.msra.mxu1 %v7283_v21  ;;  %4941 = vmatprep.subr.bf16.mxu0 %v7288_v22  ;;  %v7373_v21 = vld [vmem:[%s11144_s1 + $0xac4] ss:$16 sps:$4 sm:$0xff]  }
  0x51   :  { %4982 = vmatprep.subr.bf16.mxu1 %v7291_v23  ;;  %v8879_v22 = vld [vmem:[%s11145_s0 + $0x20] sm:$0xff]  ;;  %v8884_v23 = vld [vmem:[%s11145_s0 + $0x28] sm:$0xff] }
  0x53   :  { %4942 = vmatpush1.bf16.msra.mxu0 %v7286_v24  ;;  %v8888_v24 = vcombine.high %v8879_v22, %v8879_v22 }
  0x54   :  { %4983 = vmatpush1.bf16.msra.mxu1 %v7289_v25  ;;  %4943 = vmatprep.subr.bf16.mxu0 %v7294_v26  ;;  %v8892_v25 = vcombine.high %v8884_v23, %v8884_v23  ;;  %v7368_v26 = vld [vmem:[%s11144_s1 + $0x8c0] ss:$16 sps:$4 sm:$0xff]  }
  0x55   :  { %4984 = vmatprep.subr.bf16.mxu1 %v7297_v27  ;;  %v7371_v27 = vld [vmem:[%s11144_s1 + $0xac0] ss:$16 sps:$4 sm:$0xff]  }
  0x57   :  { %4944 = vmatpush1.bf16.msra.mxu0 %v7292_v28  ;;  %v7376_v28 = vld [vmem:[%s11144_s1 + $0x8a4] ss:$16 sps:$4 sm:$0xff]  }
  0x58   :  { %4985 = vmatpush1.bf16.msra.mxu1 %v7295_v29  ;;  %4945 = vmatprep.subr.bf16.mxu0 %v7300_v30  ;;  %v7379_v29 = vld [vmem:[%s11144_s1 + $0xaa4] ss:$16 sps:$4 sm:$0xff]   ;;  %v7374_v30 = vld [vmem:[%s11144_s1 + $0x8a0] ss:$16 sps:$4 sm:$0xff]  }
  0x59   :  { %4986 = vmatprep.subr.bf16.mxu1 %v7303_v31  ;;  %v7377_v31 = vld [vmem:[%s11144_s1 + $0xaa0] ss:$16 sps:$4 sm:$0xff]  }
  0x5b   :  { %4946 = vmatpush1.bf16.msra.mxu0 %v7298_v34  ;;  %v7380_v34 = vld [vmem:[%s11144_s1 + $0x880] ss:$16 sps:$4 sm:$0xff]  }
  0x5c   :  { %4987 = vmatpush1.bf16.msra.mxu1 %v7301_v35  ;;  %4947 = vmatprep.subr.bf16.mxu0 %v7306_v38  ;;  %v7383_v35 = vld [vmem:[%s11144_s1 + $0xa80] ss:$16 sps:$4 sm:$0xff]   ;;  %v7388_v38 = vld [vmem:[%s11144_s1 + $0x864] ss:$16 sps:$4 sm:$0xff]  }
  0x5d   :  { %4988 = vmatprep.subr.bf16.mxu1 %v7309_v39  ;;  %v7391_v39 = vld [vmem:[%s11144_s1 + $0xa64] ss:$16 sps:$4 sm:$0xff]  }
  0x5f   :  { %4948 = vmatpush1.bf16.msra.mxu0 %v7304_v40  ;;  %v7386_v40 = vld [vmem:[%s11144_s1 + $0x860] ss:$16 sps:$4 sm:$0xff]  }
  0x60   :  { %4989 = vmatpush1.bf16.msra.mxu1 %v7307_v41  ;;  %4949 = vmatprep.subr.bf16.mxu0 %v7312_v42  ;;  %v7389_v41 = vld [vmem:[%s11144_s1 + $0xa60] ss:$16 sps:$4 sm:$0xff]   ;;  %v7394_v42 = vld [vmem:[%s11144_s1 + $0x844] ss:$16 sps:$4 sm:$0xff]  }
  0x61   :  { %4990 = vmatprep.subr.bf16.mxu1 %v7315_v43  ;;  %v7397_v43 = vld [vmem:[%s11144_s1 + $0xa44] ss:$16 sps:$4 sm:$0xff]  }
  0x63   :  { %4950 = vmatpush2.bf16.msra.mxu0 %v7310_v44  ;;  %v7392_v44 = vld [vmem:[%s11144_s1 + $0x840] ss:$16 sps:$4 sm:$0xff]  }
  0x64   :  { %4991 = vmatpush2.bf16.msra.mxu1 %v7313_v45  ;;  %4951 = vmatprep.subr.bf16.mxu0 %v7318_v46  ;;  %v7395_v45 = vld [vmem:[%s11144_s1 + $0xa40] ss:$16 sps:$4 sm:$0xff]   ;;  %v7400_v46 = vld [vmem:[%s11144_s1 + $0x824] ss:$16 sps:$4 sm:$0xff]  }
  0x65   :  { %4992 = vmatprep.subr.bf16.mxu1 %v7321_v48  ;;  %v7403_v48 = vld [vmem:[%s11144_s1 + $0xa24] ss:$16 sps:$4 sm:$0xff]  }
  0x67   :  { %4952 = vmatpush2.bf16.msra.mxu0 %v7316_v49  ;;  %v7398_v49 = vld [vmem:[%s11144_s1 + $0x820] ss:$16 sps:$4 sm:$0xff]  }
  0x68   :  { %4993 = vmatpush2.bf16.msra.mxu1 %v7319_v50  ;;  %4953 = vmatprep.subr.bf16.mxu0 %v7324_v52  ;;  %v7401_v50 = vld [vmem:[%s11144_s1 + $0xa20] ss:$16 sps:$4 sm:$0xff]   ;;  %v7406_v52 = vld [vmem:[%s11144_s1 + $0x804] ss:$16 sps:$4 sm:$0xff]  }
  0x69   :  { %4994 = vmatprep.subr.bf16.mxu1 %v7327_v53  ;;  %v7409_v53 = vld [vmem:[%s11144_s1 + $0xa04] ss:$16 sps:$4 sm:$0xff]  }
  0x6b   :  { %4954 = vmatpush2.bf16.msra.mxu0 %v7322_v54  ;;  %v7404_v54 = vld [vmem:[%s11144_s1 + $0x800] ss:$16 sps:$4 sm:$0xff]  }
  0x6c   :  { %4995 = vmatpush2.bf16.msra.mxu1 %v7325_v55  ;;  %4955 = vmatprep.subr.bf16.mxu0 %v7330_v56  ;;  %v7407_v55 = vld [vmem:[%s11144_s1 + $0xa00] ss:$16 sps:$4 sm:$0xff]   ;;  %v7412_v56 = vld [vmem:[%s11144_s1 + $0x9e4] ss:$16 sps:$4 sm:$0xff]  }
  0x6d   :  { %4996 = vmatprep.subr.bf16.mxu1 %v7333_v57  ;;  %v7415_v57 = vld [vmem:[%s11144_s1 + $0xbe4] ss:$16 sps:$4 sm:$0xff]  }
  0x6f   :  { %4956 = vmatpush2.bf16.msra.mxu0 %v7328_v58  ;;  %v7410_v58 = vld [vmem:[%s11144_s1 + $0x9e0] ss:$16 sps:$4 sm:$0xff]  }
  0x70   :  { %4997 = vmatpush2.bf16.msra.mxu1 %v7331_v59  ;;  %4957 = vmatprep.subr.bf16.mxu0 %v7336_v60  ;;  %v7413_v59 = vld [vmem:[%s11144_s1 + $0xbe0] ss:$16 sps:$4 sm:$0xff]   ;;  %v7418_v60 = vld [vmem:[%s11144_s1 + $0x9c4] ss:$16 sps:$4 sm:$0xff]  }
  0x71   :  { %4998 = vmatprep.subr.bf16.mxu1 %v7339_v61  ;;  %v7421_v61 = vld [vmem:[%s11144_s1 + $0xbc4] ss:$16 sps:$4 sm:$0xff]  }
  0x73   :  { %4958 = vmatpush2.bf16.msra.mxu0 %v7334_v62  ;;  %v7416_v62 = vld [vmem:[%s11144_s1 + $0x9c0] ss:$16 sps:$4 sm:$0xff]  }
  0x74   :  { %4999 = vmatpush2.bf16.msra.mxu1 %v7337_v63  ;;  %4959 = vmatprep.subr.bf16.mxu0 %v7342_v0  ;;  %v7419_v63 = vld [vmem:[%s11144_s1 + $0xbc0] ss:$16 sps:$4 sm:$0xff]   ;;  %v7424_v0 = vld [vmem:[%s11144_s1 + $0x9a4] ss:$16 sps:$4 sm:$0xff]  }
  0x75   :  { %5000 = vmatprep.subr.bf16.mxu1 %v7345_v1  ;;  %v7427_v1 = vld [vmem:[%s11144_s1 + $0xba4] ss:$16 sps:$4 sm:$0xff]  }
  0x77   :  { %4960 = vmatpush2.bf16.msra.mxu0 %v7340_v2  ;;  %v7422_v2 = vld [vmem:[%s11144_s1 + $0x9a0] ss:$16 sps:$4 sm:$0xff]  }
  0x78   :  { %5001 = vmatpush2.bf16.msra.mxu1 %v7343_v3  ;;  %4961 = vmatprep.subr.bf16.mxu0 %v7348_v4  ;;  %v7425_v3 = vld [vmem:[%s11144_s1 + $0xba0] ss:$16 sps:$4 sm:$0xff]   ;;  %v7430_v4 = vld [vmem:[%s11144_s1 + $0x984] ss:$16 sps:$4 sm:$0xff]  }
  0x79   :  { %5002 = vmatprep.subr.bf16.mxu1 %v7351_v5  ;;  %v7433_v5 = vld [vmem:[%s11144_s1 + $0xb84] ss:$16 sps:$4 sm:$0xff]  }
  0x7b   :  { %4962 = vmatpush2.bf16.msra.mxu0 %v7346_v8  ;;  %v7428_v8 = vld [vmem:[%s11144_s1 + $0x980] ss:$16 sps:$4 sm:$0xff]  }
  0x7c   :  { %5003 = vmatpush2.bf16.msra.mxu1 %v7349_v9  ;;  %4963 = vmatprep.subr.bf16.mxu0 %v7354_v10  ;;  %v7431_v9 = vld [vmem:[%s11144_s1 + $0xb80] ss:$16 sps:$4 sm:$0xff]   ;;  %v7436_v10 = vld [vmem:[%s11144_s1 + $0x964] ss:$16 sps:$4 sm:$0xff]  }
  0x7d   :  { %5004 = vmatprep.subr.bf16.mxu1 %v7357_v11  ;;  %v7439_v11 = vld [vmem:[%s11144_s1 + $0xb64] ss:$16 sps:$4 sm:$0xff]  }
  0x7f   :  { %4964 = vmatpush2.bf16.msra.mxu0 %v7352_v12  ;;  %v7434_v12 = vld [vmem:[%s11144_s1 + $0x960] ss:$16 sps:$4 sm:$0xff]  }
  0x80   :  { %5005 = vmatpush2.bf16.msra.mxu1 %v7355_v13  ;;  %5015 = vmatprep.subr.bf16.mxu0 %v7364_v14  ;;  %v7437_v13 = vld [vmem:[%s11144_s1 + $0xb60] ss:$16 sps:$4 sm:$0xff]   ;;  %v7442_v14 = vld [vmem:[%s11144_s1 + $0x944] ss:$16 sps:$4 sm:$0xff]  }
  0x81   :  { %5056 = vmatprep.subr.bf16.mxu1 %v7367_v15  ;;  %v7445_v15 = vld [vmem:[%s11144_s1 + $0xb44] ss:$16 sps:$4 sm:$0xff]  }
  0x82   :  { %4966 = vmatmul.mubr.bf16.vlgmr.msra.gmra.mxu0 %v8858_v16 }
  0x83   :  { %5007 = vmatmul.mubr.bf16.vlgmr.msra.gmra.mxu1 %v8862_v17  ;;  %5016 = vmatpush1.bf16.msra.mxu0 %v7362_v18  ;;  %v7440_v18 = vld [vmem:[%s11144_s1 + $0x940] ss:$16 sps:$4 sm:$0xff]  }
  0x84   :  { %5057 = vmatpush1.bf16.msra.mxu1 %v7365_v19  ;;  %5017 = vmatprep.subr.bf16.mxu0 %v7370_v20  ;;  %v7443_v19 = vld [vmem:[%s11144_s1 + $0xb40] ss:$16 sps:$4 sm:$0xff]   ;;  %v7448_v20 = vld [vmem:[%s11144_s1 + $0x924] ss:$16 sps:$4 sm:$0xff]  }
  0x85   :  { %5058 = vmatprep.subr.bf16.mxu1 %v7373_v21  ;;  %5047 = vmatprep.mubr.bf16.mxu0 %v8888_v24  ;;  %v7451_v21 = vld [vmem:[%s11144_s1 + $0xb24] ss:$16 sps:$4 sm:$0xff]  }
  0x86   :  { %5088 = vmatprep.mubr.bf16.mxu1 %v8892_v25 }
  0x87   :  { %5018 = vmatpush1.bf16.msra.mxu0 %v7368_v26  ;;  %v7446_v26 = vld [vmem:[%s11144_s1 + $0x920] ss:$16 sps:$4 sm:$0xff]  }
  0x88   :  { %5059 = vmatpush1.bf16.msra.mxu1 %v7371_v27  ;;  %5019 = vmatprep.subr.bf16.mxu0 %v7376_v28  ;;  %v7449_v27 = vld [vmem:[%s11144_s1 + $0xb20] ss:$16 sps:$4 sm:$0xff]   ;;  %v7454_v28 = vld [vmem:[%s11144_s1 + $0x904] ss:$16 sps:$4 sm:$0xff]  }
  0x89   :  { %5060 = vmatprep.subr.bf16.mxu1 %v7379_v29  ;;  %v7457_v29 = vld [vmem:[%s11144_s1 + $0xb04] ss:$16 sps:$4 sm:$0xff]  }
  0x8b   :  { %5020 = vmatpush1.bf16.msra.mxu0 %v7374_v30  ;;  %v7452_v30 = vld [vmem:[%s11144_s1 + $0x900] ss:$16 sps:$4 sm:$0xff]  }
  0x8c   :  { %5061 = vmatpush1.bf16.msra.mxu1 %v7377_v31  ;;  %5021 = vmatprep.subr.bf16.mxu0 %v7382_v32  ;;  %v7455_v31 = vld [vmem:[%s11144_s1 + $0xb00] ss:$16 sps:$4 sm:$0xff]   ;;  %v7464_v32 = vld [vmem:[%s11144_s1 + $0xce4] ss:$16 sps:$4 sm:$0xff]  }
  0x8d   :  { %5062 = vmatprep.subr.bf16.mxu1 %v7385_v33  ;;  %v7467_v33 = vld [vmem:[%s11144_s1 + $0xee4] ss:$16 sps:$4 sm:$0xff]  }
  0x8f   :  { %5022 = vmatpush1.bf16.msra.mxu0 %v7380_v34  ;;  %v7462_v34 = vld [vmem:[%s11144_s1 + $0xce0] ss:$16 sps:$4 sm:$0xff]  }
  0x90   :  { %5063 = vmatpush1.bf16.msra.mxu1 %v7383_v35  ;;  %5023 = vmatprep.subr.bf16.mxu0 %v7388_v38  ;;  %v9084_v35 = vld [vmem:[%s11145_s0 + $0x30] sm:$0xff]  ;;  %v9088_v38 = vcombine.low %v8879_v22, %v8879_v22 }
  0x91   :  { %5064 = vmatprep.subr.bf16.mxu1 %v7391_v39  ;;  %v9092_v39 = vcombine.low %v8884_v23, %v8884_v23  ;;  %v7470_v22 = vld [vmem:[%s11144_s1 + $0xcc4] ss:$16 sps:$4 sm:$0xff]  }
  0x92   :  { %v7473_v23 = vld [vmem:[%s11144_s1 + $0xec4] ss:$16 sps:$4 sm:$0xff]  }
  0x93   :  { %5024 = vmatpush1.bf16.msra.mxu0 %v7386_v40  ;;  %v9097_v40 = vld [vmem:[%s11145_s0 + $0x38] sm:$0xff] }
  0x94   :  { %5065 = vmatpush1.bf16.msra.mxu1 %v7389_v41  ;;  %5025 = vmatprep.subr.bf16.mxu0 %v7394_v42  ;;  %v7465_v41 = vld [vmem:[%s11144_s1 + $0xee0] ss:$16 sps:$4 sm:$0xff]   ;;  %v9110_v42 = vcombine.high %v9084_v35, %v9084_v35 }
  0x95   :  { %5066 = vmatprep.subr.bf16.mxu1 %v7397_v43  ;;  %v9114_v43 = vcombine.high %v9097_v40, %v9097_v40 }
  0x97   :  { %5026 = vmatpush1.bf16.msra.mxu0 %v7392_v44  ;;  %v7468_v44 = vld [vmem:[%s11144_s1 + $0xcc0] ss:$16 sps:$4 sm:$0xff]  }
  0x98   :  { %5067 = vmatpush1.bf16.msra.mxu1 %v7395_v45  ;;  %5027 = vmatprep.subr.bf16.mxu0 %v7400_v46  ;;  %v7471_v45 = vld [vmem:[%s11144_s1 + $0xec0] ss:$16 sps:$4 sm:$0xff]   ;;  %v7476_v46 = vld [vmem:[%s11144_s1 + $0xca4] ss:$16 sps:$4 sm:$0xff]  }
  0x99   :  { %5068 = vmatprep.subr.bf16.mxu1 %v7403_v48  ;;  %v7479_v48 = vld [vmem:[%s11144_s1 + $0xea4] ss:$16 sps:$4 sm:$0xff]  }
  0x9b   :  { %5028 = vmatpush1.bf16.msra.mxu0 %v7398_v49  ;;  %v7474_v49 = vld [vmem:[%s11144_s1 + $0xca0] ss:$16 sps:$4 sm:$0xff]  }
  0x9c   :  { %5069 = vmatpush1.bf16.msra.mxu1 %v7401_v50  ;;  %5029 = vmatprep.subr.bf16.mxu0 %v7406_v52  ;;  %v7477_v50 = vld [vmem:[%s11144_s1 + $0xea0] ss:$16 sps:$4 sm:$0xff]   ;;  %v7482_v52 = vld [vmem:[%s11144_s1 + $0xc84] ss:$16 sps:$4 sm:$0xff]  }
  0x9d   :  { %5070 = vmatprep.subr.bf16.mxu1 %v7409_v53  ;;  %v7485_v53 = vld [vmem:[%s11144_s1 + $0xe84] ss:$16 sps:$4 sm:$0xff]  }
  0x9f   :  { %5030 = vmatpush1.bf16.msra.mxu0 %v7404_v54  ;;  %v7480_v54 = vld [vmem:[%s11144_s1 + $0xc80] ss:$16 sps:$4 sm:$0xff]  }
  0xa0   :  { %5071 = vmatpush1.bf16.msra.mxu1 %v7407_v55  ;;  %5031 = vmatprep.subr.bf16.mxu0 %v7412_v56  ;;  %v7483_v55 = vld [vmem:[%s11144_s1 + $0xe80] ss:$16 sps:$4 sm:$0xff]   ;;  %v7488_v56 = vld [vmem:[%s11144_s1 + $0xc64] ss:$16 sps:$4 sm:$0xff]  }
  0xa1   :  { %5072 = vmatprep.subr.bf16.mxu1 %v7415_v57  ;;  %v7491_v57 = vld [vmem:[%s11144_s1 + $0xe64] ss:$16 sps:$4 sm:$0xff]  }
  0xa3   :  { %5032 = vmatpush2.bf16.msra.mxu0 %v7410_v58  ;;  %v7486_v58 = vld [vmem:[%s11144_s1 + $0xc60] ss:$16 sps:$4 sm:$0xff]  }
  0xa4   :  { %5073 = vmatpush2.bf16.msra.mxu1 %v7413_v59  ;;  %5033 = vmatprep.subr.bf16.mxu0 %v7418_v60  ;;  %v7489_v59 = vld [vmem:[%s11144_s1 + $0xe60] ss:$16 sps:$4 sm:$0xff]   ;;  %v7494_v60 = vld [vmem:[%s11144_s1 + $0xc44] ss:$16 sps:$4 sm:$0xff]  }
  0xa5   :  { %5074 = vmatprep.subr.bf16.mxu1 %v7421_v61  ;;  %v7497_v61 = vld [vmem:[%s11144_s1 + $0xe44] ss:$16 sps:$4 sm:$0xff]  }
  0xa7   :  { %5034 = vmatpush2.bf16.msra.mxu0 %v7416_v62  ;;  %v7492_v62 = vld [vmem:[%s11144_s1 + $0xc40] ss:$16 sps:$4 sm:$0xff]  }
  0xa8   :  { %5075 = vmatpush2.bf16.msra.mxu1 %v7419_v63  ;;  %5035 = vmatprep.subr.bf16.mxu0 %v7424_v0  ;;  %v7495_v63 = vld [vmem:[%s11144_s1 + $0xe40] ss:$16 sps:$4 sm:$0xff]   ;;  %v7500_v0 = vld [vmem:[%s11144_s1 + $0xc24] ss:$16 sps:$4 sm:$0xff]  }
  0xa9   :  { %5076 = vmatprep.subr.bf16.mxu1 %v7427_v1  ;;  %v7503_v1 = vld [vmem:[%s11144_s1 + $0xe24] ss:$16 sps:$4 sm:$0xff]  }
  0xab   :  { %5036 = vmatpush2.bf16.msra.mxu0 %v7422_v2  ;;  %v7498_v2 = vld [vmem:[%s11144_s1 + $0xc20] ss:$16 sps:$4 sm:$0xff]  }
  0xac   :  { %5077 = vmatpush2.bf16.msra.mxu1 %v7425_v3  ;;  %5037 = vmatprep.subr.bf16.mxu0 %v7430_v4  ;;  %v7501_v3 = vld [vmem:[%s11144_s1 + $0xe20] ss:$16 sps:$4 sm:$0xff]   ;;  %v7506_v4 = vld [vmem:[%s11144_s1 + $0xc04] ss:$16 sps:$4 sm:$0xff]  }
  0xad   :  { %5078 = vmatprep.subr.bf16.mxu1 %v7433_v5  ;;  %v7509_v5 = vld [vmem:[%s11144_s1 + $0xe04] ss:$16 sps:$4 sm:$0xff]  }
  0xaf   :  { %5038 = vmatpush2.bf16.msra.mxu0 %v7428_v8  ;;  %v7504_v8 = vld [vmem:[%s11144_s1 + $0xc00] ss:$16 sps:$4 sm:$0xff]  }
  0xb0   :  { %5079 = vmatpush2.bf16.msra.mxu1 %v7431_v9  ;;  %5039 = vmatprep.subr.bf16.mxu0 %v7436_v10  ;;  %v7507_v9 = vld [vmem:[%s11144_s1 + $0xe00] ss:$16 sps:$4 sm:$0xff]   ;;  %v7512_v10 = vld [vmem:[%s11144_s1 + $0xde4] ss:$16 sps:$4 sm:$0xff]  }
  0xb1   :  { %5080 = vmatprep.subr.bf16.mxu1 %v7439_v11  ;;  %v7515_v11 = vld [vmem:[%s11144_s1 + $0xfe4] ss:$16 sps:$4 sm:$0xff]  }
  0xb3   :  { %5040 = vmatpush2.bf16.msra.mxu0 %v7434_v12  ;;  %v7510_v12 = vld [vmem:[%s11144_s1 + $0xde0] ss:$16 sps:$4 sm:$0xff]  }
  0xb4   :  { %5081 = vmatpush2.bf16.msra.mxu1 %v7437_v13  ;;  %5041 = vmatprep.subr.bf16.mxu0 %v7442_v14  ;;  %v7513_v13 = vld [vmem:[%s11144_s1 + $0xfe0] ss:$16 sps:$4 sm:$0xff]   ;;  %v7518_v14 = vld [vmem:[%s11144_s1 + $0xdc4] ss:$16 sps:$4 sm:$0xff]  }
  0xb5   :  { %5082 = vmatprep.subr.bf16.mxu1 %v7445_v15  ;;  %v7521_v15 = vld [vmem:[%s11144_s1 + $0xfc4] ss:$16 sps:$4 sm:$0xff]  }
  0xb7   :  { %5042 = vmatpush2.bf16.msra.mxu0 %v7440_v18  ;;  %v7516_v18 = vld [vmem:[%s11144_s1 + $0xdc0] ss:$16 sps:$4 sm:$0xff]  }
  0xb8   :  { %5083 = vmatpush2.bf16.msra.mxu1 %v7443_v19  ;;  %5043 = vmatprep.subr.bf16.mxu0 %v7448_v20  ;;  %v7519_v19 = vld [vmem:[%s11144_s1 + $0xfc0] ss:$16 sps:$4 sm:$0xff]   ;;  %v7524_v20 = vld [vmem:[%s11144_s1 + $0xda4] ss:$16 sps:$4 sm:$0xff]  }
  0xb9   :  { %5084 = vmatprep.subr.bf16.mxu1 %v7451_v21  ;;  %v7527_v21 = vld [vmem:[%s11144_s1 + $0xfa4] ss:$16 sps:$4 sm:$0xff]  }
  0xbb   :  { %5044 = vmatpush2.bf16.msra.mxu0 %v7446_v26  ;;  %v7522_v26 = vld [vmem:[%s11144_s1 + $0xda0] ss:$16 sps:$4 sm:$0xff]  }
  0xbc   :  { %5085 = vmatpush2.bf16.msra.mxu1 %v7449_v27  ;;  %5045 = vmatprep.subr.bf16.mxu0 %v7454_v28  ;;  %v7525_v27 = vld [vmem:[%s11144_s1 + $0xfa0] ss:$16 sps:$4 sm:$0xff]   ;;  %v7530_v28 = vld [vmem:[%s11144_s1 + $0xd84] ss:$16 sps:$4 sm:$0xff]  }
  0xbd   :  { %5086 = vmatprep.subr.bf16.mxu1 %v7457_v29  ;;  %v7533_v29 = vld [vmem:[%s11144_s1 + $0xf84] ss:$16 sps:$4 sm:$0xff]  }
  0xbf   :  { %5046 = vmatpush2.bf16.msra.mxu0 %v7452_v30  ;;  %v7528_v30 = vld [vmem:[%s11144_s1 + $0xd80] ss:$16 sps:$4 sm:$0xff]  }
  0xc0   :  { %5087 = vmatpush2.bf16.msra.mxu1 %v7455_v31  ;;  %5097 = vmatprep.subr.bf16.mxu0 %v7464_v32  ;;  %v7531_v31 = vld [vmem:[%s11144_s1 + $0xf80] ss:$16 sps:$4 sm:$0xff]   ;;  %v7536_v32 = vld [vmem:[%s11144_s1 + $0xd64] ss:$16 sps:$4 sm:$0xff]  }
  0xc1   :  { %5138 = vmatprep.subr.bf16.mxu1 %v7467_v33  ;;  %v7539_v33 = vld [vmem:[%s11144_s1 + $0xf64] ss:$16 sps:$4 sm:$0xff]  }
  0xc2   :  { %5048 = vmatmul.mubr.bf16.vlgmr.msra.gmra.mxu0 %v9088_v38 }
  0xc3   :  { %5089 = vmatmul.mubr.bf16.vlgmr.msra.gmra.mxu1 %v9092_v39  ;;  %5098 = vmatpush1.bf16.msra.mxu0 %v7462_v34  ;;  %v7534_v34 = vld [vmem:[%s11144_s1 + $0xd60] ss:$16 sps:$4 sm:$0xff]  }
  0xc4   :  { %5139 = vmatpush1.bf16.msra.mxu1 %v7465_v41  ;;  %5099 = vmatprep.subr.bf16.mxu0 %v7470_v22  ;;  %v7537_v41 = vld [vmem:[%s11144_s1 + $0xf60] ss:$16 sps:$4 sm:$0xff]   ;;  %v7542_v22 = vld [vmem:[%s11144_s1 + $0xd44] ss:$16 sps:$4 sm:$0xff]  }
  0xc5   :  { %5140 = vmatprep.subr.bf16.mxu1 %v7473_v23  ;;  %5129 = vmatprep.mubr.bf16.mxu0 %v9110_v42  ;;  %v7545_v23 = vld [vmem:[%s11144_s1 + $0xf44] ss:$16 sps:$4 sm:$0xff]  }
  0xc6   :  { %5170 = vmatprep.mubr.bf16.mxu1 %v9114_v43 }
  0xc7   :  { %5100 = vmatpush1.bf16.msra.mxu0 %v7468_v44  ;;  %v7540_v44 = vld [vmem:[%s11144_s1 + $0xd40] ss:$16 sps:$4 sm:$0xff]  }
  0xc8   :  { %5141 = vmatpush1.bf16.msra.mxu1 %v7471_v45  ;;  %5101 = vmatprep.subr.bf16.mxu0 %v7476_v46  ;;  %v7543_v45 = vld [vmem:[%s11144_s1 + $0xf40] ss:$16 sps:$4 sm:$0xff]   ;;  %v7548_v46 = vld [vmem:[%s11144_s1 + $0xd24] ss:$16 sps:$4 sm:$0xff]  }
  0xc9   :  { %5142 = vmatprep.subr.bf16.mxu1 %v7479_v48  ;;  %v820_v48 = vlaneseq }
  0xcb   :  { %5102 = vmatpush1.bf16.msra.mxu0 %v7474_v49  ;;  %v7551_v49 = vld [vmem:[%s11144_s1 + $0xf24] ss:$16 sps:$4 sm:$0xff]  }
  0xcc   :  { %5143 = vmatpush1.bf16.msra.mxu1 %v7477_v50  ;;  %5103 = vmatprep.subr.bf16.mxu0 %v7482_v52  ;;  %v7546_v50 = vld [vmem:[%s11144_s1 + $0xd20] ss:$16 sps:$4 sm:$0xff]  }
  0xcd   :  { %5144 = vmatprep.subr.bf16.mxu1 %v7485_v53  ;;  %v7549_v52 = vld [vmem:[%s11144_s1 + $0xf20] ss:$16 sps:$4 sm:$0xff]   ;;  %v7554_v53 = vld [vmem:[%s11144_s1 + $0xd04] ss:$16 sps:$4 sm:$0xff]  }
  0xcf   :  { %5104 = vmatpush1.bf16.msra.mxu0 %v7480_v54  ;;  %v9285_v54 = vshrl.u32 %v820_v48, 7  ;;  %v7586_v48 = vld [vmem:[%s11144_s1 + $0x1060] ss:$16 sps:$4 sm:$0xff]  }
  0xd0   :  { %5145 = vmatpush1.bf16.msra.mxu1 %v7483_v55  ;;  %5105 = vmatprep.subr.bf16.mxu0 %v7488_v56  ;;  %v7557_v55 = vld [vmem:[%s11144_s1 + $0xf04] ss:$16 sps:$4 sm:$0xff]   ;;  %v7552_v56 = vld [vmem:[%s11144_s1 + $0xd00] ss:$16 sps:$4 sm:$0xff]  }
  0xd1   :  { %5146 = vmatprep.subr.bf16.mxu1 %v7491_v57  ;;  %v7555_v57 = vld [vmem:[%s11144_s1 + $0xf00] ss:$16 sps:$4 sm:$0xff]  }
  0xd3   :  { %5106 = vmatpush1.bf16.msra.mxu0 %v7486_v58  ;;  %v818_v58 = vld [vmem:[%s11146_s2] sm:$0xf] }
  0xd4   :  { %5147 = vmatpush1.bf16.msra.mxu1 %v7489_v59  ;;  %5107 = vmatprep.subr.bf16.mxu0 %v7494_v60  ;;  %v822_v59 = vsub.s32 0, %v9285_v54  ;;  %v7564_v60 = vld [vmem:[%s11144_s1 + $0x10e4] ss:$16 sps:$4 sm:$0xff]  }
  0xd5   :  { %5148 = vmatprep.subr.bf16.mxu1 %v7497_v61  ;;  %v7567_v61 = vld [vmem:[%s11144_s1 + $0x12e4] ss:$16 sps:$4 sm:$0xff]  }
  0xd7   :  { %5108 = vmatpush1.bf16.msra.mxu0 %v7492_v62  ;;  %v7562_v62 = vld [vmem:[%s11144_s1 + $0x10e0] ss:$16 sps:$4 sm:$0xff]  }
  0xd8   :  { %5149 = vmatpush1.bf16.msra.mxu1 %v7495_v63  ;;  %5109 = vmatprep.subr.bf16.mxu0 %v7500_v0  ;;  %v826_v63 = vsub.s32 1, %v9285_v54  ;;  %v9312_v0 = vcombine.low %v9084_v35, %v9084_v35  ;;  %v7565_v35 = vld [vmem:[%s11144_s1 + $0x12e0] ss:$16 sps:$4 sm:$0xff]  }
  0xd9   :  { %5150 = vmatprep.subr.bf16.mxu1 %v7503_v1  ;;  %v9316_v1 = vcombine.low %v9097_v40, %v9097_v40  ;;  %v7570_v40 = vld [vmem:[%s11144_s1 + $0x10c4] ss:$16 sps:$4 sm:$0xff]  }
  0xdb   :  { %5110 = vmatpush1.bf16.msra.mxu0 %v7498_v2  ;;  %v9321_v2 = vld [vmem:[%s11145_s0 + $0x40] sm:$0xff] }
  0xdc   :  { %5151 = vmatpush1.bf16.msra.mxu1 %v7501_v3  ;;  %5111 = vmatprep.subr.bf16.mxu0 %v7506_v4  ;;  %v9326_v3 = vld [vmem:[%s11145_s0 + $0x48] sm:$0xff]  ;;  %v823_v4 = vrot.slane %v818_v58, %v822_v59  ;;  %v7601_v59 = vld [vmem:[%s11144_s1 + $0x1220] ss:$16 sps:$4 sm:$0xff]  }
  0xdd   :  { %5152 = vmatprep.subr.bf16.mxu1 %v7509_v5  ;;  %v7573_v5 = vld [vmem:[%s11144_s1 + $0x12c4] ss:$16 sps:$4 sm:$0xff]  }
  0xdf   :  { %5112 = vmatpush1.bf16.msra.mxu0 %v7504_v8  ;;  %v827_v8 = vrot.slane %v818_v58, %v826_v63  ;;  %v7598_v58 = vld [vmem:[%s11144_s1 + $0x1020] ss:$16 sps:$4 sm:$0xff]  }
  0xe0   :  { %5153 = vmatpush1.bf16.msra.mxu1 %v7507_v9  ;;  %5113 = vmatprep.subr.bf16.mxu0 %v7512_v10  ;;  %v9339_v9 = vcombine.high %v9321_v2, %v9321_v2  ;;  %v9343_v10 = vcombine.high %v9326_v3, %v9326_v3  ;;  %v7607_v63 = vld [vmem:[%s11144_s1 + $0x1200] ss:$16 sps:$4 sm:$0xff]  }
  0xe1   :  { %5154 = vmatprep.subr.bf16.mxu1 %v7515_v11 }
  0xe3   :  { %5114 = vmatpush2.bf16.msra.mxu0 %v7510_v12 }
  0xe4   :  { %5155 = vmatpush2.bf16.msra.mxu1 %v7513_v13  ;;  %5115 = vmatprep.subr.bf16.mxu0 %v7518_v14  ;;  %v7568_v13 = vld [vmem:[%s11144_s1 + $0x10c0] ss:$16 sps:$4 sm:$0xff]  }
  0xe5   :  { %5156 = vmatprep.subr.bf16.mxu1 %v7521_v15  ;;  %v7571_v15 = vld [vmem:[%s11144_s1 + $0x12c0] ss:$16 sps:$4 sm:$0xff]  }
  0xe7   :  { %5116 = vmatpush2.bf16.msra.mxu0 %v7516_v18 }
  0xe8   :  { %5157 = vmatpush2.bf16.msra.mxu1 %v7519_v19  ;;  %5117 = vmatprep.subr.bf16.mxu0 %v7524_v20  ;;  %v7576_v20 = vld [vmem:[%s11144_s1 + $0x10a4] ss:$16 sps:$4 sm:$0xff]  }
  0xe9   :  { %5158 = vmatprep.subr.bf16.mxu1 %v7527_v21  ;;  %v7579_v21 = vld [vmem:[%s11144_s1 + $0x12a4] ss:$16 sps:$4 sm:$0xff]  }
  0xeb   :  { %5118 = vmatpush2.bf16.msra.mxu0 %v7522_v26 }
  0xec   :  { %5159 = vmatpush2.bf16.msra.mxu1 %v7525_v27  ;;  %5119 = vmatprep.subr.bf16.mxu0 %v7530_v28 }
  0xed   :  { %5160 = vmatprep.subr.bf16.mxu1 %v7533_v29 }
  0xef   :  { %5120 = vmatpush2.bf16.msra.mxu0 %v7528_v30  ;;  %v7574_v30 = vld [vmem:[%s11144_s1 + $0x10a0] ss:$16 sps:$4 sm:$0xff]  }
  0xf0   :  { %5161 = vmatpush2.bf16.msra.mxu1 %v7531_v31  ;;  %5121 = vmatprep.subr.bf16.mxu0 %v7536_v32  ;;  %v7577_v32 = vld [vmem:[%s11144_s1 + $0x12a0] ss:$16 sps:$4 sm:$0xff]  }
  0xf1   :  { %5162 = vmatprep.subr.bf16.mxu1 %v7539_v33 }
  0xf3   :  { %5122 = vmatpush2.bf16.msra.mxu0 %v7534_v34 }
  0xf4   :  { %5163 = vmatpush2.bf16.msra.mxu1 %v7537_v41  ;;  %5123 = vmatprep.subr.bf16.mxu0 %v7542_v22  ;;  %v7582_v41 = vld [vmem:[%s11144_s1 + $0x1084] ss:$16 sps:$4 sm:$0xff]  }
  0xf5   :  { %5164 = vmatprep.subr.bf16.mxu1 %v7545_v23  ;;  %v7585_v22 = vld [vmem:[%s11144_s1 + $0x1284] ss:$16 sps:$4 sm:$0xff]   ;;  %v7580_v23 = vld [vmem:[%s11144_s1 + $0x1080] ss:$16 sps:$4 sm:$0xff]  }
  0xf7   :  { %5124 = vmatpush2.bf16.msra.mxu0 %v7540_v44  ;;  %v7583_v44 = vld [vmem:[%s11144_s1 + $0x1280] ss:$16 sps:$4 sm:$0xff]  }
  0xf8   :  { %5165 = vmatpush2.bf16.msra.mxu1 %v7543_v45  ;;  %5125 = vmatprep.subr.bf16.mxu0 %v7548_v46  ;;  %v7588_v45 = vld [vmem:[%s11144_s1 + $0x1064] ss:$16 sps:$4 sm:$0xff]  }
  0xf9   :  { %5166 = vmatprep.subr.bf16.mxu1 %v7551_v49  ;;  %v7591_v46 = vld [vmem:[%s11144_s1 + $0x1264] ss:$16 sps:$4 sm:$0xff]   ;;  %v7589_v49 = vld [vmem:[%s11144_s1 + $0x1260] ss:$16 sps:$4 sm:$0xff]  }
  0xfb   :  { %5126 = vmatpush2.bf16.msra.mxu0 %v7546_v50  ;;  %v7594_v50 = vld [vmem:[%s11144_s1 + $0x1044] ss:$16 sps:$4 sm:$0xff]  }
  0xfc   :  { %5167 = vmatpush2.bf16.msra.mxu1 %v7549_v52  ;;  %5127 = vmatprep.subr.bf16.mxu0 %v7554_v53  ;;  %v7597_v52 = vld [vmem:[%s11144_s1 + $0x1244] ss:$16 sps:$4 sm:$0xff]   ;;  %v7592_v53 = vld [vmem:[%s11144_s1 + $0x1040] ss:$16 sps:$4 sm:$0xff]  }
  0xfd   :  { %5168 = vmatprep.subr.bf16.mxu1 %v7557_v55  ;;  %v7595_v55 = vld [vmem:[%s11144_s1 + $0x1240] ss:$16 sps:$4 sm:$0xff]  }
  0xff   :  { %5128 = vmatpush2.bf16.msra.mxu0 %v7552_v56  ;;  %v7600_v56 = vld [vmem:[%s11144_s1 + $0x1024] ss:$16 sps:$4 sm:$0xff]  }
 0x100   :  { %5169 = vmatpush2.bf16.msra.mxu1 %v7555_v57  ;;  %5179 = vmatprep.subr.bf16.mxu0 %v7564_v60  ;;  %v7603_v57 = vld [vmem:[%s11144_s1 + $0x1224] ss:$16 sps:$4 sm:$0xff]  }
 0x101   :  { %5220 = vmatprep.subr.bf16.mxu1 %v7567_v61  ;;  %v7606_v60 = vld [vmem:[%s11144_s1 + $0x1004] ss:$16 sps:$4 sm:$0xff]  }
 0x102   :  { %v4885_v11 = vpop.f32.mrf.mxu0  ;;  %5130 = vmatmul.mubr.bf16.vlgmr.msra.gmra.mxu0 %v9312_v0  ;;  %v7609_v61 = vld [vmem:[%s11144_s1 + $0x1204] ss:$16 sps:$4 sm:$0xff]  }
 0x103   :  { %v4926_v12 = vpop.f32.mrf.mxu1  ;;  %5171 = vmatmul.mubr.bf16.vlgmr.msra.gmra.mxu1 %v9316_v1  ;;  %v4886_v14 = vadd.f32 %v4885_v11, %v823_v4  ;;  %5180 = vmatpush1.bf16.msra.mxu0 %v7562_v62  ;;  %v7604_v62 = vld [vmem:[%s11144_s1 + $0x1000] ss:$16 sps:$4 sm:$0xff]   ;;  %v7612_v4 = vld [vmem:[%s11144_s1 + $0x11e4] ss:$16 sps:$4 sm:$0xff]  }
 0x104   :  { %5221 = vmatpush1.bf16.msra.mxu1 %v7565_v35  ;;  %v4887_v18 = vpop.f32.mrf.mxu0  ;;  %5181 = vmatprep.subr.bf16.mxu0 %v7570_v40  ;;  %v7615_v35 = vld [vmem:[%s11144_s1 + $0x13e4] ss:$16 sps:$4 sm:$0xff]   ;;  %v7610_v40 = vld [vmem:[%s11144_s1 + $0x11e0] ss:$16 sps:$4 sm:$0xff]  }
 0x105   :  { %v4928_v19 = vpop.f32.mrf.mxu1  ;;  %5222 = vmatprep.subr.bf16.mxu1 %v7573_v5  ;;  %v9359_v26 = vadd.f32 %v4926_v12, %v4886_v14  ;;  %v4888_v27 = vadd.f32 %v4887_v18, %v827_v8  ;;  %5211 = vmatprep.mubr.bf16.mxu0 %v9339_v9  ;;  %v7613_v5 = vld [vmem:[%s11144_s1 + $0x13e0] ss:$16 sps:$4 sm:$0xff]   ;;  %v7618_v8 = vld [vmem:[%s11144_s1 + $0x11c4] ss:$16 sps:$4 sm:$0xff]  }
 0x106   :  { %5252 = vmatprep.mubr.bf16.mxu1 %v9343_v10  ;;  %v4889_v28 = vpop.f32.mrf.mxu0  ;;  %v7621_v11 = vld [vmem:[%s11144_s1 + $0x13c4] ss:$16 sps:$4 sm:$0xff]   ;;  %v7616_v12 = vld [vmem:[%s11144_s1 + $0x11c0] ss:$16 sps:$4 sm:$0xff]  }
 0x107   :  { %v4930_v29 = vpop.f32.mrf.mxu1  ;;  %v9366_v31 = vadd.f32 %v4928_v19, %v4888_v27  ;;  %5182 = vmatpush1.bf16.msra.mxu0 %v7568_v13  ;;  %v7619_v13 = vld [vmem:[%s11144_s1 + $0x13c0] ss:$16 sps:$4 sm:$0xff]   ;;  %v7624_v14 = vld [vmem:[%s11144_s1 + $0x11a4] ss:$16 sps:$4 sm:$0xff]  }
 0x108   :  { %5223 = vmatpush1.bf16.msra.mxu1 %v7571_v15  ;;  %v4890_v33 = vpop.f32.mrf.mxu0  ;;  %5183 = vmatprep.subr.bf16.mxu0 %v7576_v20  ;;  %v7627_v15 = vld [vmem:[%s11144_s1 + $0x13a4] ss:$16 sps:$4 sm:$0xff]   ;;  %v7622_v18 = vld [vmem:[%s11144_s1 + $0x11a0] ss:$16 sps:$4 sm:$0xff]  }
 0x109   :  { %v4931_v34 = vpop.f32.mrf.mxu1  ;;  %5224 = vmatprep.subr.bf16.mxu1 %v7579_v21  ;;  %v7625_v19 = vld [vmem:[%s11144_s1 + $0x13a0] ss:$16 sps:$4 sm:$0xff]   ;;  %v7630_v20 = vld [vmem:[%s11144_s1 + $0x1184] ss:$16 sps:$4 sm:$0xff]  }
 0x10a   :  { %v7633_v21 = vld [vmem:[%s11144_s1 + $0x1384] ss:$16 sps:$4 sm:$0xff]   ;;  %v7628_v27 = vld [vmem:[%s11144_s1 + $0x1180] ss:$16 sps:$4 sm:$0xff]  }
 0x10b   :  { %5184 = vmatpush1.bf16.msra.mxu0 %v7574_v30  ;;  %v7631_v28 = vld [vmem:[%s11144_s1 + $0x1380] ss:$16 sps:$4 sm:$0xff]   ;;  %v7636_v29 = vld [vmem:[%s11144_s1 + $0x1164] ss:$16 sps:$4 sm:$0xff]  }
 0x10c   :  { %5225 = vmatpush1.bf16.msra.mxu1 %v7577_v32  ;;  %5185 = vmatprep.subr.bf16.mxu0 %v7582_v41  ;;  %v7639_v30 = vld [vmem:[%s11144_s1 + $0x1364] ss:$16 sps:$4 sm:$0xff]   ;;  %v7634_v32 = vld [vmem:[%s11144_s1 + $0x1160] ss:$16 sps:$4 sm:$0xff]  }
 0x10d   :  { %5226 = vmatprep.subr.bf16.mxu1 %v7585_v22  ;;  %v7637_v33 = vld [vmem:[%s11144_s1 + $0x1360] ss:$16 sps:$4 sm:$0xff]   ;;  %v7642_v34 = vld [vmem:[%s11144_s1 + $0x1144] ss:$16 sps:$4 sm:$0xff]  }
 0x10e   :  { %v7645_v41 = vld [vmem:[%s11144_s1 + $0x1344] ss:$16 sps:$4 sm:$0xff]   ;;  %v7640_v22 = vld [vmem:[%s11144_s1 + $0x1140] ss:$16 sps:$4 sm:$0xff]  }
 0x10f   :  { %5186 = vmatpush1.bf16.msra.mxu0 %v7580_v23  ;;  %v7643_v23 = vld [vmem:[%s11144_s1 + $0x1340] ss:$16 sps:$4 sm:$0xff]  }
 0x110   :  { %5227 = vmatpush1.bf16.msra.mxu1 %v7583_v44  ;;  %5187 = vmatprep.subr.bf16.mxu0 %v7588_v45  ;;  %v7648_v44 = vld [vmem:[%s11144_s1 + $0x1124] ss:$16 sps:$4 sm:$0xff]  }
 0x111   :  { %5228 = vmatprep.subr.bf16.mxu1 %v7591_v46  ;;  %v7651_v45 = vld [vmem:[%s11144_s1 + $0x1324] ss:$16 sps:$4 sm:$0xff]   ;;  %v7646_v46 = vld [vmem:[%s11144_s1 + $0x1120] ss:$16 sps:$4 sm:$0xff]  }
 0x113   :  { %5188 = vmatpush1.bf16.msra.mxu0 %v7586_v48  ;;  %v7649_v48 = vld [vmem:[%s11144_s1 + $0x1320] ss:$16 sps:$4 sm:$0xff]  }
 0x114   :  { %5229 = vmatpush1.bf16.msra.mxu1 %v7589_v49  ;;  %5189 = vmatprep.subr.bf16.mxu0 %v7594_v50  ;;  %v7654_v49 = vld [vmem:[%s11144_s1 + $0x1104] ss:$16 sps:$4 sm:$0xff]  }
 0x115   :  { %5230 = vmatprep.subr.bf16.mxu1 %v7597_v52  ;;  %v7657_v50 = vld [vmem:[%s11144_s1 + $0x1304] ss:$16 sps:$4 sm:$0xff]   ;;  %v7652_v52 = vld [vmem:[%s11144_s1 + $0x1100] ss:$16 sps:$4 sm:$0xff]  }
 0x117   :  { %5190 = vmatpush1.bf16.msra.mxu0 %v7592_v53  ;;  %v7655_v53 = vld [vmem:[%s11144_s1 + $0x1300] ss:$16 sps:$4 sm:$0xff]  }
 0x118   :  { %5231 = vmatpush1.bf16.msra.mxu1 %v7595_v55  ;;  %5191 = vmatprep.subr.bf16.mxu0 %v7600_v56  ;;  %v7664_v55 = vld [vmem:[%s11144_s1 + $0x14e4] ss:$16 sps:$4 sm:$0xff]  }
 0x119   :  { %5232 = vmatprep.subr.bf16.mxu1 %v7603_v57  ;;  %v7667_v56 = vld [vmem:[%s11144_s1 + $0x16e4] ss:$16 sps:$4 sm:$0xff]  }
 0x11a   :  { %v9536_v57 = vld [vmem:[%s11145_s0 + $0x50] sm:$0xff] }
 0x11b   :  { %5192 = vmatpush1.bf16.msra.mxu0 %v7598_v58  ;;  %v9541_v58 = vld [vmem:[%s11145_s0 + $0x58] sm:$0xff] }
 0x11c   :  { %5233 = vmatpush1.bf16.msra.mxu1 %v7601_v59  ;;  %5193 = vmatprep.subr.bf16.mxu0 %v7606_v60  ;;  %v7662_v59 = vld [vmem:[%s11144_s1 + $0x14e0] ss:$16 sps:$4 sm:$0xff]  }
 0x11d   :  { %5234 = vmatprep.subr.bf16.mxu1 %v7609_v61  ;;  %v7665_v60 = vld [vmem:[%s11144_s1 + $0x16e0] ss:$16 sps:$4 sm:$0xff]   ;;  %v9551_v61 = vcombine.low %v9321_v2, %v9321_v2 }
 0x11e   :  { %v7668_v2 = vld [vmem:[%s11144_s1 + $0x14c0] ss:$16 sps:$4 sm:$0xff]  }
 0x11f   :  { %5194 = vmatpush1.bf16.msra.mxu0 %v7604_v62  ;;  %v9555_v62 = vcombine.low %v9326_v3, %v9326_v3  ;;  %v7671_v3 = vld [vmem:[%s11144_s1 + $0x16c0] ss:$16 sps:$4 sm:$0xff]  }
 0x120   :  { %5235 = vmatpush1.bf16.msra.mxu1 %v7607_v63  ;;  %5195 = vmatprep.subr.bf16.mxu0 %v7612_v4  ;;  %v7670_v63 = vld [vmem:[%s11144_s1 + $0x14c4] ss:$16 sps:$4 sm:$0xff]  }
 0x121   :  { %5236 = vmatprep.subr.bf16.mxu1 %v7615_v35  ;;  %v7673_v4 = vld [vmem:[%s11144_s1 + $0x16c4] ss:$16 sps:$4 sm:$0xff]   ;;  %v9571_v35 = vcombine.high %v9536_v57, %v9536_v57 }
 0x123   :  { %5196 = vmatpush2.bf16.msra.mxu0 %v7610_v40  ;;  %v9575_v40 = vcombine.high %v9541_v58, %v9541_v58 }
 0x124   :  { %5237 = vmatpush2.bf16.msra.mxu1 %v7613_v5  ;;  %5197 = vmatprep.subr.bf16.mxu0 %v7618_v8 }
 0x125   :  { %5238 = vmatprep.subr.bf16.mxu1 %v7621_v11 }
 0x127   :  { %5198 = vmatpush2.bf16.msra.mxu0 %v7616_v12 }
 0x128   :  { %5239 = vmatpush2.bf16.msra.mxu1 %v7619_v13  ;;  %5199 = vmatprep.subr.bf16.mxu0 %v7624_v14  ;;  %v7676_v14 = vld [vmem:[%s11144_s1 + $0x14a4] ss:$16 sps:$4 sm:$0xff]  }
 0x129   :  { %5240 = vmatprep.subr.bf16.mxu1 %v7627_v15  ;;  %v7679_v15 = vld [vmem:[%s11144_s1 + $0x16a4] ss:$16 sps:$4 sm:$0xff]  }
 0x12b   :  { %5200 = vmatpush2.bf16.msra.mxu0 %v7622_v18 }
 0x12c   :  { %5241 = vmatpush2.bf16.msra.mxu1 %v7625_v19  ;;  %5201 = vmatprep.subr.bf16.mxu0 %v7630_v20  ;;  %v7677_v20 = vld [vmem:[%s11144_s1 + $0x16a0] ss:$16 sps:$4 sm:$0xff]  }
 0x12d   :  { %5242 = vmatprep.subr.bf16.mxu1 %v7633_v21 }
 0x12f   :  { %5202 = vmatpush2.bf16.msra.mxu0 %v7628_v27 }
 0x130   :  { %5243 = vmatpush2.bf16.msra.mxu1 %v7631_v28  ;;  %5203 = vmatprep.subr.bf16.mxu0 %v7636_v29 }
 0x131   :  { %5244 = vmatprep.subr.bf16.mxu1 %v7639_v30  ;;  %v7682_v30 = vld [vmem:[%s11144_s1 + $0x1484] ss:$16 sps:$4 sm:$0xff]  }
 0x133   :  { %5204 = vmatpush2.bf16.msra.mxu0 %v7634_v32  ;;  %v7685_v32 = vld [vmem:[%s11144_s1 + $0x1684] ss:$16 sps:$4 sm:$0xff]  }
 0x134   :  { %5245 = vmatpush2.bf16.msra.mxu1 %v7637_v33  ;;  %5205 = vmatprep.subr.bf16.mxu0 %v7642_v34  ;;  %v7680_v33 = vld [vmem:[%s11144_s1 + $0x1480] ss:$16 sps:$4 sm:$0xff]  }
 0x135   :  { %5246 = vmatprep.subr.bf16.mxu1 %v7645_v41  ;;  %v7683_v34 = vld [vmem:[%s11144_s1 + $0x1680] ss:$16 sps:$4 sm:$0xff]   ;;  %v7688_v41 = vld [vmem:[%s11144_s1 + $0x1464] ss:$16 sps:$4 sm:$0xff]  }
 0x137   :  { %5206 = vmatpush2.bf16.msra.mxu0 %v7640_v22  ;;  %v7691_v22 = vld [vmem:[%s11144_s1 + $0x1664] ss:$16 sps:$4 sm:$0xff]  }
 0x138   :  { %5247 = vmatpush2.bf16.msra.mxu1 %v7643_v23  ;;  %5207 = vmatprep.subr.bf16.mxu0 %v7648_v44  ;;  %v7686_v23 = vld [vmem:[%s11144_s1 + $0x1460] ss:$16 sps:$4 sm:$0xff]  }
 0x139   :  { %5248 = vmatprep.subr.bf16.mxu1 %v7651_v45  ;;  %v7689_v44 = vld [vmem:[%s11144_s1 + $0x1660] ss:$16 sps:$4 sm:$0xff]   ;;  %v7694_v45 = vld [vmem:[%s11144_s1 + $0x1444] ss:$16 sps:$4 sm:$0xff]  }
 0x13b   :  { %5208 = vmatpush2.bf16.msra.mxu0 %v7646_v46  ;;  %v7697_v46 = vld [vmem:[%s11144_s1 + $0x1644] ss:$16 sps:$4 sm:$0xff]  }
 0x13c   :  { %5249 = vmatpush2.bf16.msra.mxu1 %v7649_v48  ;;  %5209 = vmatprep.subr.bf16.mxu0 %v7654_v49  ;;  %v7692_v48 = vld [vmem:[%s11144_s1 + $0x1440] ss:$16 sps:$4 sm:$0xff]  }
 0x13d   :  { %5250 = vmatprep.subr.bf16.mxu1 %v7657_v50  ;;  %v7695_v49 = vld [vmem:[%s11144_s1 + $0x1640] ss:$16 sps:$4 sm:$0xff]   ;;  %v7700_v50 = vld [vmem:[%s11144_s1 + $0x1424] ss:$16 sps:$4 sm:$0xff]  }
 0x13f   :  { %5210 = vmatpush2.bf16.msra.mxu0 %v7652_v52  ;;  %v7703_v52 = vld [vmem:[%s11144_s1 + $0x1624] ss:$16 sps:$4 sm:$0xff]  }
 0x140   :  { %5251 = vmatpush2.bf16.msra.mxu1 %v7655_v53  ;;  %5261 = vmatprep.subr.bf16.mxu0 %v7664_v55  ;;  %v7698_v53 = vld [vmem:[%s11144_s1 + $0x1420] ss:$16 sps:$4 sm:$0xff]  }
 0x141   :  { %5302 = vmatprep.subr.bf16.mxu1 %v7667_v56  ;;  %v7701_v55 = vld [vmem:[%s11144_s1 + $0x1620] ss:$16 sps:$4 sm:$0xff]   ;;  %v7706_v56 = vld [vmem:[%s11144_s1 + $0x1404] ss:$16 sps:$4 sm:$0xff]  }
 0x142   :  { %v4967_v5 = vpop.f32.mrf.mxu0  ;;  %5212 = vmatmul.mubr.bf16.vlgmr.msra.gmra.mxu0 %v9551_v61 }
 0x143   :  { %v5008_v8 = vpop.f32.mrf.mxu1  ;;  %5253 = vmatmul.mubr.bf16.vlgmr.msra.gmra.mxu1 %v9555_v62  ;;  %v4968_v11 = vadd.f32 %v4967_v5, %v9359_v26  ;;  %5262 = vmatpush1.bf16.msra.mxu0 %v7662_v59  ;;  %v7674_v26 = vld [vmem:[%s11144_s1 + $0x14a0] ss:$16 sps:$4 sm:$0xff]   ;;  %v7709_v59 = vld [vmem:[%s11144_s1 + $0x1604] ss:$16 sps:$4 sm:$0xff]  }
 0x144   :  { %5303 = vmatpush1.bf16.msra.mxu1 %v7665_v60  ;;  %v4969_v12 = vpop.f32.mrf.mxu0  ;;  %5263 = vmatprep.subr.bf16.mxu0 %v7670_v63  ;;  %v7704_v60 = vld [vmem:[%s11144_s1 + $0x1400] ss:$16 sps:$4 sm:$0xff]  }
 0x145   :  { %v5010_v13 = vpop.f32.mrf.mxu1  ;;  %5304 = vmatprep.subr.bf16.mxu1 %v7673_v4  ;;  %v9586_v18 = vadd.f32 %v5008_v8, %v4968_v11  ;;  %v4970_v19 = vadd.f32 %v4969_v12, %v9366_v31  ;;  %5293 = vmatprep.mubr.bf16.mxu0 %v9571_v35  ;;  %v7707_v63 = vld [vmem:[%s11144_s1 + $0x1600] ss:$16 sps:$4 sm:$0xff]   ;;  %v7712_v4 = vld [vmem:[%s11144_s1 + $0x15e4] ss:$16 sps:$4 sm:$0xff]  }
 0x146   :  { %5334 = vmatprep.mubr.bf16.mxu1 %v9575_v40  ;;  %v4971_v21 = vpop.f32.mrf.mxu0  ;;  %v7713_v5 = vld [vmem:[%s11144_s1 + $0x17e0] ss:$16 sps:$4 sm:$0xff]   ;;  %v7718_v8 = vld [vmem:[%s11144_s1 + $0x15c4] ss:$16 sps:$4 sm:$0xff]  }
 0x147   :  { %v5012_v27 = vpop.f32.mrf.mxu1  ;;  %v9597_v28 = vadd.f32 %v5010_v13, %v4970_v19  ;;  %5264 = vmatpush1.bf16.msra.mxu0 %v7668_v2  ;;  %v7715_v2 = vld [vmem:[%s11144_s1 + $0x17e4] ss:$16 sps:$4 sm:$0xff]   ;;  %v7716_v12 = vld [vmem:[%s11144_s1 + $0x15c0] ss:$16 sps:$4 sm:$0xff]  }
 0x148   :  { %5305 = vmatpush1.bf16.msra.mxu1 %v7671_v3  ;;  %v4972_v29 = vpop.f32.mrf.mxu0  ;;  %5265 = vmatprep.subr.bf16.mxu0 %v7676_v14  ;;  %v7710_v3 = vld [vmem:[%s11144_s1 + $0x15e0] ss:$16 sps:$4 sm:$0xff]   ;;  %v7721_v11 = vld [vmem:[%s11144_s1 + $0x17c4] ss:$16 sps:$4 sm:$0xff]  }
 0x149   :  { %v5013_v31 = vpop.f32.mrf.mxu1  ;;  %5306 = vmatprep.subr.bf16.mxu1 %v7679_v15  ;;  %v7719_v13 = vld [vmem:[%s11144_s1 + $0x17c0] ss:$16 sps:$4 sm:$0xff]   ;;  %v7724_v14 = vld [vmem:[%s11144_s1 + $0x15a4] ss:$16 sps:$4 sm:$0xff]  }
 0x14a   :  { %v7727_v15 = vld [vmem:[%s11144_s1 + $0x17a4] ss:$16 sps:$4 sm:$0xff]   ;;  %v7722_v19 = vld [vmem:[%s11144_s1 + $0x15a0] ss:$16 sps:$4 sm:$0xff]  }
 0x14b   :  { %5266 = vmatpush1.bf16.msra.mxu0 %v7674_v26  ;;  %v7725_v26 = vld [vmem:[%s11144_s1 + $0x17a0] ss:$16 sps:$4 sm:$0xff]   ;;  %v7733_v21 = vld [vmem:[%s11144_s1 + $0x1784] ss:$16 sps:$4 sm:$0xff]  }
 0x14c   :  { %5307 = vmatpush1.bf16.msra.mxu1 %v7677_v20  ;;  %5267 = vmatprep.subr.bf16.mxu0 %v7682_v30  ;;  %v7730_v20 = vld [vmem:[%s11144_s1 + $0x1584] ss:$16 sps:$4 sm:$0xff]   ;;  %v7728_v27 = vld [vmem:[%s11144_s1 + $0x1580] ss:$16 sps:$4 sm:$0xff]  }
 0x14d   :  { %5308 = vmatprep.subr.bf16.mxu1 %v7685_v32  ;;  %v7731_v29 = vld [vmem:[%s11144_s1 + $0x1780] ss:$16 sps:$4 sm:$0xff]   ;;  %v7736_v31 = vld [vmem:[%s11144_s1 + $0x1564] ss:$16 sps:$4 sm:$0xff]  }
 0x14e   :  { %v7739_v30 = vld [vmem:[%s11144_s1 + $0x1764] ss:$16 sps:$4 sm:$0xff]   ;;  %v7734_v32 = vld [vmem:[%s11144_s1 + $0x1560] ss:$16 sps:$4 sm:$0xff]  }
 0x14f   :  { %5268 = vmatpush1.bf16.msra.mxu0 %v7680_v33  ;;  %v7737_v33 = vld [vmem:[%s11144_s1 + $0x1760] ss:$16 sps:$4 sm:$0xff]  }
 0x150   :  { %5309 = vmatpush1.bf16.msra.mxu1 %v7683_v34  ;;  %5269 = vmatprep.subr.bf16.mxu0 %v7688_v41  ;;  %v7742_v34 = vld [vmem:[%s11144_s1 + $0x1544] ss:$16 sps:$4 sm:$0xff]  }
 0x151   :  { %5310 = vmatprep.subr.bf16.mxu1 %v7691_v22  ;;  %v7745_v41 = vld [vmem:[%s11144_s1 + $0x1744] ss:$16 sps:$4 sm:$0xff]   ;;  %v7740_v22 = vld [vmem:[%s11144_s1 + $0x1540] ss:$16 sps:$4 sm:$0xff]  }
 0x153   :  { %5270 = vmatpush1.bf16.msra.mxu0 %v7686_v23  ;;  %v7743_v23 = vld [vmem:[%s11144_s1 + $0x1740] ss:$16 sps:$4 sm:$0xff]  }
 0x154   :  { %5311 = vmatpush1.bf16.msra.mxu1 %v7689_v44  ;;  %5271 = vmatprep.subr.bf16.mxu0 %v7694_v45  ;;  %v7748_v44 = vld [vmem:[%s11144_s1 + $0x1524] ss:$16 sps:$4 sm:$0xff]  }
 0x155   :  { %5312 = vmatprep.subr.bf16.mxu1 %v7697_v46  ;;  %v7751_v45 = vld [vmem:[%s11144_s1 + $0x1724] ss:$16 sps:$4 sm:$0xff]   ;;  %v7746_v46 = vld [vmem:[%s11144_s1 + $0x1520] ss:$16 sps:$4 sm:$0xff]  }
 0x157   :  { %5272 = vmatpush1.bf16.msra.mxu0 %v7692_v48  ;;  %v7749_v48 = vld [vmem:[%s11144_s1 + $0x1720] ss:$16 sps:$4 sm:$0xff]  }
 0x158   :  { %5313 = vmatpush1.bf16.msra.mxu1 %v7695_v49  ;;  %5273 = vmatprep.subr.bf16.mxu0 %v7700_v50  ;;  %v7754_v49 = vld [vmem:[%s11144_s1 + $0x1504] ss:$16 sps:$4 sm:$0xff]  }
 0x159   :  { %5314 = vmatprep.subr.bf16.mxu1 %v7703_v52  ;;  %v7757_v50 = vld [vmem:[%s11144_s1 + $0x1704] ss:$16 sps:$4 sm:$0xff]   ;;  %v7752_v52 = vld [vmem:[%s11144_s1 + $0x1500] ss:$16 sps:$4 sm:$0xff]  }
 0x15b   :  { %5274 = vmatpush1.bf16.msra.mxu0 %v7698_v53  ;;  %v7755_v53 = vld [vmem:[%s11144_s1 + $0x1700] ss:$16 sps:$4 sm:$0xff]  }
 0x15c   :  { %5315 = vmatpush1.bf16.msra.mxu1 %v7701_v55  ;;  %5275 = vmatprep.subr.bf16.mxu0 %v7706_v56  ;;  %v7764_v55 = vld [vmem:[%s11144_s1 + $0x1864] ss:$16 sps:$4 sm:$0xff]   ;;  %v7767_v56 = vld [vmem:[%s11144_s1 + $0xec] ss:$16 sps:$4 sm:$0xff]  }
 0x15d   :  { %5316 = vmatprep.subr.bf16.mxu1 %v7709_v59  ;;  %v7762_v59 = vld [vmem:[%s11144_s1 + $0x1860] ss:$16 sps:$4 sm:$0xff]  }
 0x15f   :  { %5276 = vmatpush1.bf16.msra.mxu0 %v7704_v60  ;;  %v7765_v60 = vld [vmem:[%s11144_s1 + $0xe8] ss:$16 sps:$4 sm:$0xff]  }
 0x160   :  { %5317 = vmatpush1.bf16.msra.mxu1 %v7707_v63  ;;  %5277 = vmatprep.subr.bf16.mxu0 %v7712_v4  ;;  %v9769_v63 = vcombine.low %v9536_v57, %v9536_v57  ;;  %v9773_v4 = vcombine.low %v9541_v58, %v9541_v58  ;;  %v7768_v57 = vld [vmem:[%s11144_s1 + $0x1840] ss:$16 sps:$4 sm:$0xff]   ;;  %v7771_v58 = vld [vmem:[%s11144_s1 + $0xc8] ss:$16 sps:$4 sm:$0xff]  }
 0x161   :  { %5318 = vmatprep.subr.bf16.mxu1 %v7715_v2  ;;  %v7770_v2 = vld [vmem:[%s11144_s1 + $0x1844] ss:$16 sps:$4 sm:$0xff]  }
 0x163   :  { %5278 = vmatpush2.bf16.msra.mxu0 %v7710_v3  ;;  %v7773_v3 = vld [vmem:[%s11144_s1 + $0xcc] ss:$16 sps:$4 sm:$0xff]  }
 0x164   :  { %5319 = vmatpush2.bf16.msra.mxu1 %v7713_v5  ;;  %5279 = vmatprep.subr.bf16.mxu0 %v7718_v8 }
 0x165   :  { %5320 = vmatprep.subr.bf16.mxu1 %v7721_v11 }
 0x167   :  { %5280 = vmatpush2.bf16.msra.mxu0 %v7716_v12 }
 0x168   :  { %5321 = vmatpush2.bf16.msra.mxu1 %v7719_v13  ;;  %5281 = vmatprep.subr.bf16.mxu0 %v7724_v14  ;;  %v7776_v14 = vld [vmem:[%s11144_s1 + $0x1824] ss:$16 sps:$4 sm:$0xff]  }
 0x169   :  { %5322 = vmatprep.subr.bf16.mxu1 %v7727_v15  ;;  %v7779_v15 = vld [vmem:[%s11144_s1 + $0xac] ss:$16 sps:$4 sm:$0xff]  }
 0x16b   :  { %5282 = vmatpush2.bf16.msra.mxu0 %v7722_v19 }
 0x16c   :  { %5323 = vmatpush2.bf16.msra.mxu1 %v7725_v26  ;;  %5283 = vmatprep.subr.bf16.mxu0 %v7730_v20  ;;  %v7777_v20 = vld [vmem:[%s11144_s1 + $0xa8] ss:$16 sps:$4 sm:$0xff]  }
 0x16d   :  { %5324 = vmatprep.subr.bf16.mxu1 %v7733_v21  ;;  %v8397_v21 = vmov 0  }
 0x16f   :  { %5284 = vmatpush2.bf16.msra.mxu0 %v7728_v27 }
 0x170   :  { %5325 = vmatpush2.bf16.msra.mxu1 %v7731_v29  ;;  %5285 = vmatprep.subr.bf16.mxu0 %v7736_v31 }
 0x171   :  { %5326 = vmatprep.subr.bf16.mxu1 %v7739_v30 }
 0x173   :  { %5286 = vmatpush2.bf16.msra.mxu0 %v7734_v32  ;;  %v7782_v32 = vld [vmem:[%s11144_s1 + $0x1804] ss:$16 sps:$4 sm:$0xff]  }
 0x174   :  { %5327 = vmatpush2.bf16.msra.mxu1 %v7737_v33  ;;  %5287 = vmatprep.subr.bf16.mxu0 %v7742_v34  ;;  %v7785_v33 = vld [vmem:[%s11144_s1 + $0x8c] ss:$16 sps:$4 sm:$0xff]   ;;  %v7783_v34 = vld [vmem:[%s11144_s1 + $0x88] ss:$16 sps:$4 sm:$0xff]  }
 0x175   :  { %5328 = vmatprep.subr.bf16.mxu1 %v7745_v41  ;;  %v7786_v41 = vld [vmem:[%s11145_s0 + $0x60] ss:$0 sps:$4 sm:$0xff]  }
 0x177   :  { %5288 = vmatpush2.bf16.msra.mxu0 %v7740_v22  ;;  %v7789_v22 = vld [vmem:[%s11144_s1 + $0x6c] ss:$16 sps:$4 sm:$0xff]  }
 0x178   :  { %5329 = vmatpush2.bf16.msra.mxu1 %v7743_v23  ;;  %5289 = vmatprep.subr.bf16.mxu0 %v7748_v44  ;;  %v7792_v23 = vld [vmem:[%s11144_s1 + $0x2ec] ss:$16 sps:$4 sm:$0xff]   ;;  %v7787_v44 = vld [vmem:[%s11144_s1 + $0x68] ss:$16 sps:$4 sm:$0xff]  }
 0x179   :  { %5330 = vmatprep.subr.bf16.mxu1 %v7751_v45  ;;  %v7790_v45 = vld [vmem:[%s11144_s1 + $0x2e8] ss:$16 sps:$4 sm:$0xff]  }
 0x17b   :  { %5290 = vmatpush2.bf16.msra.mxu0 %v7746_v46  ;;  %v7795_v46 = vld [vmem:[%s11144_s1 + $0x4c] ss:$16 sps:$4 sm:$0xff]  }
 0x17c   :  { %5331 = vmatpush2.bf16.msra.mxu1 %v7749_v48  ;;  %5291 = vmatprep.subr.bf16.mxu0 %v7754_v49  ;;  %v7798_v48 = vld [vmem:[%s11144_s1 + $0x2cc] ss:$16 sps:$4 sm:$0xff]   ;;  %v7793_v49 = vld [vmem:[%s11144_s1 + $0x48] ss:$16 sps:$4 sm:$0xff]  }
 0x17d   :  { %5332 = vmatprep.subr.bf16.mxu1 %v7757_v50  ;;  %v7796_v50 = vld [vmem:[%s11144_s1 + $0x2c8] ss:$16 sps:$4 sm:$0xff]  }
 0x17f   :  { %5292 = vmatpush2.bf16.msra.mxu0 %v7752_v52  ;;  %v7801_v52 = vld [vmem:[%s11144_s1 + $0x2c] ss:$16 sps:$4 sm:$0xff]  }
 0x180   :  { %5333 = vmatpush2.bf16.msra.mxu1 %v7755_v53  ;;  %5351 = vmatprep.subr.bf16.mxu0 %v7764_v55  ;;  %v7804_v53 = vld [vmem:[%s11144_s1 + $0x2ac] ss:$16 sps:$4 sm:$0xff]   ;;  %v7799_v55 = vld [vmem:[%s11144_s1 + $0x28] ss:$16 sps:$4 sm:$0xff]  }
 0x181   :  { %5384 = vmatprep.subr.bf16.mxu1 %v7767_v56  ;;  %v7802_v56 = vld [vmem:[%s11144_s1 + $0x2a8] ss:$16 sps:$4 sm:$0xff]  }
 0x182   :  { %v5049_v5 = vpop.f32.mrf.mxu0  ;;  %5294 = vmatmul.mubr.bf16.vlgmr.msra.gmra.mxu0 %v9769_v63 }
 0x183   :  { %v5090_v8 = vpop.f32.mrf.mxu1  ;;  %5335 = vmatmul.mubr.bf16.vlgmr.msra.gmra.mxu1 %v9773_v4  ;;  %v5050_v11 = vadd.f32 %v5049_v5, %v9586_v18  ;;  %5352 = vmatpush1.bf16.msra.mxu0 %v7762_v59  ;;  %v7774_v18 = vld [vmem:[%s11144_s1 + $0x1820] ss:$16 sps:$4 sm:$0xff]   ;;  %v7807_v59 = vld [vmem:[%s11144_s1 + $0xc] ss:$16 sps:$4 sm:$0xff]   ;;  %v7814_v5 = vld [vmem:[%s11144_s1 + $0x268] ss:$16 sps:$4 sm:$0xff]  }
 0x184   :  { %5385 = vmatpush1.bf16.msra.mxu1 %v7765_v60  ;;  %v5051_v12 = vpop.f32.mrf.mxu0  ;;  %5353 = vmatprep.subr.bf16.mxu0 %v7770_v2  ;;  %v7805_v60 = vld [vmem:[%s11144_s1 + $0x8] ss:$16 sps:$4 sm:$0xff]  }
 0x185   :  { %v5092_v13 = vpop.f32.mrf.mxu1  ;;  %5386 = vmatprep.subr.bf16.mxu1 %v7773_v3  ;;  %v9796_v19 = vadd.f32 %v5090_v8, %v5050_v11  ;;  %v5052_v26 = vadd.f32 %v5051_v12, %v9597_v28  ;;  %5375 = vmatprep.mubr.bf16.mxu0 %v8397_v21  ;;  %v7808_v2 = vld [vmem:[%s11144_s1 + $0x288] ss:$16 sps:$4 sm:$0xff]   ;;  %v7813_v3 = vld [vmem:[%s11144_s1 + $0x1ec] ss:$16 sps:$4 sm:$0xff]  }
 0x186   :  { %5416 = vmatprep.mubr.bf16.mxu1 %v8569_v47  ;;  %v5053_v27 = vpop.f32.mrf.mxu0  ;;  %v7780_v47 = vld [vmem:[%s11144_s1 + $0x1800] ss:$16 sps:$4 sm:$0xff]   ;;  %v7819_v8 = vld [vmem:[%s11144_s1 + $0x1cc] ss:$16 sps:$4 sm:$0xff]   ;;  %v7817_v12 = vld [vmem:[%s11144_s1 + $0x1c8] ss:$16 sps:$4 sm:$0xff]  }
 0x187   :  { %v5094_v29 = vpop.f32.mrf.mxu1  ;;  %v9807_v31 = vadd.f32 %v5092_v13, %v5052_v26  ;;  %5354 = vmatpush1.bf16.msra.mxu0 %v7768_v57  ;;  %v7816_v57 = vld [vmem:[%s11144_s1 + $0x26c] ss:$16 sps:$4 sm:$0xff]   ;;  %v7820_v13 = vld [vmem:[%s11144_s1 + $0x248] ss:$16 sps:$4 sm:$0xff]  }
 0x188   :  { %5387 = vmatpush1.bf16.msra.mxu1 %v7771_v58  ;;  %v5054_v28 = vpop.f32.mrf.mxu0  ;;  %5355 = vmatprep.subr.bf16.mxu0 %v7776_v14  ;;  %v7811_v58 = vld [vmem:[%s11144_s1 + $0x1e8] ss:$16 sps:$4 sm:$0xff]   ;;  %v7822_v11 = vld [vmem:[%s11144_s1 + $0x24c] ss:$16 sps:$4 sm:$0xff]  }
 0x189   :  { %v5095_v30 = vpop.f32.mrf.mxu1  ;;  %5388 = vmatprep.subr.bf16.mxu1 %v7779_v15  ;;  %v7825_v14 = vld [vmem:[%s11144_s1 + $0x1ac] ss:$16 sps:$4 sm:$0xff]   ;;  %v7823_v26 = vld [vmem:[%s11144_s1 + $0x1a8] ss:$16 sps:$4 sm:$0xff]  }
 0x18a   :  { %v7828_v15 = vld [vmem:[%s11144_s1 + $0x22c] ss:$16 sps:$4 sm:$0xff]   ;;  %v7829_v29 = vld [vmem:[%s11144_s1 + $0x188] ss:$16 sps:$4 sm:$0xff]  }
 0x18b   :  { %5356 = vmatpush1.bf16.msra.mxu0 %v7774_v18  ;;  %v7826_v18 = vld [vmem:[%s11144_s1 + $0x228] ss:$16 sps:$4 sm:$0xff]   ;;  %v7834_v27 = vld [vmem:[%s11144_s1 + $0x20c] ss:$16 sps:$4 sm:$0xff]  }
 0x18c   :  { %5389 = vmatpush1.bf16.msra.mxu1 %v7777_v20  ;;  %5357 = vmatprep.subr.bf16.mxu0 %v7782_v32  ;;  %v7831_v20 = vld [vmem:[%s11144_s1 + $0x18c] ss:$16 sps:$4 sm:$0xff]   ;;  %v7832_v28 = vld [vmem:[%s11144_s1 + $0x208] ss:$16 sps:$4 sm:$0xff]  }
 0x18d   :  { %5390 = vmatprep.subr.bf16.mxu1 %v7785_v33  ;;  %v7837_v30 = vld [vmem:[%s11144_s1 + $0x16c] ss:$16 sps:$4 sm:$0xff]   ;;  %v7835_v33 = vld [vmem:[%s11144_s1 + $0x168] ss:$16 sps:$4 sm:$0xff]  }
 0x18e   :  { %v7840_v32 = vld [vmem:[%s11144_s1 + $0x3ec] ss:$16 sps:$4 sm:$0xff]  }
 0x18f   :  { %5358 = vmatpush1.bf16.msra.mxu0 %v7780_v47  ;;  %v7838_v47 = vld [vmem:[%s11144_s1 + $0x3e8] ss:$16 sps:$4 sm:$0xff]  }
 0x190   :  { %5391 = vmatpush1.bf16.msra.mxu1 %v7783_v34  ;;  %5425 = vmatprep.subr.bf16.mxu0 %v7792_v23  ;;  %v7843_v34 = vld [vmem:[%s11144_s1 + $0x14c] ss:$16 sps:$4 sm:$0xff]   ;;  %v7844_v23 = vld [vmem:[%s11144_s1 + $0x3c8] ss:$16 sps:$4 sm:$0xff]  }
 0x191   :  { %5392 = vmatprep.subr.bf16.mxu1 %v7789_v22  ;;  %v7841_v22 = vld [vmem:[%s11144_s1 + $0x148] ss:$16 sps:$4 sm:$0xff]  }
 0x192   :  { %7082 = vmatmul.mubr.msk.bf16.vlgmr.msra.gmra.mxu0 %vm4847_vm0, %v7786_v41  ;;  %v7846_v41 = vld [vmem:[%s11144_s1 + $0x3cc] ss:$16 sps:$4 sm:$0xff]  }
 0x193   :  { %5426 = vmatpush1.bf16.msra.mxu0 %v7790_v45  ;;  %5457 = vmatprep.mubr.bf16.mxu0 %v8580_v51  ;;  %v7810_v51 = vld [vmem:[%s11144_s1 + $0x28c] ss:$16 sps:$4 sm:$0xff]  }
 0x194   :  { %5393 = vmatpush1.bf16.msra.mxu1 %v7787_v44  ;;  %5427 = vmatprep.subr.bf16.mxu0 %v7798_v48  ;;  %v7849_v44 = vld [vmem:[%s11144_s1 + $0x12c] ss:$16 sps:$4 sm:$0xff]   ;;  %v7850_v48 = vld [vmem:[%s11144_s1 + $0x3a8] ss:$16 sps:$4 sm:$0xff]  }
 0x195   :  { %5394 = vmatprep.subr.bf16.mxu1 %v7795_v46  ;;  %v7852_v45 = vld [vmem:[%s11144_s1 + $0x3ac] ss:$16 sps:$4 sm:$0xff]   ;;  %v7847_v46 = vld [vmem:[%s11144_s1 + $0x128] ss:$16 sps:$4 sm:$0xff]  }
 0x197   :  { %5428 = vmatpush1.bf16.msra.mxu0 %v7796_v50  ;;  %v7858_v50 = vld [vmem:[%s11144_s1 + $0x38c] ss:$16 sps:$4 sm:$0xff]  }
 0x198   :  { %5395 = vmatpush1.bf16.msra.mxu1 %v7793_v49  ;;  %5429 = vmatprep.subr.bf16.mxu0 %v7804_v53  ;;  %v7855_v49 = vld [vmem:[%s11144_s1 + $0x10c] ss:$16 sps:$4 sm:$0xff]   ;;  %v7856_v53 = vld [vmem:[%s11144_s1 + $0x388] ss:$16 sps:$4 sm:$0xff]  }
 0x199   :  { %5396 = vmatprep.subr.bf16.mxu1 %v7801_v52  ;;  %v7853_v52 = vld [vmem:[%s11144_s1 + $0x108] ss:$16 sps:$4 sm:$0xff]  }
 0x19b   :  { %5430 = vmatpush1.bf16.msra.mxu0 %v7802_v56  ;;  %v7864_v56 = vld [vmem:[%s11144_s1 + $0x4ec] ss:$16 sps:$4 sm:$0xff]  }
 0x19c   :  { %5397 = vmatpush1.bf16.msra.mxu1 %v7799_v55  ;;  %5431 = vmatprep.subr.bf16.mxu0 %v7810_v51  ;;  %v7861_v55 = vld [vmem:[%s11144_s1 + $0x36c] ss:$16 sps:$4 sm:$0xff]   ;;  %v7862_v51 = vld [vmem:[%s11144_s1 + $0x4e8] ss:$16 sps:$4 sm:$0xff]  }
 0x19d   :  { %5398 = vmatprep.subr.bf16.mxu1 %v7807_v59  ;;  %v7859_v59 = vld [vmem:[%s11144_s1 + $0x368] ss:$16 sps:$4 sm:$0xff]  }
 0x19f   :  { %5432 = vmatpush1.bf16.msra.mxu0 %v7808_v2  ;;  %v7870_v2 = vld [vmem:[%s11144_s1 + $0x4cc] ss:$16 sps:$4 sm:$0xff]  }
 0x1a0   :  { %5399 = vmatpush1.bf16.msra.mxu1 %v7805_v60  ;;  %5433 = vmatprep.subr.bf16.mxu0 %v7816_v57  ;;  %v7867_v60 = vld [vmem:[%s11144_s1 + $0x34c] ss:$16 sps:$4 sm:$0xff]   ;;  %v7868_v57 = vld [vmem:[%s11144_s1 + $0x4c8] ss:$16 sps:$4 sm:$0xff]  }
 0x1a1   :  { %5400 = vmatprep.subr.bf16.mxu1 %v7813_v3  ;;  %v7865_v3 = vld [vmem:[%s11144_s1 + $0x348] ss:$16 sps:$4 sm:$0xff]  }
 0x1a3   :  { %5434 = vmatpush1.bf16.msra.mxu0 %v7814_v5 }
 0x1a4   :  { %5401 = vmatpush2.bf16.msra.mxu1 %v7811_v58  ;;  %5435 = vmatprep.subr.bf16.mxu0 %v7822_v11 }
 0x1a5   :  { %5402 = vmatprep.subr.bf16.mxu1 %v7819_v8 }
 0x1a7   :  { %5436 = vmatpush1.bf16.msra.mxu0 %v7820_v13  ;;  %v7873_v13 = vld [vmem:[%s11144_s1 + $0x32c] ss:$16 sps:$4 sm:$0xff]  }
 0x1a8   :  { %5403 = vmatpush2.bf16.msra.mxu1 %v7817_v12  ;;  %5437 = vmatprep.subr.bf16.mxu0 %v7828_v15 }
 0x1a9   :  { %5404 = vmatprep.subr.bf16.mxu1 %v7825_v14  ;;  %v7876_v14 = vld [vmem:[%s11144_s1 + $0x4ac] ss:$16 sps:$4 sm:$0xff]  }
 0x1ab   :  { %5438 = vmatpush1.bf16.msra.mxu0 %v7826_v18 }
 0x1ac   :  { %5405 = vmatpush2.bf16.msra.mxu1 %v7823_v26  ;;  %5439 = vmatprep.subr.bf16.mxu0 %v7834_v27  ;;  %v7874_v26 = vld [vmem:[%s11144_s1 + $0x4a8] ss:$16 sps:$4 sm:$0xff]  }
 0x1ad   :  { %5406 = vmatprep.subr.bf16.mxu1 %v7831_v20 }
 0x1af   :  { %5440 = vmatpush1.bf16.msra.mxu0 %v7832_v28 }
 0x1b0   :  { %5407 = vmatpush2.bf16.msra.mxu1 %v7829_v29  ;;  %5441 = vmatprep.subr.bf16.mxu0 %v7840_v32  ;;  %v7880_v32 = vld [vmem:[%s11144_s1 + $0x488] ss:$16 sps:$4 sm:$0xff]  }
 0x1b1   :  { %5408 = vmatprep.subr.bf16.mxu1 %v7837_v30  ;;  %v7882_v30 = vld [vmem:[%s11144_s1 + $0x48c] ss:$16 sps:$4 sm:$0xff]  }
 0x1b3   :  { %5442 = vmatpush2.bf16.msra.mxu0 %v7838_v47  ;;  %v7888_v47 = vld [vmem:[%s11144_s1 + $0x6ec] ss:$16 sps:$4 sm:$0xff]  }
 0x1b4   :  { %5409 = vmatpush2.bf16.msra.mxu1 %v7835_v33  ;;  %5443 = vmatprep.subr.bf16.mxu0 %v7846_v41  ;;  %v7885_v33 = vld [vmem:[%s11144_s1 + $0x46c] ss:$16 sps:$4 sm:$0xff]   ;;  %v7886_v41 = vld [vmem:[%s11144_s1 + $0x6e8] ss:$16 sps:$4 sm:$0xff]  }
 0x1b5   :  { %5410 = vmatprep.subr.bf16.mxu1 %v7843_v34  ;;  %v7883_v34 = vld [vmem:[%s11144_s1 + $0x468] ss:$16 sps:$4 sm:$0xff]  }
 0x1b7   :  { %5444 = vmatpush2.bf16.msra.mxu0 %v7844_v23  ;;  %v7894_v23 = vld [vmem:[%s11144_s1 + $0x6cc] ss:$16 sps:$4 sm:$0xff]  }
 0x1b8   :  { %5411 = vmatpush2.bf16.msra.mxu1 %v7841_v22  ;;  %5445 = vmatprep.subr.bf16.mxu0 %v7852_v45  ;;  %v7891_v22 = vld [vmem:[%s11144_s1 + $0x44c] ss:$16 sps:$4 sm:$0xff]   ;;  %v7892_v45 = vld [vmem:[%s11144_s1 + $0x6c8] ss:$16 sps:$4 sm:$0xff]  }
 0x1b9   :  { %5412 = vmatprep.subr.bf16.mxu1 %v7849_v44  ;;  %v7889_v44 = vld [vmem:[%s11144_s1 + $0x448] ss:$16 sps:$4 sm:$0xff]  }
 0x1bb   :  { %5446 = vmatpush2.bf16.msra.mxu0 %v7850_v48  ;;  %v7895_v48 = vld [vmem:[%s11144_s1 + $0x428] ss:$16 sps:$4 sm:$0xff]  }
 0x1bc   :  { %5413 = vmatpush2.bf16.msra.mxu1 %v7847_v46  ;;  %5447 = vmatprep.subr.bf16.mxu0 %v7858_v50  ;;  %v7897_v46 = vld [vmem:[%s11144_s1 + $0x42c] ss:$16 sps:$4 sm:$0xff]  }
 0x1bd   :  { %5414 = vmatprep.subr.bf16.mxu1 %v7855_v49  ;;  %v7898_v49 = vld [vmem:[%s11144_s1 + $0x6a8] ss:$16 sps:$4 sm:$0xff]   ;;  %v7903_v50 = vld [vmem:[%s11144_s1 + $0x40c] ss:$16 sps:$4 sm:$0xff]  }
 0x1bf   :  { %5448 = vmatpush2.bf16.msra.mxu0 %v7856_v53  ;;  %v7904_v53 = vld [vmem:[%s11144_s1 + $0x688] ss:$16 sps:$4 sm:$0xff]  }
 0x1c0   :  { %5415 = vmatpush2.bf16.msra.mxu1 %v7853_v52  ;;  %5449 = vmatprep.subr.bf16.mxu0 %v7861_v55  ;;  %v7901_v52 = vld [vmem:[%s11144_s1 + $0x408] ss:$16 sps:$4 sm:$0xff]   ;;  %v7909_v55 = vld [vmem:[%s11144_s1 + $0x5ec] ss:$16 sps:$4 sm:$0xff]  }
 0x1c1   :  { %5466 = vmatprep.subr.bf16.mxu1 %v7864_v56  ;;  %v7912_v56 = vld [vmem:[%s11144_s1 + $0x66c] ss:$16 sps:$4 sm:$0xff]  }
 0x1c2   :  { %v5131_v58 = vpop.f32.mrf.mxu0 }
 0x1c3   :  { %v5172_v5 = vpop.f32.mrf.mxu1  ;;  %5417 = vmatmul.mubr.bf16.vlgmr.msra.gmra.mxu1 %v8638_v6  ;;  %v5132_v8 = vadd.f32 %v5131_v58, %v9796_v19  ;;  %5450 = vmatpush2.bf16.msra.mxu0 %v7859_v59  ;;  %v7871_v19 = vld [vmem:[%s11144_s1 + $0x328] ss:$16 sps:$4 sm:$0xff]   ;;  %v7921_v58 = vld [vmem:[%s11144_s1 + $0x5ac] ss:$16 sps:$4 sm:$0xff]  }
 0x1c4   :  { %5467 = vmatpush1.bf16.msra.mxu1 %v7862_v51  ;;  %v5133_v11 = vpop.f32.mrf.mxu0  ;;  %5451 = vmatprep.subr.bf16.mxu0 %v7867_v60  ;;  %v7907_v59 = vld [vmem:[%s11144_s1 + $0x5e8] ss:$16 sps:$4 sm:$0xff]   ;;  %v7915_v60 = vld [vmem:[%s11144_s1 + $0x5cc] ss:$16 sps:$4 sm:$0xff]  }
 0x1c5   :  { %v5174_v12 = vpop.f32.mrf.mxu1  ;;  %5468 = vmatprep.subr.bf16.mxu1 %v7870_v2  ;;  %v10002_v15 = vadd.f32 %v5172_v5, %v5132_v8  ;;  %v5134_v6 = vadd.f32 %v5133_v11, %v9807_v31  ;;  %5498 = vmatprep.mubr.bf16.mxu1 %v8734_v36  ;;  %v7879_v31 = vld [vmem:[%s11144_s1 + $0x30c] ss:$16 sps:$4 sm:$0xff]   ;;  %v7877_v36 = vld [vmem:[%s11144_s1 + $0x308] ss:$16 sps:$4 sm:$0xff]  }
 0x1c6   :  { %v5135_v18 = vpop.f32.mrf.mxu0  ;;  %v7910_v51 = vld [vmem:[%s11144_s1 + $0x668] ss:$16 sps:$4 sm:$0xff]   ;;  %v7918_v2 = vld [vmem:[%s11144_s1 + $0x64c] ss:$16 sps:$4 sm:$0xff]  }
 0x1c7   :  { %v5176_v20 = vpop.f32.mrf.mxu1  ;;  %v10012_v27 = vadd.f32 %v5174_v12, %v5134_v6  ;;  %5452 = vmatpush2.bf16.msra.mxu0 %v7865_v3  ;;  %v7913_v3 = vld [vmem:[%s11144_s1 + $0x5c8] ss:$16 sps:$4 sm:$0xff]   ;;  %v7924_v5 = vld [vmem:[%s11144_s1 + $0x62c] ss:$16 sps:$4 sm:$0xff]  }
 0x1c8   :  { %5469 = vmatpush1.bf16.msra.mxu1 %v7868_v57  ;;  %v5136_v29 = vpop.f32.mrf.mxu0  ;;  %5453 = vmatprep.subr.bf16.mxu0 %v7873_v13  ;;  %v7916_v57 = vld [vmem:[%s11144_s1 + $0x648] ss:$16 sps:$4 sm:$0xff]   ;;  %v7927_v12 = vld [vmem:[%s11144_s1 + $0x58c] ss:$16 sps:$4 sm:$0xff]  }
 0x1c9   :  { %v5177_v28 = vpop.f32.mrf.mxu1  ;;  %5470 = vmatprep.subr.bf16.mxu1 %v7876_v14  ;;  %v7919_v8 = vld [vmem:[%s11144_s1 + $0x5a8] ss:$16 sps:$4 sm:$0xff]   ;;  %v7930_v13 = vld [vmem:[%s11144_s1 + $0x60c] ss:$16 sps:$4 sm:$0xff]  }
 0x1ca   :  { %v7922_v11 = vld [vmem:[%s11144_s1 + $0x628] ss:$16 sps:$4 sm:$0xff]   ;;  %v7939_v29 = vld [vmem:[%s11144_s1 + $0x54c] ss:$16 sps:$4 sm:$0xff]  }
 0x1cb   :  { %5454 = vmatpush2.bf16.msra.mxu0 %v7871_v19  ;;  %v7925_v14 = vld [vmem:[%s11144_s1 + $0x588] ss:$16 sps:$4 sm:$0xff]   ;;  %v7933_v19 = vld [vmem:[%s11144_s1 + $0x56c] ss:$16 sps:$4 sm:$0xff]  }
 0x1cc   :  { %5471 = vmatpush1.bf16.msra.mxu1 %v7874_v26  ;;  %5455 = vmatprep.subr.bf16.mxu0 %v7879_v31  ;;  %v7928_v6 = vld [vmem:[%s11144_s1 + $0x608] ss:$16 sps:$4 sm:$0xff]   ;;  %v7936_v26 = vld [vmem:[%s11144_s1 + $0x7ec] ss:$16 sps:$4 sm:$0xff]  }
 0x1cd   :  { %5472 = vmatprep.subr.bf16.mxu1 %v7882_v30  ;;  %v7931_v18 = vld [vmem:[%s11144_s1 + $0x568] ss:$16 sps:$4 sm:$0xff]   ;;  %v7942_v28 = vld [vmem:[%s11144_s1 + $0x7cc] ss:$16 sps:$4 sm:$0xff]  }
 0x1ce   :  { %v7934_v20 = vld [vmem:[%s11144_s1 + $0x7e8] ss:$16 sps:$4 sm:$0xff]  }
 0x1cf   :  { %5456 = vmatpush2.bf16.msra.mxu0 %v7877_v36  ;;  %v7937_v31 = vld [vmem:[%s11144_s1 + $0x548] ss:$16 sps:$4 sm:$0xff]   ;;  %v7945_v36 = vld [vmem:[%s11144_s1 + $0x52c] ss:$16 sps:$4 sm:$0xff]  }
 0x1d0   :  { %5473 = vmatpush1.bf16.msra.mxu1 %v7880_v32  ;;  %5507 = vmatprep.subr.bf16.mxu0 %v7888_v47  ;;  %v7940_v30 = vld [vmem:[%s11144_s1 + $0x7c8] ss:$16 sps:$4 sm:$0xff]   ;;  %v7948_v32 = vld [vmem:[%s11144_s1 + $0x7ac] ss:$16 sps:$4 sm:$0xff]  }
 0x1d1   :  { %5474 = vmatprep.subr.bf16.mxu1 %v7885_v33  ;;  %v7943_v33 = vld [vmem:[%s11144_s1 + $0x528] ss:$16 sps:$4 sm:$0xff]  }
 0x1d2   :  { %5458 = vmatmul.mubr.bf16.vlgmr.msra.gmra.mxu0 %v8640_v7  ;;  %v7900_v7 = vld [vmem:[%s11144_s1 + $0x6ac] ss:$16 sps:$4 sm:$0xff]   ;;  %v7946_v47 = vld [vmem:[%s11144_s1 + $0x7a8] ss:$16 sps:$4 sm:$0xff]  }
 0x1d3   :  { %5508 = vmatpush1.bf16.msra.mxu0 %v7886_v41  ;;  %5539 = vmatprep.mubr.bf16.mxu0 %v8738_v37  ;;  %v7906_v37 = vld [vmem:[%s11144_s1 + $0x68c] ss:$16 sps:$4 sm:$0xff]  }
 0x1d4   :  { %5475 = vmatpush1.bf16.msra.mxu1 %v7883_v34  ;;  %5509 = vmatprep.subr.bf16.mxu0 %v7894_v23  ;;  %v7951_v34 = vld [vmem:[%s11144_s1 + $0x50c] ss:$16 sps:$4 sm:$0xff]   ;;  %v7952_v23 = vld [vmem:[%s11144_s1 + $0x788] ss:$16 sps:$4 sm:$0xff]  }
 0x1d5   :  { %5476 = vmatprep.subr.bf16.mxu1 %v7891_v22  ;;  %v7954_v41 = vld [vmem:[%s11144_s1 + $0x78c] ss:$16 sps:$4 sm:$0xff]   ;;  %v7949_v22 = vld [vmem:[%s11144_s1 + $0x508] ss:$16 sps:$4 sm:$0xff]  }
 0x1d7   :  { %5510 = vmatpush1.bf16.msra.mxu0 %v7892_v45  ;;  %v7960_v45 = vld [vmem:[%s11144_s1 + $0x8ec] ss:$16 sps:$4 sm:$0xff]  }
 0x1d8   :  { %5477 = vmatpush1.bf16.msra.mxu1 %v7889_v44  ;;  %5511 = vmatprep.subr.bf16.mxu0 %v7900_v7  ;;  %v7957_v44 = vld [vmem:[%s11144_s1 + $0x76c] ss:$16 sps:$4 sm:$0xff]   ;;  %v7958_v7 = vld [vmem:[%s11144_s1 + $0x8e8] ss:$16 sps:$4 sm:$0xff]  }
 0x1d9   :  { %5478 = vmatprep.subr.bf16.mxu1 %v7897_v46  ;;  %v7955_v46 = vld [vmem:[%s11144_s1 + $0x768] ss:$16 sps:$4 sm:$0xff]  }
 0x1db   :  { %5512 = vmatpush1.bf16.msra.mxu0 %v7898_v49  ;;  %v7966_v49 = vld [vmem:[%s11144_s1 + $0x8cc] ss:$16 sps:$4 sm:$0xff]  }
 0x1dc   :  { %5479 = vmatpush1.bf16.msra.mxu1 %v7895_v48  ;;  %5513 = vmatprep.subr.bf16.mxu0 %v7906_v37  ;;  %v7963_v48 = vld [vmem:[%s11144_s1 + $0x74c] ss:$16 sps:$4 sm:$0xff]  }
 0x1dd   :  { %5480 = vmatprep.subr.bf16.mxu1 %v7903_v50 }
 0x1df   :  { %5514 = vmatpush1.bf16.msra.mxu0 %v7904_v53  ;;  %v7961_v53 = vld [vmem:[%s11144_s1 + $0x748] ss:$16 sps:$4 sm:$0xff]  }
 0x1e0   :  { %5481 = vmatpush1.bf16.msra.mxu1 %v7901_v52  ;;  %5515 = vmatprep.subr.bf16.mxu0 %v7912_v56 }
 0x1e1   :  { %5482 = vmatprep.subr.bf16.mxu1 %v7909_v55  ;;  %v7964_v55 = vld [vmem:[%s11144_s1 + $0x8c8] ss:$16 sps:$4 sm:$0xff]  }
 0x1e3   :  { %5516 = vmatpush1.bf16.msra.mxu0 %v7910_v51 }
 0x1e4   :  { %5483 = vmatpush2.bf16.msra.mxu1 %v7907_v59  ;;  %5517 = vmatprep.subr.bf16.mxu0 %v7918_v2 }
 0x1e5   :  { %5484 = vmatprep.subr.bf16.mxu1 %v7915_v60 }
 0x1e7   :  { %5518 = vmatpush1.bf16.msra.mxu0 %v7916_v57 }
 0x1e8   :  { %5485 = vmatpush2.bf16.msra.mxu1 %v7913_v3  ;;  %5519 = vmatprep.subr.bf16.mxu0 %v7924_v5  ;;  %v7970_v5 = vld [vmem:[%s11144_s1 + $0x8a8] ss:$16 sps:$4 sm:$0xff]  }
 0x1e9   :  { %5486 = vmatprep.subr.bf16.mxu1 %v7921_v58  ;;  %v7967_v58 = vld [vmem:[%s11144_s1 + $0x728] ss:$16 sps:$4 sm:$0xff]  }
 0x1eb   :  { %5520 = vmatpush1.bf16.msra.mxu0 %v7922_v11 }
 0x1ec   :  { %5487 = vmatpush2.bf16.msra.mxu1 %v7919_v8  ;;  %5521 = vmatprep.subr.bf16.mxu0 %v7930_v13  ;;  %v7976_v13 = vld [vmem:[%s11144_s1 + $0x888] ss:$16 sps:$4 sm:$0xff]  }
 0x1ed   :  { %5488 = vmatprep.subr.bf16.mxu1 %v7927_v12  ;;  %v7973_v12 = vld [vmem:[%s11144_s1 + $0x708] ss:$16 sps:$4 sm:$0xff]  }
 0x1ef   :  { %5522 = vmatpush1.bf16.msra.mxu0 %v7928_v6  ;;  %v7984_v6 = vld [vmem:[%s11144_s1 + $0xaec] ss:$16 sps:$4 sm:$0xff]  }
 0x1f0   :  { %5489 = vmatpush2.bf16.msra.mxu1 %v7925_v14  ;;  %5523 = vmatprep.subr.bf16.mxu0 %v7936_v26  ;;  %v7981_v14 = vld [vmem:[%s11144_s1 + $0x86c] ss:$16 sps:$4 sm:$0xff]   ;;  %v7982_v26 = vld [vmem:[%s11144_s1 + $0xae8] ss:$16 sps:$4 sm:$0xff]  }
 0x1f1   :  { %5490 = vmatprep.subr.bf16.mxu1 %v7933_v19  ;;  %v7979_v19 = vld [vmem:[%s11144_s1 + $0x868] ss:$16 sps:$4 sm:$0xff]  }
 0x1f3   :  { %5524 = vmatpush2.bf16.msra.mxu0 %v7934_v20  ;;  %v7990_v20 = vld [vmem:[%s11144_s1 + $0xacc] ss:$16 sps:$4 sm:$0xff]  }
 0x1f4   :  { %5491 = vmatpush2.bf16.msra.mxu1 %v7931_v18  ;;  %5525 = vmatprep.subr.bf16.mxu0 %v7942_v28  ;;  %v7987_v18 = vld [vmem:[%s11144_s1 + $0x84c] ss:$16 sps:$4 sm:$0xff]   ;;  %v7988_v28 = vld [vmem:[%s11144_s1 + $0xac8] ss:$16 sps:$4 sm:$0xff]  }
 0x1f5   :  { %5492 = vmatprep.subr.bf16.mxu1 %v7939_v29  ;;  %v7985_v29 = vld [vmem:[%s11144_s1 + $0x848] ss:$16 sps:$4 sm:$0xff]  }
 0x1f7   :  { %5526 = vmatpush2.bf16.msra.mxu0 %v7940_v30  ;;  %v7991_v30 = vld [vmem:[%s11144_s1 + $0x828] ss:$16 sps:$4 sm:$0xff]  }
 0x1f8   :  { %5493 = vmatpush2.bf16.msra.mxu1 %v7937_v31  ;;  %5527 = vmatprep.subr.bf16.mxu0 %v7948_v32  ;;  %v7993_v31 = vld [vmem:[%s11144_s1 + $0x82c] ss:$16 sps:$4 sm:$0xff]  }
 0x1f9   :  { %5494 = vmatprep.subr.bf16.mxu1 %v7945_v36  ;;  %v7994_v36 = vld [vmem:[%s11144_s1 + $0xaa8] ss:$16 sps:$4 sm:$0xff]   ;;  %v7999_v32 = vld [vmem:[%s11144_s1 + $0x80c] ss:$16 sps:$4 sm:$0xff]  }
 0x1fb   :  { %5528 = vmatpush2.bf16.msra.mxu0 %v7946_v47  ;;  %v8000_v47 = vld [vmem:[%s11144_s1 + $0xa88] ss:$16 sps:$4 sm:$0xff]  }
 0x1fc   :  { %5495 = vmatpush2.bf16.msra.mxu1 %v7943_v33  ;;  %5529 = vmatprep.subr.bf16.mxu0 %v7954_v41  ;;  %v7997_v33 = vld [vmem:[%s11144_s1 + $0x808] ss:$16 sps:$4 sm:$0xff]   ;;  %v8008_v41 = vld [vmem:[%s11144_s1 + $0xa6c] ss:$16 sps:$4 sm:$0xff]  }
 0x1fd   :  { %5496 = vmatprep.subr.bf16.mxu1 %v7951_v34  ;;  %v8005_v34 = vld [vmem:[%s11144_s1 + $0x9ec] ss:$16 sps:$4 sm:$0xff]  }
 0x1ff   :  { %5530 = vmatpush2.bf16.msra.mxu0 %v7952_v23  ;;  %v8006_v23 = vld [vmem:[%s11144_s1 + $0xa68] ss:$16 sps:$4 sm:$0xff]  }
 0x200   :  { %5497 = vmatpush2.bf16.msra.mxu1 %v7949_v22  ;;  %5531 = vmatprep.subr.bf16.mxu0 %v7957_v44  ;;  %v8003_v22 = vld [vmem:[%s11144_s1 + $0x9e8] ss:$16 sps:$4 sm:$0xff]   ;;  %v8011_v44 = vld [vmem:[%s11144_s1 + $0x9cc] ss:$16 sps:$4 sm:$0xff]  }
 0x201   :  { %5548 = vmatprep.subr.bf16.mxu1 %v7960_v45  ;;  %v8014_v45 = vld [vmem:[%s11144_s1 + $0xa4c] ss:$16 sps:$4 sm:$0xff]  }
 0x202   :  { %v5213_v50 = vpop.f32.mrf.mxu0 }
 0x203   :  { %v5254_v37 = vpop.f32.mrf.mxu1  ;;  %5499 = vmatmul.mubr.bf16.vlgmr.msra.gmra.mxu1 %v8858_v16  ;;  %v5214_v52 = vadd.f32 %v5213_v50, %v10002_v15  ;;  %5532 = vmatpush2.bf16.msra.mxu0 %v7955_v46  ;;  %v7969_v16 = vld [vmem:[%s11144_s1 + $0x72c] ss:$16 sps:$4 sm:$0xff]   ;;  %v8009_v46 = vld [vmem:[%s11144_s1 + $0x9c8] ss:$16 sps:$4 sm:$0xff]  }
 0x204   :  { %5549 = vmatpush1.bf16.msra.mxu1 %v7958_v7  ;;  %v5215_v56 = vpop.f32.mrf.mxu0  ;;  %5533 = vmatprep.subr.bf16.mxu0 %v7963_v48  ;;  %v7972_v15 = vld [vmem:[%s11144_s1 + $0x8ac] ss:$16 sps:$4 sm:$0xff]   ;;  %v8012_v7 = vld [vmem:[%s11144_s1 + $0xa48] ss:$16 sps:$4 sm:$0xff]  }
 0x205   :  { %v5256_v59 = vpop.f32.mrf.mxu1  ;;  %5550 = vmatprep.subr.bf16.mxu1 %v7966_v49  ;;  %v10204_v51 = vadd.f32 %v5254_v37, %v5214_v52  ;;  %v5216_v60 = vadd.f32 %v5215_v56, %v10012_v27  ;;  %5580 = vmatprep.mubr.bf16.mxu1 %v8888_v24  ;;  %v7975_v24 = vld [vmem:[%s11144_s1 + $0x70c] ss:$16 sps:$4 sm:$0xff]   ;;  %v8015_v50 = vld [vmem:[%s11144_s1 + $0x9a8] ss:$16 sps:$4 sm:$0xff]  }
 0x206   :  { %v5217_v2 = vpop.f32.mrf.mxu0  ;;  %v7978_v27 = vld [vmem:[%s11144_s1 + $0x88c] ss:$16 sps:$4 sm:$0xff]   ;;  %v8018_v37 = vld [vmem:[%s11144_s1 + $0xa28] ss:$16 sps:$4 sm:$0xff]  }
 0x207   :  { %v5258_v3 = vpop.f32.mrf.mxu1  ;;  %v10208_v57 = vadd.f32 %v5256_v59, %v5216_v60  ;;  %5534 = vmatpush2.bf16.msra.mxu0 %v7961_v53  ;;  %v8017_v48 = vld [vmem:[%s11144_s1 + $0x9ac] ss:$16 sps:$4 sm:$0xff]   ;;  %v8024_v56 = vld [vmem:[%s11144_s1 + $0xa08] ss:$16 sps:$4 sm:$0xff]  }
 0x208   :  { %5551 = vmatpush1.bf16.msra.mxu1 %v7964_v55  ;;  %v5218_v8 = vpop.f32.mrf.mxu0  ;;  %5535 = vmatprep.subr.bf16.mxu0 %v7969_v16  ;;  %v8020_v49 = vld [vmem:[%s11144_s1 + $0xa2c] ss:$16 sps:$4 sm:$0xff]   ;;  %v8021_v55 = vld [vmem:[%s11144_s1 + $0x988] ss:$16 sps:$4 sm:$0xff]  }
 0x209   :  { %v5259_v11 = vpop.f32.mrf.mxu1  ;;  %5552 = vmatprep.subr.bf16.mxu1 %v7972_v15  ;;  %v8023_v52 = vld [vmem:[%s11144_s1 + $0x98c] ss:$16 sps:$4 sm:$0xff]   ;;  %v8027_v15 = vld [vmem:[%s11144_s1 + $0x968] ss:$16 sps:$4 sm:$0xff]  }
 0x20a   :  { %v8026_v53 = vld [vmem:[%s11144_s1 + $0xa0c] ss:$16 sps:$4 sm:$0xff]   ;;  %v8030_v60 = vld [vmem:[%s11144_s1 + $0xbe8] ss:$16 sps:$4 sm:$0xff]  }
 0x20b   :  { %5536 = vmatpush2.bf16.msra.mxu0 %v7967_v58  ;;  %v8029_v59 = vld [vmem:[%s11144_s1 + $0x96c] ss:$16 sps:$4 sm:$0xff]   ;;  %v8033_v58 = vld [vmem:[%s11144_s1 + $0x948] ss:$16 sps:$4 sm:$0xff]  }
 0x20c   :  { %5553 = vmatpush1.bf16.msra.mxu1 %v7970_v5  ;;  %5537 = vmatprep.subr.bf16.mxu0 %v7975_v24  ;;  %v8032_v16 = vld [vmem:[%s11144_s1 + $0xbec] ss:$16 sps:$4 sm:$0xff]   ;;  %v8036_v5 = vld [vmem:[%s11144_s1 + $0xbc8] ss:$16 sps:$4 sm:$0xff]  }
 0x20d   :  { %5554 = vmatprep.subr.bf16.mxu1 %v7978_v27  ;;  %v8035_v2 = vld [vmem:[%s11144_s1 + $0x94c] ss:$16 sps:$4 sm:$0xff]   ;;  %v8039_v24 = vld [vmem:[%s11144_s1 + $0x928] ss:$16 sps:$4 sm:$0xff]  }
 0x20e   :  { %v8038_v3 = vld [vmem:[%s11144_s1 + $0xbcc] ss:$16 sps:$4 sm:$0xff]   ;;  %v8042_v27 = vld [vmem:[%s11144_s1 + $0xba8] ss:$16 sps:$4 sm:$0xff]  }
 0x20f   :  { %5538 = vmatpush2.bf16.msra.mxu0 %v7973_v12  ;;  %v8041_v8 = vld [vmem:[%s11144_s1 + $0x92c] ss:$16 sps:$4 sm:$0xff]  }
 0x210   :  { %5555 = vmatpush1.bf16.msra.mxu1 %v7976_v13  ;;  %5589 = vmatprep.subr.bf16.mxu0 %v7984_v6  ;;  %v8044_v11 = vld [vmem:[%s11144_s1 + $0xbac] ss:$16 sps:$4 sm:$0xff]   ;;  %v8048_v6 = vld [vmem:[%s11144_s1 + $0xb88] ss:$16 sps:$4 sm:$0xff]  }
 0x211   :  { %5556 = vmatprep.subr.bf16.mxu1 %v7981_v14  ;;  %v8047_v12 = vld [vmem:[%s11144_s1 + $0x90c] ss:$16 sps:$4 sm:$0xff]   ;;  %v8045_v14 = vld [vmem:[%s11144_s1 + $0x908] ss:$16 sps:$4 sm:$0xff]  }
 0x212   :  { %5540 = vmatmul.mubr.bf16.vlgmr.msra.gmra.mxu0 %v8862_v17  ;;  %v7996_v17 = vld [vmem:[%s11144_s1 + $0xaac] ss:$16 sps:$4 sm:$0xff]  }
 0x213   :  { %5590 = vmatpush1.bf16.msra.mxu0 %v7982_v26  ;;  %5621 = vmatprep.mubr.bf16.mxu0 %v8892_v25  ;;  %v8002_v25 = vld [vmem:[%s11144_s1 + $0xa8c] ss:$16 sps:$4 sm:$0xff]  }
 0x214   :  { %5557 = vmatpush1.bf16.msra.mxu1 %v7979_v19  ;;  %5591 = vmatprep.subr.bf16.mxu0 %v7990_v20  ;;  %v8050_v13 = vld [vmem:[%s11144_s1 + $0xb8c] ss:$16 sps:$4 sm:$0xff]   ;;  %v8054_v20 = vld [vmem:[%s11144_s1 + $0xce8] ss:$16 sps:$4 sm:$0xff]  }
 0x215   :  { %5558 = vmatprep.subr.bf16.mxu1 %v7987_v18  ;;  %v8053_v19 = vld [vmem:[%s11144_s1 + $0xb6c] ss:$16 sps:$4 sm:$0xff]   ;;  %v8051_v18 = vld [vmem:[%s11144_s1 + $0xb68] ss:$16 sps:$4 sm:$0xff]  }
 0x216   :  { %v8056_v26 = vld [vmem:[%s11144_s1 + $0xcec] ss:$16 sps:$4 sm:$0xff]  }
 0x217   :  { %5592 = vmatpush1.bf16.msra.mxu0 %v7988_v28  ;;  %v8062_v28 = vld [vmem:[%s11144_s1 + $0xccc] ss:$16 sps:$4 sm:$0xff]  }
 0x218   :  { %5559 = vmatpush1.bf16.msra.mxu1 %v7985_v29  ;;  %5593 = vmatprep.subr.bf16.mxu0 %v7996_v17  ;;  %v8059_v29 = vld [vmem:[%s11144_s1 + $0xb4c] ss:$16 sps:$4 sm:$0xff]  }
 0x219   :  { %5560 = vmatprep.subr.bf16.mxu1 %v7993_v31 }
 0x21b   :  { %5594 = vmatpush1.bf16.msra.mxu0 %v7994_v36  ;;  %v8057_v36 = vld [vmem:[%s11144_s1 + $0xb48] ss:$16 sps:$4 sm:$0xff]  }
 0x21c   :  { %5561 = vmatpush1.bf16.msra.mxu1 %v7991_v30  ;;  %5595 = vmatprep.subr.bf16.mxu0 %v8002_v25 }
 0x21d   :  { %5562 = vmatprep.subr.bf16.mxu1 %v7999_v32  ;;  %v8060_v32 = vld [vmem:[%s11144_s1 + $0xcc8] ss:$16 sps:$4 sm:$0xff]  }
 0x21f   :  { %5596 = vmatpush1.bf16.msra.mxu0 %v8000_v47 }
 0x220   :  { %5563 = vmatpush1.bf16.msra.mxu1 %v7997_v33  ;;  %5597 = vmatprep.subr.bf16.mxu0 %v8008_v41 }
 0x221   :  { %5564 = vmatprep.subr.bf16.mxu1 %v8005_v34 }
 0x223   :  { %5598 = vmatpush1.bf16.msra.mxu0 %v8006_v23 }
 0x224   :  { %5565 = vmatpush2.bf16.msra.mxu1 %v8003_v22  ;;  %5599 = vmatprep.subr.bf16.mxu0 %v8014_v45  ;;  %v8066_v45 = vld [vmem:[%s11144_s1 + $0xca8] ss:$16 sps:$4 sm:$0xff]  }
 0x225   :  { %5566 = vmatprep.subr.bf16.mxu1 %v8011_v44  ;;  %v8063_v44 = vld [vmem:[%s11144_s1 + $0xb28] ss:$16 sps:$4 sm:$0xff]  }
 0x227   :  { %5600 = vmatpush1.bf16.msra.mxu0 %v8012_v7 }
 0x228   :  { %5567 = vmatpush2.bf16.msra.mxu1 %v8009_v46  ;;  %5601 = vmatprep.subr.bf16.mxu0 %v8020_v49  ;;  %v8072_v49 = vld [vmem:[%s11144_s1 + $0xc88] ss:$16 sps:$4 sm:$0xff]  }
 0x229   :  { %5568 = vmatprep.subr.bf16.mxu1 %v8017_v48  ;;  %v8069_v48 = vld [vmem:[%s11144_s1 + $0xb08] ss:$16 sps:$4 sm:$0xff]  }
 0x22b   :  { %5602 = vmatpush1.bf16.msra.mxu0 %v8018_v37  ;;  %v8080_v37 = vld [vmem:[%s11144_s1 + $0xeec] ss:$16 sps:$4 sm:$0xff]  }
 0x22c   :  { %5569 = vmatpush2.bf16.msra.mxu1 %v8015_v50  ;;  %5603 = vmatprep.subr.bf16.mxu0 %v8026_v53  ;;  %v8077_v50 = vld [vmem:[%s11144_s1 + $0xc6c] ss:$16 sps:$4 sm:$0xff]   ;;  %v8078_v53 = vld [vmem:[%s11144_s1 + $0xee8] ss:$16 sps:$4 sm:$0xff]  }
 0x22d   :  { %5570 = vmatprep.subr.bf16.mxu1 %v8023_v52  ;;  %v8075_v52 = vld [vmem:[%s11144_s1 + $0xc68] ss:$16 sps:$4 sm:$0xff]  }
 0x22f   :  { %5604 = vmatpush1.bf16.msra.mxu0 %v8024_v56  ;;  %v8086_v56 = vld [vmem:[%s11144_s1 + $0xecc] ss:$16 sps:$4 sm:$0xff]  }
 0x230   :  { %5571 = vmatpush2.bf16.msra.mxu1 %v8021_v55  ;;  %5605 = vmatprep.subr.bf16.mxu0 %v8032_v16  ;;  %v8083_v55 = vld [vmem:[%s11144_s1 + $0xc4c] ss:$16 sps:$4 sm:$0xff]  }
 0x231   :  { %5572 = vmatprep.subr.bf16.mxu1 %v8029_v59 }
 0x233   :  { %5606 = vmatpush2.bf16.msra.mxu0 %v8030_v60  ;;  %v8084_v60 = vld [vmem:[%s11144_s1 + $0xec8] ss:$16 sps:$4 sm:$0xff]  }
 0x234   :  { %5573 = vmatpush2.bf16.msra.mxu1 %v8027_v15  ;;  %5607 = vmatprep.subr.bf16.mxu0 %v8038_v3  ;;  %v8081_v15 = vld [vmem:[%s11144_s1 + $0xc48] ss:$16 sps:$4 sm:$0xff]   ;;  %v8089_v3 = vld [vmem:[%s11144_s1 + $0xc2c] ss:$16 sps:$4 sm:$0xff]  }
 0x235   :  { %5574 = vmatprep.subr.bf16.mxu1 %v8035_v2 }
 0x237   :  { %5608 = vmatpush2.bf16.msra.mxu0 %v8036_v5 }
 0x238   :  { %5575 = vmatpush2.bf16.msra.mxu1 %v8033_v58  ;;  %5609 = vmatprep.subr.bf16.mxu0 %v8044_v11  ;;  %v8090_v11 = vld [vmem:[%s11144_s1 + $0xea8] ss:$16 sps:$4 sm:$0xff]  }
 0x239   :  { %5576 = vmatprep.subr.bf16.mxu1 %v8041_v8  ;;  %v8087_v8 = vld [vmem:[%s11144_s1 + $0xc28] ss:$16 sps:$4 sm:$0xff]  }
 0x23b   :  { %5610 = vmatpush2.bf16.msra.mxu0 %v8042_v27  ;;  %v8095_v27 = vld [vmem:[%s11144_s1 + $0xc0c] ss:$16 sps:$4 sm:$0xff]  }
 0x23c   :  { %5577 = vmatpush2.bf16.msra.mxu1 %v8039_v24  ;;  %5611 = vmatprep.subr.bf16.mxu0 %v8050_v13  ;;  %v8096_v13 = vld [vmem:[%s11144_s1 + $0xe88] ss:$16 sps:$4 sm:$0xff]  }
 0x23d   :  { %5578 = vmatprep.subr.bf16.mxu1 %v8047_v12  ;;  %v8093_v12 = vld [vmem:[%s11144_s1 + $0xc08] ss:$16 sps:$4 sm:$0xff]  }
 0x23f   :  { %5612 = vmatpush2.bf16.msra.mxu0 %v8048_v6  ;;  %v8104_v6 = vld [vmem:[%s11144_s1 + $0xe6c] ss:$16 sps:$4 sm:$0xff]  }
 0x240   :  { %5579 = vmatpush2.bf16.msra.mxu1 %v8045_v14  ;;  %5613 = vmatprep.subr.bf16.mxu0 %v8053_v19  ;;  %v8101_v14 = vld [vmem:[%s11144_s1 + $0xdec] ss:$16 sps:$4 sm:$0xff]   ;;  %v8099_v19 = vld [vmem:[%s11144_s1 + $0xde8] ss:$16 sps:$4 sm:$0xff]  }
 0x241   :  { %5630 = vmatprep.subr.bf16.mxu1 %v8056_v26  ;;  %v8102_v26 = vld [vmem:[%s11144_s1 + $0xe68] ss:$16 sps:$4 sm:$0xff]  }
 0x242   :  { %v5295_v31 = vpop.f32.mrf.mxu0 }
 0x243   :  { %v5336_v17 = vpop.f32.mrf.mxu1  ;;  %5581 = vmatmul.mubr.bf16.vlgmr.msra.gmra.mxu1 %v9088_v38  ;;  %v5296_v30 = vadd.f32 %v5295_v31, %v10204_v51  ;;  %5614 = vmatpush2.bf16.msra.mxu0 %v8051_v18  ;;  %v8065_v38 = vld [vmem:[%s11144_s1 + $0xb2c] ss:$16 sps:$4 sm:$0xff]  }
 0x244   :  { %5631 = vmatpush1.bf16.msra.mxu1 %v8054_v20  ;;  %v5297_v25 = vpop.f32.mrf.mxu0  ;;  %5615 = vmatprep.subr.bf16.mxu0 %v8059_v29  ;;  %v8068_v51 = vld [vmem:[%s11144_s1 + $0xcac] ss:$16 sps:$4 sm:$0xff]   ;;  %v8105_v29 = vld [vmem:[%s11144_s1 + $0xdc8] ss:$16 sps:$4 sm:$0xff]  }
 0x245   :  { %v5338_v33 = vpop.f32.mrf.mxu1  ;;  %5632 = vmatprep.subr.bf16.mxu1 %v8062_v28  ;;  %v5337_v47 = vadd.f32 %v5336_v17, %v5296_v30  ;;  %v5298_v34 = vadd.f32 %v5297_v25, %v10208_v57  ;;  %5662 = vmatprep.mubr.bf16.mxu1 %v9110_v42  ;;  %v8071_v42 = vld [vmem:[%s11144_s1 + $0xb0c] ss:$16 sps:$4 sm:$0xff]   ;;  %v8108_v28 = vld [vmem:[%s11144_s1 + $0xe48] ss:$16 sps:$4 sm:$0xff]  }
 0x246   :  { %v5299_v41 = vpop.f32.mrf.mxu0  ;;  %v8074_v57 = vld [vmem:[%s11144_s1 + $0xc8c] ss:$16 sps:$4 sm:$0xff]   ;;  %v8111_v30 = vld [vmem:[%s11144_s1 + $0xda8] ss:$16 sps:$4 sm:$0xff]  }
 0x247   :  { %v5340_v22 = vpop.f32.mrf.mxu1  ;;  %v5339_v23 = vadd.f32 %v5338_v33, %v5298_v34  ;;  %5616 = vmatpush2.bf16.msra.mxu0 %v8057_v36  ;;  %v8107_v18 = vld [vmem:[%s11144_s1 + $0xdcc] ss:$16 sps:$4 sm:$0xff]   ;;  %v8114_v36 = vld [vmem:[%s11144_s1 + $0xe28] ss:$16 sps:$4 sm:$0xff]  }
 0x248   :  { %5633 = vmatpush1.bf16.msra.mxu1 %v8060_v32  ;;  %v5300_v46 = vpop.f32.mrf.mxu0  ;;  %5617 = vmatprep.subr.bf16.mxu0 %v8065_v38  ;;  %v8110_v20 = vld [vmem:[%s11144_s1 + $0xe4c] ss:$16 sps:$4 sm:$0xff]   ;;  %v8117_v33 = vld [vmem:[%s11144_s1 + $0xd88] ss:$16 sps:$4 sm:$0xff]  }
 0x249   :  { %v5341_v7 = vpop.f32.mrf.mxu1  ;;  %5634 = vmatprep.subr.bf16.mxu1 %v8068_v51  ;;  %v8113_v31 = vld [vmem:[%s11144_s1 + $0xdac] ss:$16 sps:$4 sm:$0xff]   ;;  %v8120_v38 = vld [vmem:[%s11144_s1 + $0xe08] ss:$16 sps:$4 sm:$0xff]  }
 0x24a   :  { %v8116_v17 = vld [vmem:[%s11144_s1 + $0xe2c] ss:$16 sps:$4 sm:$0xff]   ;;  %v8123_v34 = vld [vmem:[%s11144_s1 + $0xd68] ss:$16 sps:$4 sm:$0xff]  }
 0x24b   :  { %5618 = vmatpush2.bf16.msra.mxu0 %v8063_v44  ;;  %v8119_v32 = vld [vmem:[%s11144_s1 + $0xd8c] ss:$16 sps:$4 sm:$0xff]   ;;  %v8126_v41 = vld [vmem:[%s11144_s1 + $0xfe8] ss:$16 sps:$4 sm:$0xff]  }
 0x24c   :  { %5635 = vmatpush1.bf16.msra.mxu1 %v8066_v45  ;;  %5619 = vmatprep.subr.bf16.mxu0 %v8071_v42  ;;  %v8122_v25 = vld [vmem:[%s11144_s1 + $0xe0c] ss:$16 sps:$4 sm:$0xff]   ;;  %v8129_v44 = vld [vmem:[%s11144_s1 + $0xd48] ss:$16 sps:$4 sm:$0xff]  }
 0x24d   :  { %5636 = vmatprep.subr.bf16.mxu1 %v8074_v57  ;;  %v8125_v51 = vld [vmem:[%s11144_s1 + $0xd6c] ss:$16 sps:$4 sm:$0xff]   ;;  %v8132_v45 = vld [vmem:[%s11144_s1 + $0xfc8] ss:$16 sps:$4 sm:$0xff]  }
 0x24e   :  { %v8131_v22 = vld [vmem:[%s11144_s1 + $0xd4c] ss:$16 sps:$4 sm:$0xff]   ;;  %v8135_v42 = vld [vmem:[%s11144_s1 + $0xd28] ss:$16 sps:$4 sm:$0xff]  }
 0x24f   :  { %5620 = vmatpush2.bf16.msra.mxu0 %v8069_v48  ;;  %v8137_v46 = vld [vmem:[%s11144_s1 + $0xd2c] ss:$16 sps:$4 sm:$0xff]   ;;  %v8138_v57 = vld [vmem:[%s11144_s1 + $0xfa8] ss:$16 sps:$4 sm:$0xff]  }
 0x250   :  { %5637 = vmatpush1.bf16.msra.mxu1 %v8072_v49  ;;  %5671 = vmatprep.subr.bf16.mxu0 %v8080_v37  ;;  %v8140_v7 = vld [vmem:[%s11144_s1 + $0xfac] ss:$16 sps:$4 sm:$0xff]   ;;  %v8144_v37 = vld [vmem:[%s11144_s1 + $0xf88] ss:$16 sps:$4 sm:$0xff]  }
 0x251   :  { %5638 = vmatprep.subr.bf16.mxu1 %v8077_v50  ;;  %v8143_v48 = vld [vmem:[%s11144_s1 + $0xd0c] ss:$16 sps:$4 sm:$0xff]   ;;  %v8141_v50 = vld [vmem:[%s11144_s1 + $0xd08] ss:$16 sps:$4 sm:$0xff]  }
 0x252   :  { %v5377_v59 = vpop.f32.mrf.mxu0  ;;  %5622 = vmatmul.mubr.bf16.vlgmr.msra.gmra.mxu0 %v9092_v39  ;;  %v8092_v39 = vld [vmem:[%s11144_s1 + $0xeac] ss:$16 sps:$4 sm:$0xff]  }
 0x253   :  { %v10445_v16 = vadd.f32 %v5377_v59, %v5337_v47  ;;  %5672 = vmatpush1.bf16.msra.mxu0 %v8078_v53  ;;  %5703 = vmatprep.mubr.bf16.mxu0 %v9114_v43  ;;  %v8098_v43 = vld [vmem:[%s11144_s1 + $0xe8c] ss:$16 sps:$4 sm:$0xff]  }
 0x254   :  { %5639 = vmatpush1.bf16.msra.mxu1 %v8075_v52  ;;  %v5379_v2 = vpop.f32.mrf.mxu0  ;;  %5673 = vmatprep.subr.bf16.mxu0 %v8086_v56  ;;  %v8128_v47 = vld [vmem:[%s11144_s1 + $0xfec] ss:$16 sps:$4 sm:$0xff]   ;;  %v8150_v56 = vld [vmem:[%s11144_s1 + $0x10e8] ss:$16 sps:$4 sm:$0xff]  }
 0x255   :  { %5640 = vmatprep.subr.bf16.mxu1 %v8083_v55  ;;  %v10459_v58 = vadd.f32 %v5379_v2, %v5339_v23  ;;  %v8134_v23 = vld [vmem:[%s11144_s1 + $0xfcc] ss:$16 sps:$4 sm:$0xff]   ;;  %v8147_v55 = vld [vmem:[%s11144_s1 + $0xf68] ss:$16 sps:$4 sm:$0xff]  }
 0x256   :  { %v5381_v5 = vpop.f32.mrf.mxu0  ;;  %v8146_v49 = vld [vmem:[%s11144_s1 + $0xf8c] ss:$16 sps:$4 sm:$0xff]   ;;  %v8153_v2 = vld [vmem:[%s11144_s1 + $0xf48] ss:$16 sps:$4 sm:$0xff]  }
 0x257   :  { %5674 = vmatpush1.bf16.msra.mxu0 %v8084_v60  ;;  %v8149_v52 = vld [vmem:[%s11144_s1 + $0xf6c] ss:$16 sps:$4 sm:$0xff]  }
 0x258   :  { %5641 = vmatpush1.bf16.msra.mxu1 %v8081_v15  ;;  %v5382_v24 = vpop.f32.mrf.mxu0  ;;  %5675 = vmatprep.subr.bf16.mxu0 %v8092_v39  ;;  %v8152_v53 = vld [vmem:[%s11144_s1 + $0x10ec] ss:$16 sps:$4 sm:$0xff]  }
 0x259   :  { %5642 = vmatprep.subr.bf16.mxu1 %v8089_v3  ;;  %v8155_v59 = vld [vmem:[%s11144_s1 + $0xf4c] ss:$16 sps:$4 sm:$0xff]   ;;  %v8156_v3 = vld [vmem:[%s11144_s1 + $0x10c8] ss:$16 sps:$4 sm:$0xff]  }
 0x25a   :  { %v8158_v15 = vld [vmem:[%s11144_s1 + $0x10cc] ss:$16 sps:$4 sm:$0xff]   ;;  %v8162_v24 = vld [vmem:[%s11144_s1 + $0x10a8] ss:$16 sps:$4 sm:$0xff]  }
 0x25b   :  { %5676 = vmatpush1.bf16.msra.mxu0 %v8090_v11  ;;  %v8161_v5 = vld [vmem:[%s11144_s1 + $0xf2c] ss:$16 sps:$4 sm:$0xff]   ;;  %v8159_v11 = vld [vmem:[%s11144_s1 + $0xf28] ss:$16 sps:$4 sm:$0xff]  }
 0x25c   :  { %5643 = vmatpush1.bf16.msra.mxu1 %v8087_v8  ;;  %5677 = vmatprep.subr.bf16.mxu0 %v8098_v43  ;;  %v8167_v43 = vld [vmem:[%s11144_s1 + $0xf0c] ss:$16 sps:$4 sm:$0xff]  }
 0x25d   :  { %5644 = vmatprep.subr.bf16.mxu1 %v8095_v27 }
 0x25f   :  { %5678 = vmatpush1.bf16.msra.mxu0 %v8096_v13  ;;  %v834_v13 = vsub.s32 3, %v9285_v54 }
 0x260   :  { %5645 = vmatpush1.bf16.msra.mxu1 %v8093_v12  ;;  %5679 = vmatprep.subr.bf16.mxu0 %v8104_v6  ;;  %v830_v12 = vsub.s32 2, %v9285_v54  ;;  %v8168_v6 = vld [vmem:[%s11144_s1 + $0x1088] ss:$16 sps:$4 sm:$0xff]   ;;  %v8176_v54 = vld [vmem:[%s11144_s1 + $0x12ec] ss:$16 sps:$4 sm:$0xff]  }
 0x261   :  { %5646 = vmatprep.subr.bf16.mxu1 %v8101_v14  ;;  %v8165_v14 = vld [vmem:[%s11144_s1 + $0xf08] ss:$16 sps:$4 sm:$0xff]  }
 0x263   :  { %5680 = vmatpush1.bf16.msra.mxu0 %v8102_v26  ;;  %v8395_v26 = vld [vmem:[%s11146_s2] sm:$0xf] }
 0x264   :  { %5647 = vmatpush2.bf16.msra.mxu1 %v8099_v19  ;;  %5681 = vmatprep.subr.bf16.mxu0 %v8110_v20  ;;  %v8173_v19 = vld [vmem:[%s11144_s1 + $0x106c] ss:$16 sps:$4 sm:$0xff]   ;;  %v835_v20 = vrot.slane %v8395_v26, %v834_v13 }
 0x265   :  { %5648 = vmatprep.subr.bf16.mxu1 %v8107_v18  ;;  %v831_v18 = vrot.slane %v8395_v26, %v830_v12  ;;  %v8233_v12 = vld [vmem:[%s11144_s1 + $0x112c] ss:$16 sps:$4 sm:$0xff]   ;;  %v8237_v26 = vld [vmem:[%s11144_s1 + $0x1108] ss:$16 sps:$4 sm:$0xff]  }
 0x266   :  { %v8236_v13 = vld [vmem:[%s11144_s1 + $0x13ac] ss:$16 sps:$4 sm:$0xff]  }
 0x267   :  { %5682 = vmatpush1.bf16.msra.mxu0 %v8108_v28  ;;  %v8174_v28 = vld [vmem:[%s11144_s1 + $0x12e8] ss:$16 sps:$4 sm:$0xff]  }
 0x268   :  { %5649 = vmatpush2.bf16.msra.mxu1 %v8105_v29  ;;  %5683 = vmatprep.subr.bf16.mxu0 %v8116_v17  ;;  %v8171_v29 = vld [vmem:[%s11144_s1 + $0x1068] ss:$16 sps:$4 sm:$0xff]   ;;  %v8182_v17 = vld [vmem:[%s11144_s1 + $0x12cc] ss:$16 sps:$4 sm:$0xff]  }
 0x269   :  { %5650 = vmatprep.subr.bf16.mxu1 %v8113_v31  ;;  %v8179_v31 = vld [vmem:[%s11144_s1 + $0x104c] ss:$16 sps:$4 sm:$0xff]  }
 0x26b   :  { %5684 = vmatpush1.bf16.msra.mxu0 %v8114_v36  ;;  %v8177_v36 = vld [vmem:[%s11144_s1 + $0x1048] ss:$16 sps:$4 sm:$0xff]  }
 0x26c   :  { %5651 = vmatpush2.bf16.msra.mxu1 %v8111_v30  ;;  %5685 = vmatprep.subr.bf16.mxu0 %v8122_v25 }
 0x26d   :  { %5652 = vmatprep.subr.bf16.mxu1 %v8119_v32  ;;  %v8180_v32 = vld [vmem:[%s11144_s1 + $0x12c8] ss:$16 sps:$4 sm:$0xff]  }
 0x26f   :  { %5686 = vmatpush1.bf16.msra.mxu0 %v8120_v38 }
 0x270   :  { %5653 = vmatpush2.bf16.msra.mxu1 %v8117_v33  ;;  %5687 = vmatprep.subr.bf16.mxu0 %v8128_v47  ;;  %v8185_v33 = vld [vmem:[%s11144_s1 + $0x102c] ss:$16 sps:$4 sm:$0xff]  }
 0x271   :  { %5654 = vmatprep.subr.bf16.mxu1 %v8125_v51 }
 0x273   :  { %5688 = vmatpush2.bf16.msra.mxu0 %v8126_v41 }
 0x274   :  { %5655 = vmatpush2.bf16.msra.mxu1 %v8123_v34  ;;  %5689 = vmatprep.subr.bf16.mxu0 %v8134_v23  ;;  %v8188_v34 = vld [vmem:[%s11144_s1 + $0x12ac] ss:$16 sps:$4 sm:$0xff]  }
 0x275   :  { %5656 = vmatprep.subr.bf16.mxu1 %v8131_v22  ;;  %v8186_v22 = vld [vmem:[%s11144_s1 + $0x12a8] ss:$16 sps:$4 sm:$0xff]  }
 0x277   :  { %5690 = vmatpush2.bf16.msra.mxu0 %v8132_v45  ;;  %v8191_v45 = vld [vmem:[%s11144_s1 + $0x100c] ss:$16 sps:$4 sm:$0xff]  }
 0x278   :  { %5657 = vmatpush2.bf16.msra.mxu1 %v8129_v44  ;;  %5691 = vmatprep.subr.bf16.mxu0 %v8140_v7  ;;  %v8189_v7 = vld [vmem:[%s11144_s1 + $0x1008] ss:$16 sps:$4 sm:$0xff]  }
 0x279   :  { %5658 = vmatprep.subr.bf16.mxu1 %v8137_v46  ;;  %v8194_v46 = vld [vmem:[%s11144_s1 + $0x128c] ss:$16 sps:$4 sm:$0xff]  }
 0x27b   :  { %5692 = vmatpush2.bf16.msra.mxu0 %v8138_v57  ;;  %v8200_v57 = vld [vmem:[%s11144_s1 + $0x126c] ss:$16 sps:$4 sm:$0xff]  }
 0x27c   :  { %5659 = vmatpush2.bf16.msra.mxu1 %v8135_v42  ;;  %5693 = vmatprep.subr.bf16.mxu0 %v8146_v49  ;;  %v8197_v42 = vld [vmem:[%s11144_s1 + $0x11ec] ss:$16 sps:$4 sm:$0xff]   ;;  %v8198_v49 = vld [vmem:[%s11144_s1 + $0x1268] ss:$16 sps:$4 sm:$0xff]  }
 0x27d   :  { %5660 = vmatprep.subr.bf16.mxu1 %v8143_v48  ;;  %v8195_v48 = vld [vmem:[%s11144_s1 + $0x11e8] ss:$16 sps:$4 sm:$0xff]  }
 0x27f   :  { %5694 = vmatpush2.bf16.msra.mxu0 %v8144_v37  ;;  %v8206_v37 = vld [vmem:[%s11144_s1 + $0x124c] ss:$16 sps:$4 sm:$0xff]  }
 0x280   :  { %5661 = vmatpush2.bf16.msra.mxu1 %v8141_v50  ;;  %5695 = vmatprep.subr.bf16.mxu0 %v8149_v52  ;;  %v8203_v50 = vld [vmem:[%s11144_s1 + $0x11cc] ss:$16 sps:$4 sm:$0xff]   ;;  %v8201_v52 = vld [vmem:[%s11144_s1 + $0x11c8] ss:$16 sps:$4 sm:$0xff]  }
 0x281   :  { %5712 = vmatprep.subr.bf16.mxu1 %v8152_v53  ;;  %v8204_v53 = vld [vmem:[%s11144_s1 + $0x1248] ss:$16 sps:$4 sm:$0xff]  }
 0x283   :  { %v5418_v60 = vpop.f32.mrf.mxu1  ;;  %5663 = vmatmul.mubr.bf16.vlgmr.msra.gmra.mxu1 %v9312_v0  ;;  %5696 = vmatpush2.bf16.msra.mxu0 %v8147_v55  ;;  %v8164_v0 = vld [vmem:[%s11144_s1 + $0x10ac] ss:$16 sps:$4 sm:$0xff]  }
 0x284   :  { %5713 = vmatpush1.bf16.msra.mxu1 %v8150_v56  ;;  %5697 = vmatprep.subr.bf16.mxu0 %v8155_v59  ;;  %v5419_v30 = vadd.f32 %v5418_v60, %v831_v18  ;;  %v8209_v55 = vld [vmem:[%s11144_s1 + $0x11ac] ss:$16 sps:$4 sm:$0xff]   ;;  %v8207_v59 = vld [vmem:[%s11144_s1 + $0x11a8] ss:$16 sps:$4 sm:$0xff]  }
 0x285   :  { %v5420_v39 = vpop.f32.mrf.mxu1  ;;  %5714 = vmatprep.subr.bf16.mxu1 %v8158_v15  ;;  %5744 = vmatprep.mubr.bf16.mxu1 %v9339_v9  ;;  %v8170_v9 = vld [vmem:[%s11144_s1 + $0x108c] ss:$16 sps:$4 sm:$0xff]   ;;  %v8210_v15 = vld [vmem:[%s11144_s1 + $0x1228] ss:$16 sps:$4 sm:$0xff]  }
 0x286   :  { %v5421_v38 = vadd.f32 %v5420_v39, %v835_v20  ;;  %v8212_v56 = vld [vmem:[%s11144_s1 + $0x122c] ss:$16 sps:$4 sm:$0xff]   ;;  %v8216_v39 = vld [vmem:[%s11144_s1 + $0x1208] ss:$16 sps:$4 sm:$0xff]  }
 0x287   :  { %v5422_v8 = vpop.f32.mrf.mxu1  ;;  %5698 = vmatpush2.bf16.msra.mxu0 %v8153_v2  ;;  %v8215_v60 = vld [vmem:[%s11144_s1 + $0x118c] ss:$16 sps:$4 sm:$0xff]   ;;  %v8240_v18 = vld [vmem:[%s11144_s1 + $0x1388] ss:$16 sps:$4 sm:$0xff]  }
 0x288   :  { %5715 = vmatpush1.bf16.msra.mxu1 %v8156_v3  ;;  %5699 = vmatprep.subr.bf16.mxu0 %v8161_v5  ;;  %v8218_v2 = vld [vmem:[%s11144_s1 + $0x120c] ss:$16 sps:$4 sm:$0xff]   ;;  %v8213_v3 = vld [vmem:[%s11144_s1 + $0x1188] ss:$16 sps:$4 sm:$0xff]  }
 0x289   :  { %v5423_v27 = vpop.f32.mrf.mxu1  ;;  %5716 = vmatprep.subr.bf16.mxu1 %v8164_v0  ;;  %v8221_v5 = vld [vmem:[%s11144_s1 + $0x116c] ss:$16 sps:$4 sm:$0xff]   ;;  %v8219_v8 = vld [vmem:[%s11144_s1 + $0x1168] ss:$16 sps:$4 sm:$0xff]  }
 0x28a   :  { %v8224_v0 = vld [vmem:[%s11144_s1 + $0x13ec] ss:$16 sps:$4 sm:$0xff]  }
 0x28b   :  { %5700 = vmatpush2.bf16.msra.mxu0 %v8159_v11  ;;  %v8222_v11 = vld [vmem:[%s11144_s1 + $0x13e8] ss:$16 sps:$4 sm:$0xff]   ;;  %v8230_v27 = vld [vmem:[%s11144_s1 + $0x13cc] ss:$16 sps:$4 sm:$0xff]  }
 0x28c   :  { %5717 = vmatpush1.bf16.msra.mxu1 %v8162_v24  ;;  %5701 = vmatprep.subr.bf16.mxu0 %v8167_v43  ;;  %v8227_v24 = vld [vmem:[%s11144_s1 + $0x114c] ss:$16 sps:$4 sm:$0xff]   ;;  %v8225_v43 = vld [vmem:[%s11144_s1 + $0x1148] ss:$16 sps:$4 sm:$0xff]  }
 0x28d   :  { %5718 = vmatprep.subr.bf16.mxu1 %v8170_v9  ;;  %v8228_v9 = vld [vmem:[%s11144_s1 + $0x13c8] ss:$16 sps:$4 sm:$0xff]   ;;  %v8245_v20 = vld [vmem:[%s11144_s1 + $0x136c] ss:$16 sps:$4 sm:$0xff]  }
 0x28f   :  { %5702 = vmatpush2.bf16.msra.mxu0 %v8165_v14  ;;  %v8231_v14 = vld [vmem:[%s11144_s1 + $0x1128] ss:$16 sps:$4 sm:$0xff]  }
 0x290   :  { %5719 = vmatpush1.bf16.msra.mxu1 %v8168_v6  ;;  %5753 = vmatprep.subr.bf16.mxu0 %v8176_v54  ;;  %v8234_v6 = vld [vmem:[%s11144_s1 + $0x13a8] ss:$16 sps:$4 sm:$0xff]   ;;  %v8242_v54 = vld [vmem:[%s11144_s1 + $0x138c] ss:$16 sps:$4 sm:$0xff]  }
 0x291   :  { %5720 = vmatprep.subr.bf16.mxu1 %v8173_v19  ;;  %v8239_v19 = vld [vmem:[%s11144_s1 + $0x110c] ss:$16 sps:$4 sm:$0xff]  }
 0x292   :  { %v5459_v25 = vpop.f32.mrf.mxu0  ;;  %5704 = vmatmul.mubr.bf16.vlgmr.msra.gmra.mxu0 %v9316_v1  ;;  %v8183_v1 = vld [vmem:[%s11144_s1 + $0x1028] ss:$16 sps:$4 sm:$0xff]  }
 0x293   :  { %v10659_v51 = vadd.f32 %v5459_v25, %v5419_v30  ;;  %5754 = vmatpush1.bf16.msra.mxu0 %v8174_v28  ;;  %5785 = vmatprep.mubr.bf16.mxu0 %v9343_v10  ;;  %v8192_v10 = vld [vmem:[%s11144_s1 + $0x1288] ss:$16 sps:$4 sm:$0xff]   ;;  %v8254_v30 = vld [vmem:[%s11144_s1 + $0x14cc] ss:$16 sps:$4 sm:$0xff]  }
 0x294   :  { %5721 = vmatpush1.bf16.msra.mxu1 %v8171_v29  ;;  %v5461_v47 = vpop.f32.mrf.mxu0  ;;  %5755 = vmatprep.subr.bf16.mxu0 %v8182_v17  ;;  %v8248_v29 = vld [vmem:[%s11144_s1 + $0x14ec] ss:$16 sps:$4 sm:$0xff]   ;;  %v8243_v28 = vld [vmem:[%s11144_s1 + $0x1368] ss:$16 sps:$4 sm:$0xff]  }
 0x295   :  { %5722 = vmatprep.subr.bf16.mxu1 %v8179_v31  ;;  %v10664_v41 = vadd.f32 %v5461_v47, %v5421_v38  ;;  %v8246_v31 = vld [vmem:[%s11144_s1 + $0x14e8] ss:$16 sps:$4 sm:$0xff]   ;;  %v8251_v17 = vld [vmem:[%s11144_s1 + $0x134c] ss:$16 sps:$4 sm:$0xff]  }
 0x296   :  { %v5463_v23 = vpop.f32.mrf.mxu0  ;;  %v8249_v25 = vld [vmem:[%s11144_s1 + $0x1348] ss:$16 sps:$4 sm:$0xff]   ;;  %v8257_v47 = vld [vmem:[%s11144_s1 + $0x132c] ss:$16 sps:$4 sm:$0xff]  }
 0x297   :  { %5756 = vmatpush1.bf16.msra.mxu0 %v8180_v32 }
 0x298   :  { %5723 = vmatpush1.bf16.msra.mxu1 %v8177_v36  ;;  %v5464_v44 = vpop.f32.mrf.mxu0  ;;  %5757 = vmatprep.subr.bf16.mxu0 %v8188_v34 }
 0x299   :  { %5724 = vmatprep.subr.bf16.mxu1 %v8185_v33  ;;  %v8252_v33 = vld [vmem:[%s11144_s1 + $0x14c8] ss:$16 sps:$4 sm:$0xff]  }
 0x29a   :  { %v8261_v44 = vld [vmem:[%s11144_s1 + $0x1308] ss:$16 sps:$4 sm:$0xff]  }
 0x29b   :  { %5758 = vmatpush1.bf16.msra.mxu0 %v8186_v22  ;;  %v8258_v22 = vld [vmem:[%s11144_s1 + $0x14a8] ss:$16 sps:$4 sm:$0xff]  }
 0x29c   :  { %5725 = vmatpush1.bf16.msra.mxu1 %v8183_v1  ;;  %5759 = vmatprep.subr.bf16.mxu0 %v8194_v46  ;;  %v8255_v1 = vld [vmem:[%s11144_s1 + $0x1328] ss:$16 sps:$4 sm:$0xff]   ;;  %v8269_v46 = vld [vmem:[%s11144_s1 + $0x146c] ss:$16 sps:$4 sm:$0xff]  }
 0x29d   :  { %5726 = vmatprep.subr.bf16.mxu1 %v8191_v45  ;;  %v8264_v45 = vld [vmem:[%s11144_s1 + $0x1488] ss:$16 sps:$4 sm:$0xff]  }
 0x29f   :  { %5760 = vmatpush1.bf16.msra.mxu0 %v8192_v10  ;;  %v8267_v10 = vld [vmem:[%s11144_s1 + $0x1468] ss:$16 sps:$4 sm:$0xff]  }
 0x2a0   :  { %5727 = vmatpush1.bf16.msra.mxu1 %v8189_v7  ;;  %5761 = vmatprep.subr.bf16.mxu0 %v8200_v57  ;;  %v8272_v7 = vld [vmem:[%s11144_s1 + $0x16ec] ss:$16 sps:$4 sm:$0xff]  }
 0x2a1   :  { %5728 = vmatprep.subr.bf16.mxu1 %v8197_v42  ;;  %v8270_v42 = vld [vmem:[%s11144_s1 + $0x16e8] ss:$16 sps:$4 sm:$0xff]   ;;  %v8275_v57 = vld [vmem:[%s11144_s1 + $0x144c] ss:$16 sps:$4 sm:$0xff]  }
 0x2a3   :  { %5762 = vmatpush1.bf16.msra.mxu0 %v8198_v49 }
 0x2a4   :  { %5729 = vmatpush2.bf16.msra.mxu1 %v8195_v48  ;;  %5763 = vmatprep.subr.bf16.mxu0 %v8206_v37  ;;  %v8278_v48 = vld [vmem:[%s11144_s1 + $0x16cc] ss:$16 sps:$4 sm:$0xff]   ;;  %v8273_v37 = vld [vmem:[%s11144_s1 + $0x1448] ss:$16 sps:$4 sm:$0xff]  }
 0x2a5   :  { %5730 = vmatprep.subr.bf16.mxu1 %v8203_v50 }
 0x2a7   :  { %5764 = vmatpush1.bf16.msra.mxu0 %v8204_v53 }
 0x2a8   :  { %5731 = vmatpush2.bf16.msra.mxu1 %v8201_v52  ;;  %5765 = vmatprep.subr.bf16.mxu0 %v8212_v56  ;;  %v8276_v52 = vld [vmem:[%s11144_s1 + $0x16c8] ss:$16 sps:$4 sm:$0xff]  }
 0x2a9   :  { %5732 = vmatprep.subr.bf16.mxu1 %v8209_v55  ;;  %v8281_v55 = vld [vmem:[%s11144_s1 + $0x142c] ss:$16 sps:$4 sm:$0xff]  }
 0x2ab   :  { %5766 = vmatpush1.bf16.msra.mxu0 %v8210_v15  ;;  %v8279_v15 = vld [vmem:[%s11144_s1 + $0x1428] ss:$16 sps:$4 sm:$0xff]  }
 0x2ac   :  { %5733 = vmatpush2.bf16.msra.mxu1 %v8207_v59  ;;  %5767 = vmatprep.subr.bf16.mxu0 %v8218_v2 }
 0x2ad   :  { %5734 = vmatprep.subr.bf16.mxu1 %v8215_v60  ;;  %v8282_v60 = vld [vmem:[%s11144_s1 + $0x16a8] ss:$16 sps:$4 sm:$0xff]  }
 0x2af   :  { %5768 = vmatpush1.bf16.msra.mxu0 %v8216_v39  ;;  %v8285_v39 = vld [vmem:[%s11144_s1 + $0x1408] ss:$16 sps:$4 sm:$0xff]  }
 0x2b0   :  { %5735 = vmatpush2.bf16.msra.mxu1 %v8213_v3  ;;  %5769 = vmatprep.subr.bf16.mxu0 %v8224_v0  ;;  %v8287_v3 = vld [vmem:[%s11144_s1 + $0x140c] ss:$16 sps:$4 sm:$0xff]  }
 0x2b1   :  { %5736 = vmatprep.subr.bf16.mxu1 %v8221_v5  ;;  %v8288_v5 = vld [vmem:[%s11144_s1 + $0x1688] ss:$16 sps:$4 sm:$0xff]   ;;  %v8293_v0 = vld [vmem:[%s11144_s1 + $0x15ec] ss:$16 sps:$4 sm:$0xff]  }
 0x2b3   :  { %5770 = vmatpush2.bf16.msra.mxu0 %v8222_v11  ;;  %v8291_v11 = vld [vmem:[%s11144_s1 + $0x15e8] ss:$16 sps:$4 sm:$0xff]  }
 0x2b4   :  { %5737 = vmatpush2.bf16.msra.mxu1 %v8219_v8  ;;  %5771 = vmatprep.subr.bf16.mxu0 %v8230_v27  ;;  %v8296_v8 = vld [vmem:[%s11144_s1 + $0x166c] ss:$16 sps:$4 sm:$0xff]  }
 0x2b5   :  { %5738 = vmatprep.subr.bf16.mxu1 %v8227_v24  ;;  %v8294_v24 = vld [vmem:[%s11144_s1 + $0x1668] ss:$16 sps:$4 sm:$0xff]   ;;  %v8299_v27 = vld [vmem:[%s11144_s1 + $0x15cc] ss:$16 sps:$4 sm:$0xff]  }
 0x2b7   :  { %5772 = vmatpush2.bf16.msra.mxu0 %v8228_v9  ;;  %v8297_v9 = vld [vmem:[%s11144_s1 + $0x15c8] ss:$16 sps:$4 sm:$0xff]  }
 0x2b8   :  { %5739 = vmatpush2.bf16.msra.mxu1 %v8225_v43  ;;  %5773 = vmatprep.subr.bf16.mxu0 %v8236_v13  ;;  %v8302_v43 = vld [vmem:[%s11144_s1 + $0x164c] ss:$16 sps:$4 sm:$0xff]  }
 0x2b9   :  { %5740 = vmatprep.subr.bf16.mxu1 %v8233_v12  ;;  %v8300_v12 = vld [vmem:[%s11144_s1 + $0x1648] ss:$16 sps:$4 sm:$0xff]   ;;  %v8305_v13 = vld [vmem:[%s11144_s1 + $0x15ac] ss:$16 sps:$4 sm:$0xff]  }
 0x2bb   :  { %5774 = vmatpush2.bf16.msra.mxu0 %v8234_v6  ;;  %v8303_v6 = vld [vmem:[%s11144_s1 + $0x15a8] ss:$16 sps:$4 sm:$0xff]  }
 0x2bc   :  { %5741 = vmatpush2.bf16.msra.mxu1 %v8231_v14  ;;  %5775 = vmatprep.subr.bf16.mxu0 %v8242_v54  ;;  %v8308_v14 = vld [vmem:[%s11144_s1 + $0x162c] ss:$16 sps:$4 sm:$0xff]  }
 0x2bd   :  { %5742 = vmatprep.subr.bf16.mxu1 %v8239_v19  ;;  %v8306_v19 = vld [vmem:[%s11144_s1 + $0x1628] ss:$16 sps:$4 sm:$0xff]   ;;  %v8311_v54 = vld [vmem:[%s11144_s1 + $0x158c] ss:$16 sps:$4 sm:$0xff]  }
 0x2bf   :  { %5776 = vmatpush2.bf16.msra.mxu0 %v8240_v18  ;;  %v8309_v18 = vld [vmem:[%s11144_s1 + $0x1588] ss:$16 sps:$4 sm:$0xff]  }
 0x2c0   :  { %5743 = vmatpush2.bf16.msra.mxu1 %v8237_v26  ;;  %5777 = vmatprep.subr.bf16.mxu0 %v8245_v20  ;;  %v8314_v26 = vld [vmem:[%s11144_s1 + $0x160c] ss:$16 sps:$4 sm:$0xff]   ;;  %v8312_v20 = vld [vmem:[%s11144_s1 + $0x1608] ss:$16 sps:$4 sm:$0xff]  }
 0x2c1   :  { %5794 = vmatprep.subr.bf16.mxu1 %v8248_v29  ;;  %v8317_v29 = vld [vmem:[%s11144_s1 + $0x156c] ss:$16 sps:$4 sm:$0xff]  }
 0x2c3   :  { %v5500_v36 = vpop.f32.mrf.mxu1  ;;  %5745 = vmatmul.mubr.bf16.vlgmr.msra.gmra.mxu1 %v9551_v61  ;;  %5778 = vmatpush2.bf16.msra.mxu0 %v8243_v28  ;;  %v8260_v61 = vld [vmem:[%s11144_s1 + $0x14ac] ss:$16 sps:$4 sm:$0xff]  }
 0x2c4   :  { %v5501_v32 = vadd.f32 %v5500_v36, %v10659_v51  ;;  %5795 = vmatpush1.bf16.msra.mxu1 %v8246_v31  ;;  %5779 = vmatprep.subr.bf16.mxu0 %v8251_v17  ;;  %v8320_v28 = vld [vmem:[%s11144_s1 + $0x17ec] ss:$16 sps:$4 sm:$0xff]   ;;  %v8315_v31 = vld [vmem:[%s11144_s1 + $0x1568] ss:$16 sps:$4 sm:$0xff]  }
 0x2c5   :  { %v5502_v38 = vpop.f32.mrf.mxu1  ;;  %5796 = vmatprep.subr.bf16.mxu1 %v8254_v30  ;;  %5826 = vmatprep.mubr.bf16.mxu1 %v9571_v35  ;;  %v8266_v35 = vld [vmem:[%s11144_s1 + $0x148c] ss:$16 sps:$4 sm:$0xff]   ;;  %v8318_v17 = vld [vmem:[%s11144_s1 + $0x17e8] ss:$16 sps:$4 sm:$0xff]  }
 0x2c6   :  { %v5503_v51 = vadd.f32 %v5502_v38, %v10664_v41  ;;  %v8263_v41 = vld [vmem:[%s11144_s1 + $0x130c] ss:$16 sps:$4 sm:$0xff]  }
 0x2c7   :  { %v5504_v34 = vpop.f32.mrf.mxu1  ;;  %5780 = vmatpush2.bf16.msra.mxu0 %v8249_v25  ;;  %v8323_v30 = vld [vmem:[%s11144_s1 + $0x154c] ss:$16 sps:$4 sm:$0xff]   ;;  %v8324_v25 = vld [vmem:[%s11144_s1 + $0x17c8] ss:$16 sps:$4 sm:$0xff]  }
 0x2c8   :  { %5797 = vmatpush1.bf16.msra.mxu1 %v8252_v33  ;;  %5781 = vmatprep.subr.bf16.mxu0 %v8257_v47  ;;  %v8326_v36 = vld [vmem:[%s11144_s1 + $0x17cc] ss:$16 sps:$4 sm:$0xff]   ;;  %v8327_v47 = vld [vmem:[%s11144_s1 + $0x1528] ss:$16 sps:$4 sm:$0xff]  }
 0x2c9   :  { %v5505_v23 = vpop.f32.mrf.mxu1  ;;  %5798 = vmatprep.subr.bf16.mxu1 %v8260_v61  ;;  %v8329_v33 = vld [vmem:[%s11144_s1 + $0x152c] ss:$16 sps:$4 sm:$0xff]   ;;  %v8330_v61 = vld [vmem:[%s11144_s1 + $0x17a8] ss:$16 sps:$4 sm:$0xff]  }
 0x2ca   :  { %v8332_v38 = vld [vmem:[%s11144_s1 + $0x17ac] ss:$16 sps:$4 sm:$0xff]  }
 0x2cb   :  { %5782 = vmatpush2.bf16.msra.mxu0 %v8255_v1  ;;  %v8338_v34 = vld [vmem:[%s11144_s1 + $0x178c] ss:$16 sps:$4 sm:$0xff]   ;;  %v8333_v1 = vld [vmem:[%s11144_s1 + $0x1508] ss:$16 sps:$4 sm:$0xff]  }
 0x2cc   :  { %5799 = vmatpush1.bf16.msra.mxu1 %v8258_v22  ;;  %5783 = vmatprep.subr.bf16.mxu0 %v8263_v41  ;;  %v8336_v22 = vld [vmem:[%s11144_s1 + $0x1788] ss:$16 sps:$4 sm:$0xff]   ;;  %v8341_v23 = vld [vmem:[%s11144_s1 + $0x176c] ss:$16 sps:$4 sm:$0xff]  }
 0x2cd   :  { %5800 = vmatprep.subr.bf16.mxu1 %v8266_v35  ;;  %v8344_v41 = vld [vmem:[%s11144_s1 + $0x186c] ss:$16 sps:$4 sm:$0xff]   ;;  %v8339_v35 = vld [vmem:[%s11144_s1 + $0x1768] ss:$16 sps:$4 sm:$0xff]  }
 0x2cf   :  { %5784 = vmatpush2.bf16.msra.mxu0 %v8261_v44  ;;  %v8342_v44 = vld [vmem:[%s11144_s1 + $0x1868] ss:$16 sps:$4 sm:$0xff]  }
 0x2d0   :  { %5801 = vmatpush1.bf16.msra.mxu1 %v8264_v45  ;;  %5835 = vmatprep.subr.bf16.mxu0 %v8272_v7  ;;  %v8347_v45 = vld [vmem:[%s11144_s1 + $0x174c] ss:$16 sps:$4 sm:$0xff]  }
 0x2d1   :  { %5802 = vmatprep.subr.bf16.mxu1 %v8269_v46  ;;  %v8350_v46 = vld [vmem:[%s11144_s1 + $0x184c] ss:$16 sps:$4 sm:$0xff]  }
 0x2d2   :  { %v5541_v49 = vpop.f32.mrf.mxu0  ;;  %5786 = vmatmul.mubr.bf16.vlgmr.msra.gmra.mxu0 %v9555_v62  ;;  %v8284_v62 = vld [vmem:[%s11144_s1 + $0x16ac] ss:$16 sps:$4 sm:$0xff]  }
 0x2d3   :  { %v10852_v50 = vadd.f32 %v5541_v49, %v5501_v32  ;;  %5836 = vmatpush1.bf16.msra.mxu0 %v8270_v42  ;;  %5867 = vmatprep.mubr.bf16.mxu0 %v9575_v40  ;;  %v8290_v40 = vld [vmem:[%s11144_s1 + $0x168c] ss:$16 sps:$4 sm:$0xff]   ;;  %v8321_v32 = vld [vmem:[%s11144_s1 + $0x1548] ss:$16 sps:$4 sm:$0xff]  }
 0x2d4   :  { %5803 = vmatpush1.bf16.msra.mxu1 %v8267_v10  ;;  %v5543_v53 = vpop.f32.mrf.mxu0  ;;  %5837 = vmatprep.subr.bf16.mxu0 %v8278_v48  ;;  %v8345_v42 = vld [vmem:[%s11144_s1 + $0x1748] ss:$16 sps:$4 sm:$0xff]   ;;  %v8353_v49 = vld [vmem:[%s11144_s1 + $0x172c] ss:$16 sps:$4 sm:$0xff]  }
 0x2d5   :  { %5804 = vmatprep.subr.bf16.mxu1 %v8275_v57  ;;  %v10866_v56 = vadd.f32 %v5543_v53, %v5503_v51  ;;  %v8335_v51 = vld [vmem:[%s11144_s1 + $0x150c] ss:$16 sps:$4 sm:$0xff]   ;;  %v8348_v57 = vld [vmem:[%s11144_s1 + $0x1848] ss:$16 sps:$4 sm:$0xff]  }
 0x2d6   :  { %v5545_v59 = vpop.f32.mrf.mxu0  ;;  %v8354_v53 = vld [vmem:[%s11144_s1 + $0x1828] ss:$16 sps:$4 sm:$0xff]  }
 0x2d7   :  { %5838 = vmatpush1.bf16.msra.mxu0 %v8276_v52  ;;  %v8351_v52 = vld [vmem:[%s11144_s1 + $0x1728] ss:$16 sps:$4 sm:$0xff]  }
 0x2d8   :  { %5805 = vmatpush1.bf16.msra.mxu1 %v8273_v37  ;;  %v5546_v2 = vpop.f32.mrf.mxu0  ;;  %5839 = vmatprep.subr.bf16.mxu0 %v8284_v62  ;;  %v8359_v62 = vld [vmem:[%s11144_s1 + $0x170c] ss:$16 sps:$4 sm:$0xff]   ;;  %v8360_v59 = vld [vmem:[%s11144_s1 + $0x1808] ss:$16 sps:$4 sm:$0xff]  }
 0x2d9   :  { %5806 = vmatprep.subr.bf16.mxu1 %v8281_v55  ;;  %v8364_v2 = vld [vmem:[%s11147_s3 + $0x38] sm:$0xff]  }
 0x2db   :  { %5840 = vmatpush1.bf16.msra.mxu0 %v8282_v60  ;;  %v5918_v60 = vmax.f32 %v10459_v58, 0.0 }
 0x2dc   :  { %5807 = vmatpush1.bf16.msra.mxu1 %v8279_v15  ;;  %5841 = vmatprep.subr.bf16.mxu0 %v8290_v40  ;;  %v8363_v15 = vld [vmem:[%s11147_s3 + $0x78] sm:$0xff]  }
 0x2dd   :  { %5808 = vmatprep.subr.bf16.mxu1 %v8287_v3  ;;  %v8365_v3 = vld [vmem:[%s11147_s3 + $0x70] sm:$0xff]   ;;  %v5922_v40 = vpack.c.bf16 %v5918_v60, %v5918_v60 }
 0x2df   :  { %5842 = vmatpush1.bf16.msra.mxu0 %v8288_v5  ;;  %v8396_v5 = vld [vmem:[%s11145_s0 + $0x60] ss:$0 sps:$4 sm:$0xff]  }
 0x2e0   :  { %5809 = vmatpush1.bf16.msra.mxu1 %v8285_v39  ;;  %5843 = vmatprep.subr.bf16.mxu0 %v8296_v8 }
 0x2e1   :  { %5810 = vmatprep.subr.bf16.mxu1 %v8293_v0  ;;  %v8366_v0 = vld [vmem:[%s11147_s3 + $0x30] sm:$0xff]  }
 0x2e3   :  { %5844 = vmatpush1.bf16.msra.mxu0 %v8294_v24 }
 0x2e4   :  { %5811 = vmatpush2.bf16.msra.mxu1 %v8291_v11  ;;  %5845 = vmatprep.subr.bf16.mxu0 %v8302_v43  ;;  %v8367_v11 = vld [vmem:[%s11147_s3 + $0x68] sm:$0xff]  }
 0x2e5   :  { %5812 = vmatprep.subr.bf16.mxu1 %v8299_v27  ;;  %v8368_v27 = vld [vmem:[%s11147_s3 + $0x28] sm:$0xff]  }
 0x2e7   :  { %5846 = vmatpush1.bf16.msra.mxu0 %v8300_v12  ;;  %v8379_v12 = vld [vmem:[%s11147_s3 + $0xf8] sm:$0xff]  }
 0x2e8   :  { %5813 = vmatpush2.bf16.msra.mxu1 %v8297_v9  ;;  %5847 = vmatprep.subr.bf16.mxu0 %v8308_v14  ;;  %v8369_v9 = vld [vmem:[%s11147_s3 + $0x60] sm:$0xff]  }
 0x2e9   :  { %5814 = vmatprep.subr.bf16.mxu1 %v8305_v13  ;;  %v8380_v13 = vld [vmem:[%s11147_s3 + $0xb8] sm:$0xff]   ;;  %v8370_v14 = vld [vmem:[%s11147_s3 + $0x20] sm:$0xff]  }
 0x2eb   :  { %5848 = vmatpush1.bf16.msra.mxu0 %v8306_v19  ;;  %v8372_v19 = vld [vmem:[%s11147_s3 + $0x18] sm:$0xff]  }
 0x2ec   :  { %5815 = vmatpush2.bf16.msra.mxu1 %v8303_v6  ;;  %5849 = vmatprep.subr.bf16.mxu0 %v8314_v26  ;;  %v8371_v6 = vld [vmem:[%s11147_s3 + $0x58] sm:$0xff]   ;;  %v8374_v26 = vld [vmem:[%s11147_s3 + $0x10] sm:$0xff]  }
 0x2ed   :  { %5816 = vmatprep.subr.bf16.mxu1 %v8311_v54  ;;  %v8373_v54 = vld [vmem:[%s11147_s3 + $0x50] sm:$0xff]  }
 0x2ef   :  { %5850 = vmatpush1.bf16.msra.mxu0 %v8312_v20  ;;  %v8376_v20 = vld [vmem:[%s11147_s3 + $0x8] sm:$0xff]  }
 0x2f0   :  { %5817 = vmatpush2.bf16.msra.mxu1 %v8309_v18  ;;  %5851 = vmatprep.subr.bf16.mxu0 %v8320_v28  ;;  %v8375_v18 = vld [vmem:[%s11147_s3 + $0x48] sm:$0xff]   ;;  %v8378_v28 = vld [vmem:[%s11147_s3] sm:$0xff]  }
 0x2f1   :  { %5818 = vmatprep.subr.bf16.mxu1 %v8317_v29  ;;  %v8377_v29 = vld [vmem:[%s11147_s3 + $0x40] sm:$0xff]  }
 0x2f3   :  { %5852 = vmatpush2.bf16.msra.mxu0 %v8318_v17 }
 0x2f4   :  { %5819 = vmatpush2.bf16.msra.mxu1 %v8315_v31  ;;  %5853 = vmatprep.subr.bf16.mxu0 %v8326_v36  ;;  %v5917_v31 = vmax.f32 %v10445_v16, 0.0  ;;  %v8382_v36 = vld [vmem:[%s11147_s3 + $0xb0] sm:$0xff]   ;;  %v8383_v16 = vld [vmem:[%s11147_s3 + $0xe8] sm:$0xff]  }
 0x2f5   :  { %5820 = vmatprep.subr.bf16.mxu1 %v8323_v30  ;;  %v8381_v30 = vld [vmem:[%s11147_s3 + $0xf0] sm:$0xff]  }
 0x2f6   :  { %v5921_v17 = vpack.c.bf16 %v5917_v31, %v5917_v31 }
 0x2f7   :  { %5854 = vmatpush2.bf16.msra.mxu0 %v8324_v25 }
 0x2f8   :  { %5821 = vmatpush2.bf16.msra.mxu1 %v8321_v32  ;;  %5855 = vmatprep.subr.bf16.mxu0 %v8332_v38 }
 0x2f9   :  { %5822 = vmatprep.subr.bf16.mxu1 %v8329_v33 }
 0x2fb   :  { %5856 = vmatpush2.bf16.msra.mxu0 %v8330_v61 }
 0x2fc   :  { %5823 = vmatpush2.bf16.msra.mxu1 %v8327_v47  ;;  %5857 = vmatprep.subr.bf16.mxu0 %v8338_v34  ;;  %v8384_v47 = vld [vmem:[%s11147_s3 + $0xa8] sm:$0xff]   ;;  %v8385_v34 = vld [vmem:[%s11147_s3 + $0xe0] sm:$0xff]  }
 0x2fd   :  { %5824 = vmatprep.subr.bf16.mxu1 %v8335_v51 }
 0x2ff   :  { %5858 = vmatpush2.bf16.msra.mxu0 %v8336_v22  ;;  %v8387_v22 = vld [vmem:[%s11147_s3 + $0xd8] sm:$0xff]  }
 0x300   :  { %5825 = vmatpush2.bf16.msra.mxu1 %v8333_v1  ;;  %5859 = vmatprep.subr.bf16.mxu0 %v8341_v23  ;;  %v8386_v1 = vld [vmem:[%s11147_s3 + $0xa0] sm:$0xff]   ;;  %v8388_v23 = vld [vmem:[%s11147_s3 + $0x98] sm:$0xff]  }
 0x301   :  { %5884 = vmatprep.subr.bf16.mxu1 %v8344_v41  ;;  %v8389_v41 = vld [vmem:[%s11147_s3 + $0xd0] sm:$0xff]  }
 0x303   :  { %v5582_v7 = vpop.f32.mrf.mxu1  ;;  %5827 = vmatmul.mubr.bf16.vlgmr.msra.gmra.mxu1 %v9769_v63  ;;  %5860 = vmatpush2.bf16.msra.mxu0 %v8339_v35  ;;  %v8356_v63 = vld [vmem:[%s11144_s1 + $0x182c] ss:$16 sps:$4 sm:$0xff]   ;;  %v8390_v35 = vld [vmem:[%s11147_s3 + $0x90] sm:$0xff]  }
 0x304   :  { %v5583_v10 = vadd.f32 %v5582_v7, %v10852_v50  ;;  %5885 = vmatpush1.bf16.msra.mxu1 %v8342_v44  ;;  %5861 = vmatprep.subr.bf16.mxu0 %v8347_v45  ;;  %v8391_v7 = vld [vmem:[%s11147_s3 + $0xc8] sm:$0xff]  }
 0x305   :  { %v5584_v48 = vpop.f32.mrf.mxu1  ;;  %5886 = vmatprep.subr.bf16.mxu1 %v8350_v46  ;;  %5908 = vmatprep.mubr.bf16.mxu1 %v8397_v21  ;;  %v8362_v21 = vld [vmem:[%s11144_s1 + $0x180c] ss:$16 sps:$4 sm:$0xff]  }
 0x306   :  { %v5585_v50 = vadd.f32 %v5584_v48, %v10866_v56  ;;  %v8357_v56 = vld [vmem:[%s11144_s1 + $0x1708] ss:$16 sps:$4 sm:$0xff]  }
 0x307   :  { %v5586_v37 = vpop.f32.mrf.mxu1  ;;  %5862 = vmatpush2.bf16.msra.mxu0 %v8345_v42  ;;  %v8392_v42 = vld [vmem:[%s11147_s3 + $0x88] sm:$0xff]  }
 0x308   :  { %5887 = vmatpush1.bf16.msra.mxu1 %v8348_v57  ;;  %5863 = vmatprep.subr.bf16.mxu0 %v8353_v49  ;;  %v8393_v49 = vld [vmem:[%s11147_s3 + $0xc0] sm:$0xff]  }
 0x309   :  { %v5587_v55 = vpop.f32.mrf.mxu1  ;;  %5888 = vmatprep.subr.bf16.mxu1 %v8356_v63  ;;  %v8394_v63 = vld [vmem:[%s11147_s3 + $0x80] sm:$0xff]  }
 0x30b   :  { %5864 = vmatpush2.bf16.msra.mxu0 %v8351_v52 }
 0x30c   :  { %5889 = vmatpush1.bf16.msra.mxu1 %v8354_v53  ;;  %5865 = vmatprep.subr.bf16.mxu0 %v8359_v62 }
 0x30d   :  { %5890 = vmatprep.subr.bf16.mxu1 %v8362_v21 }
 0x30f   :  { %5866 = vmatpush2.bf16.msra.mxu0 %v8357_v56 }
 0x310   :  { %5891 = vmatpush1.bf16.msra.mxu1 %v8360_v59  ;;  %7117 = vmatprep.subr.bf16.mxu0 %v8363_v15 }
 0x311   :  { %7139 = vmatprep.subr.bf16.mxu1 %v8379_v12 }
 0x312   :  { %v5623_v39 = vpop.f32.mrf.mxu0  ;;  %5868 = vmatmul.mubr.bf16.vlgmr.msra.gmra.mxu0 %v9773_v4 }
 0x313   :  { %7083 = vmatmul.mubr.msk.bf16.vlgmr.msra.gmra.mxu1 %vm4847_vm0, %v8396_v5  ;;  %v5624_v58 = vadd.f32 %v5623_v39, %v5583_v10  ;;  %7118 = vmatpush3.bf16.msra.mxu0 %v8364_v2 }
 0x314   :  { %6220 = vmatprep.mubr.bf16.mxu0 %v5922_v40  ;;  %v5625_v8 = vpop.f32.mrf.mxu0  ;;  %7119 = vmatprep.subr.bf16.mxu0 %v8365_v3 }
 0x315   :  { %v5626_v4 = vadd.f32 %v5625_v8, %v5585_v50  ;;  %7140 = vmatpush3.bf16.msra.mxu1 %v8380_v13 }
 0x316   :  { %v5627_v24 = vpop.f32.mrf.mxu0  ;;  %7141 = vmatprep.subr.bf16.mxu1 %v8381_v30 }
 0x317   :  { %7120 = vmatpush3.bf16.msra.mxu0 %v8366_v0 }
 0x318   :  { %v5628_v43 = vpop.f32.mrf.mxu0  ;;  %7121 = vmatprep.subr.bf16.mxu0 %v8367_v11 }
 0x319   :  { %7142 = vmatpush3.bf16.msra.mxu1 %v8382_v36  ;;  %v7084_v36 = vld [vmem:[%s11148_s4] ss:$0 sm:$0xff] }
 0x31a   :  { %7143 = vmatprep.subr.bf16.mxu1 %v8383_v16 }
 0x31b   :  { %7122 = vmatpush3.bf16.msra.mxu0 %v8368_v27 }
 0x31c   :  { %7123 = vmatprep.subr.bf16.mxu0 %v8369_v9 }
 0x31d   :  { %7144 = vmatpush3.bf16.msra.mxu1 %v8384_v47 }
 0x31e   :  { %7145 = vmatprep.subr.bf16.mxu1 %v8385_v34 }
 0x31f   :  { %7124 = vmatpush3.bf16.msra.mxu0 %v8370_v14 }
 0x320   :  { %7125 = vmatprep.subr.bf16.mxu0 %v8371_v6 }
 0x321   :  { %7146 = vmatpush3.bf16.msra.mxu1 %v8386_v1 }
 0x322   :  { %7147 = vmatprep.subr.bf16.mxu1 %v8387_v22 }
 0x323   :  { %7126 = vmatpush3.bf16.msra.mxu0 %v8372_v19 }
 0x324   :  { %7127 = vmatprep.subr.bf16.mxu0 %v8373_v54 }
 0x325   :  { %7148 = vmatpush3.bf16.msra.mxu1 %v8388_v23 }
 0x326   :  { %7149 = vmatprep.subr.bf16.mxu1 %v8389_v41 }
 0x327   :  { %7128 = vmatpush3.bf16.msra.mxu0 %v8374_v26 }
 0x328   :  { %7129 = vmatprep.subr.bf16.mxu0 %v8375_v18 }
 0x329   :  { %7150 = vmatpush3.bf16.msra.mxu1 %v8390_v35 }
 0x32a   :  { %7151 = vmatprep.subr.bf16.mxu1 %v8391_v7 }
 0x32b   :  { %7130 = vmatpush3.bf16.msra.mxu0 %v8376_v20 }
 0x32c   :  { %7131 = vmatprep.subr.bf16.mxu0 %v8377_v29 }
 0x32d   :  { %7152 = vmatpush3.bf16.msra.mxu1 %v8392_v42 }
 0x32e   :  { %7153 = vmatprep.subr.bf16.mxu1 %v8393_v49 }
 0x32f   :  { %7132 = vmatpush3.bf16.msra.mxu0 %v8378_v28 }
 0x331   :  { %7154 = vmatpush3.bf16.msra.mxu1 %v8394_v63 }
 0x332   :  { %6221 = vmatmul.mubr.bf16.vlgmr.msra.gmra.mxu0 %v5921_v17 }
 0x343   :  { %v5664_v32 = vpop.f32.mrf.mxu1 }
 0x344   :  { %v5665_v25 = vadd.f32 %v5664_v32, %v5624_v58 }
 0x345   :  { %v5666_v33 = vpop.f32.mrf.mxu1 }
 0x346   :  { %v5667_v38 = vadd.f32 %v5666_v33, %v5626_v4 }
 0x347   :  { %v5668_v61 = vpop.f32.mrf.mxu1 }
 0x349   :  { %v5669_v51 = vpop.f32.mrf.mxu1 }
 0x352   :  { %v5705_v44 = vpop.f32.mrf.mxu0 }
 0x353   :  { %v5706_v45 = vadd.f32 %v5705_v44, %v5665_v25 }
 0x354   :  { %v5707_v46 = vpop.f32.mrf.mxu0 }
 0x355   :  { %v5708_v10 = vadd.f32 %v5707_v46, %v5667_v38 }
 0x356   :  { %v5709_v57 = vpop.f32.mrf.mxu0 }
 0x358   :  { %v5710_v48 = vpop.f32.mrf.mxu0 }
 0x383   :  { %v5746_v50 = vpop.f32.mrf.mxu1 }
 0x384   :  { %v5747_v37 = vadd.f32 %v5746_v50, %v5706_v45 }
 0x385   :  { %v5748_v52 = vpop.f32.mrf.mxu1 }
 0x386   :  { %v5749_v53 = vadd.f32 %v5748_v52, %v5708_v10 }
 0x387   :  { %v5750_v55 = vpop.f32.mrf.mxu1 }
 0x389   :  { %v5751_v62 = vpop.f32.mrf.mxu1 }
 0x392   :  { %v5787_v21 = vpop.f32.mrf.mxu0 }
 0x393   :  { %v5788_v39 = vadd.f32 %v5787_v21, %v5747_v37 }
 0x394   :  { %v5789_v56 = vpop.f32.mrf.mxu0 }
 0x395   :  { %v5790_v5 = vadd.f32 %v5789_v56, %v5749_v53 }
 0x396   :  { %v5791_v59 = vpop.f32.mrf.mxu0 }
 0x398   :  { %v5792_v15 = vpop.f32.mrf.mxu0 }
 0x3c3   :  { %v5828_v60 = vpop.f32.mrf.mxu1 }
 0x3c4   :  { %v5829_v58 = vadd.f32 %v5828_v60, %v5788_v39 }
 0x3c5   :  { %v5830_v2 = vpop.f32.mrf.mxu1 }
 0x3c6   :  { %v5831_v11 = vadd.f32 %v5830_v2, %v5790_v5 }
 0x3c7   :  { %v5832_v3 = vpop.f32.mrf.mxu1 }
 0x3c9   :  { %v5833_v40 = vpop.f32.mrf.mxu1 }
 0x3d2   :  { %v5869_v0 = vpop.f32.mrf.mxu0 }
 0x3d3   :  { %v5910_v8 = vpop.f32.mrf.mxu1  ;;  %v5870_v4 = vadd.f32 %v5869_v0, %v5829_v58 }
 0x3d4   :  { %v5871_v24 = vpop.f32.mrf.mxu0 }
 0x3d5   :  { %v5912_v27 = vpop.f32.mrf.mxu1  ;;  %v5911_v43 = vadd.f32 %v5910_v8, %v5870_v4  ;;  %v5872_v9 = vadd.f32 %v5871_v24, %v5831_v11 }
 0x3d6   :  { %v5873_v12 = vpop.f32.mrf.mxu0 }
 0x3d7   :  { %v5914_v13 = vpop.f32.mrf.mxu1  ;;  %v5913_v14 = vadd.f32 %v5912_v27, %v5872_v9  ;;  %v5919_v6 = vmax.f32 %v5911_v43, 0.0 }
 0x3d8   :  { %v5874_v19 = vpop.f32.mrf.mxu0 }
 0x3d9   :  { %v5915_v54 = vpop.f32.mrf.mxu1  ;;  %v5920_v26 = vmax.f32 %v5913_v14, 0.0  ;;  %v5923_v20 = vpack.c.bf16 %v5919_v6, %v5919_v6 }
 0x3db   :  { %v5924_v18 = vpack.c.bf16 %v5920_v26, %v5920_v26 }
 0x3dd   :  { %6260 = vmatprep.mubr.bf16.mxu1 %v5924_v18 }
 0x3de   :  { %6261 = vmatmul.mubr.bf16.vlgmr.msra.gmra.mxu1 %v5923_v20 }
 0x3f2   :  { %v7133_v29 = vpop.f32.mrf.mxu0 }
 0x3f4   :  { %v7134_v28 = vpop.f32.mrf.mxu0 }
 0x3f5   :  { %v7135_v31 = vadd.f32 %v7134_v28, %v7133_v29 }
 0x3f6   :  { %v7136_v17 = vpop.f32.mrf.mxu0 }
 0x3f7   :  { %v6223_v33 = vadd.f32 %v7135_v31, %v7084_v36 }
 0x3f8   :  { %v7137_v30 = vpop.f32.mrf.mxu0 }
 0x49e   :  { %v7155_v32 = vpop.f32.mrf.mxu1 }
 0x4a0   :  { %v7156_v25 = vpop.f32.mrf.mxu1 }
 0x4a1   :  { %v7157_v16 = vadd.f32 %v7156_v25, %v7155_v32 }
 0x4a2   :  { %v7158_v38 = vpop.f32.mrf.mxu1 }
 0x4a3   :  { %v6263_v47 = vadd.f32 %v7157_v16, %v6223_v33 }
 0x4a4   :  { %v7159_v61 = vpop.f32.mrf.mxu1 }
 0x4a5   :  { %6268 = vst [vmem:[%s11149_s5] sm:$0xff] %v6263_v47 }

</bundles_post_ra>
